<compile_context>
chip_gen: v7x
topology: tpu7x:2x2x1
jax: 0.10.0
libtpu: 0.0.40
codegen_flags: <defaults>
</compile_context>

<pallas_src>
import itertools
import numpy as np

import jax
import jax.numpy as jnp
from jax import lax
from jax.experimental import pallas as pl
from jax.experimental.pallas import tpu as pltpu

LANE = 128
# contract last dims of both operands: lhs natural, rhs "transposed" -> Mosaic's
# native transpose_rhs matmul form (no explicit transpose of either operand).
NT_DIMS = (((1,), (1,)), ((), ()))


def _round_up(x, m):
    return ((x + m - 1) // m) * m


# ---------------------------------------------------------------------------
# Static PDE structure (deterministic, numpy) -- mirrors PDESYSLPEPS.var_set.
# ---------------------------------------------------------------------------
def build_structure(coord_dims, order, init_index_mi_list):
    ndim = len(coord_dims)

    # multi-index list (total degree <= order), deterministic ordering,
    # index 0 is the function value (0,...,0).
    mi_list = []
    for total in range(order + 1):
        for mi in itertools.product(range(order + 1), repeat=ndim):
            if sum(mi) == total:
                mi_list.append(mi)
    K = len(mi_list)
    mi_idx = {mi: k for k, mi in enumerate(mi_list)}

    G = int(np.prod(coord_dims))
    N = G * K
    strides = [int(np.prod(coord_dims[a + 1:])) for a in range(ndim)]

    def gidx(coords):
        return sum(c * s for c, s in zip(coords, strides))

    # Derivative (finite-difference / first-order Taylor) constraints:
    #   u_mi(g + e_a) - u_mi(g) - h_a(g) * u_{mi+e_a}(g) = 0
    # TODO(synk): original PDESYSLPEPS uses full higher-order Taylor smoothness
    # constraints; only the first-order relation is reproduced here.
    base_rows, onehot_rows, step_idx = [], [], []
    step_offsets = np.concatenate(
        [[0], np.cumsum([d - 1 for d in coord_dims[:-1]])]).astype(np.int64)
    for a in range(ndim):
        for coords in itertools.product(*[range(d) for d in coord_dims]):
            if coords[a] >= coord_dims[a] - 1:
                continue
            nxt = list(coords)
            nxt[a] += 1
            g, gn = gidx(coords), gidx(tuple(nxt))
            for mi in mi_list:
                mi_hi = list(mi)
                mi_hi[a] += 1
                mi_hi = tuple(mi_hi)
                if mi_hi not in mi_idx:
                    continue
                brow = np.zeros(N, np.float32)
                orow = np.zeros(N, np.float32)
                brow[gn * K + mi_idx[mi]] = 1.0
                brow[g * K + mi_idx[mi]] = -1.0
                orow[g * K + mi_idx[mi_hi]] = 1.0
                base_rows.append(brow)
                onehot_rows.append(orow)
                step_idx.append(step_offsets[a] + coords[a])
    base = np.stack(base_rows).astype(np.float32)
    onehot = np.stack(onehot_rows).astype(np.float32)
    step_idx = np.asarray(step_idx, np.int32)

    # Initial-value constraints: for each mi in init_index_mi_list, pin that
    # derivative on the initial slab (first index along coord 0).
    iv_rows = []
    for mi in init_index_mi_list:
        for coords in itertools.product(*[range(d) for d in coord_dims]):
            if coords[0] != 0:
                continue
            row = np.zeros(N, np.float32)
            row[gidx(coords) * K + mi_idx[tuple(mi)]] = 1.0
            iv_rows.append(row)
    A_iv = np.stack(iv_rows).astype(np.float32)

    return mi_list, K, G, N, base, onehot, step_idx, A_iv


# ---------------------------------------------------------------------------
# Fused Pallas kernel: per-batch assembly of A^T (variables x constraints) in a
# VMEM scratch, then two native-NT MXU matmuls giving A^T A (+ reg*I) and A^T b.
# ---------------------------------------------------------------------------
def make_fused_gram(*, Npad, MpadC, reg, mxu_bf16=False):
    scr_dtype = jnp.bfloat16 if mxu_bf16 else jnp.float32

    def kernel(c_ref, step_ref, b_ref, eqmask_ref, onehot_ref, add_ref,
               g_ref, t_ref, a_scr):
        # ---- assemble A^T in ONE fused, fully lane-aligned store -------------
        #   At = EQMASK * c  +  (BASE^T + AIV^T)  -  step_row * ONEHOT^T
        # constants already carry the zero padding rows/columns, so no separate
        # padding stores are needed (padding columns are inert in A^T A, A^T b).
        c = c_ref[0]                       # (Npad, 1)   per-batch coefficients
        sr = step_ref[0]                   # (1, MpadC)  per-constraint step sizes
        at = eqmask_ref[...] * c + add_ref[...] - sr * onehot_ref[...]
        a_scr[...] = at.astype(scr_dtype)

        av = a_scr[...]                    # feed the MXU straight from scratch

        # ---- MXU 1: Gram = A^T A, native transpose-rhs form (no vxpose) ------
        gram = lax.dot_general(av, av, NT_DIMS,
                               preferred_element_type=jnp.float32)   # (Npad, Npad)

        # ---- MXU 2: (A^T b)^T as a tiny 8-row matmul -> lane-dense (8, Npad) --
        b8 = jnp.where(lax.broadcasted_iota(jnp.int32, (8, MpadC), 0) == 0,
                       b_ref[0], 0.0).astype(scr_dtype)
        atbT = lax.dot_general(b8, av, NT_DIMS,
                               preferred_element_type=jnp.float32)   # (8, Npad)

        # ---- epilogue: Tikhonov regularization on the diagonal ----------------
        ri = lax.broadcasted_iota(jnp.int32, (Npad, Npad), 0)
        ci = lax.broadcasted_iota(jnp.int32, (Npad, Npad), 1)
        g_ref[0] = gram + jnp.where(ri == ci, reg, 0.0)
        t_ref[0] = atbT

    def call(coeffs_col, step_row, b_row, eqmask, onehot_t, const_add):
        B = coeffs_col.shape[0]

        # rough resident-VMEM estimate (double-buffered blocks + scratch), bytes
        in_bytes = (Npad * LANE + 2 * 8 * MpadC + 3 * Npad * MpadC) * 4
        out_bytes = (Npad * Npad + 8 * Npad) * 4
        scr_bytes = Npad * MpadC * (2 if mxu_bf16 else 4)
        est = 2 * (in_bytes + out_bytes) + scr_bytes

        # generation-aware budget: v7x has only 64 MiB physical VMEM per core.
        try:
            cap = int(pltpu.get_tpu_info().vmem_capacity_bytes)
        except Exception:
            cap = 64 << 20
        vmem_limit = max(32 << 20, min(2 * est, cap - (12 << 20)))
        vmem_limit = int(max(vmem_limit, est + (4 << 20)))
        # TODO(synk): for larger PDE grids (Npad, MpadC growing), column-tile the
        # Gram output (second grid axis, 'arbitrary') and single-buffer the
        # constant inputs (pipeline_mode=pl.Buffered(1)) so residency stays under
        # v7x's 64 MiB and the 2 TensorCores get enough grid steps to pipeline.

        return pl.pallas_call(
            kernel,
            out_shape=(
                jax.ShapeDtypeStruct((B, Npad, Npad), jnp.float32),
                jax.ShapeDtypeStruct((B, 8, Npad), jnp.float32),
            ),
            grid=(B,),
            in_specs=[
                pl.BlockSpec((1, Npad, 1), lambda b: (b, 0, 0)),     # coeffs (column)
                pl.BlockSpec((1, 1, MpadC), lambda b: (b, 0, 0)),    # step row
                pl.BlockSpec((1, 1, MpadC), lambda b: (b, 0, 0)),    # rhs/iv row (b)
                pl.BlockSpec((Npad, MpadC), lambda b: (0, 0)),       # EQMASK (const)
                pl.BlockSpec((Npad, MpadC), lambda b: (0, 0)),       # ONEHOT^T (const)
                pl.BlockSpec((Npad, MpadC), lambda b: (0, 0)),       # BASE^T+AIV^T (const)
            ],
            out_specs=(
                pl.BlockSpec((1, Npad, Npad), lambda b: (b, 0, 0)),
                pl.BlockSpec((1, 8, Npad), lambda b: (b, 0, 0)),
            ),
            scratch_shapes=[pltpu.VMEM((Npad, MpadC), scr_dtype)],
            compiler_params=pltpu.CompilerParams(
                dimension_semantics=("parallel",),
                vmem_limit_bytes=vmem_limit),
        )(coeffs_col, step_row, b_row, eqmask, onehot_t, const_add)

    return call


# ---------------------------------------------------------------------------
# PDEDenseLayer (JAX/Pallas version)
# ---------------------------------------------------------------------------
class PDEDenseLayerPallas:
    def __init__(self, bs, order, n_ind_dim, n_iv, init_index_mi_list, coord_dims,
                 n_iv_steps=1, solver_dbl=True, gamma=0.5, alpha=0.1,
                 mxu_bf16=False):
        self.step_size = 0.01
        self.coord_dims = tuple(coord_dims)
        self.n_coord = len(coord_dims)
        self.order = order
        self.n_ind_dim = n_ind_dim
        self.n_iv = n_iv
        self.n_iv_steps = n_iv_steps
        self.bs = bs
        self.solver_dbl = solver_dbl
        self.mxu_bf16 = mxu_bf16
        # TODO(synk): solver_dbl implies float64; the TPU MXU has no f64 path, so
        # this Pallas solver runs in float32 (callers expecting f64 should know).

        (mi_list, K, G, N, base, onehot, step_idx, A_iv) = build_structure(
            self.coord_dims, order, init_index_mi_list)
        self.mi_list = mi_list
        self.n_orders = K
        self.grid_size = G
        self.n_vars = N
        self.reg = 1e-4

        self.Md = base.shape[0]
        self.Miv = A_iv.shape[0]
        self.M = G + self.Md + self.Miv
        # rows of A^T = variables; 16-aligned under bf16 so packed sublanes stay clean
        self.Npad = _round_up(N, 16 if mxu_bf16 else 8)
        # cols of A^T = constraints; 128-aligned so every store / matmul operand is
        # lane-dense (the extra zero columns are inert in A^T A and A^T b)
        self.MpadC = max(LANE, _round_up(self.M, LANE))
        self.step_idx = jnp.asarray(step_idx)    # (Md,)

        # merged, full-width, lane-aligned host constants (transposed layout)
        Npad, MpadC, Md = self.Npad, self.MpadC, self.Md
        eqmask = np.zeros((Npad, MpadC), np.float32)
        eqmask[np.arange(N), np.arange(N) // K] = 1.0          # eq cols [0, G)
        onehot_full = np.zeros((Npad, MpadC), np.float32)
        onehot_full[:N, G:G + Md] = onehot.T                   # deriv cols
        const_add = np.zeros((Npad, MpadC), np.float32)
        const_add[:N, G:G + Md] = base.T                       # deriv cols (base part)
        const_add[:N, G + Md:self.M] = A_iv.T                  # iv cols
        self.eqmask = jnp.asarray(eqmask)
        self.onehot_t = jnp.asarray(onehot_full)
        self.const_add = jnp.asarray(const_add)

        self._gram = make_fused_gram(Npad=Npad, MpadC=MpadC, reg=self.reg,
                                     mxu_bf16=mxu_bf16)

    def forward(self, coeffs, rhs, iv_rhs, steps_list):
        B = self.bs * self.n_ind_dim
        G, K, N = self.grid_size, self.n_orders, self.n_vars
        Md, Miv, M = self.Md, self.Miv, self.M
        Npad, MpadC = self.Npad, self.MpadC

        # flatten variables grid-major / order-minor: n = g*K + k (pure reshape)
        c = coeffs.reshape(B, N).astype(jnp.float32)
        if Npad > N:
            c = jnp.pad(c, ((0, 0), (0, Npad - N)))
        coeffs_col = c.reshape(B, Npad, 1)

        rhs = rhs.reshape(B, G).astype(jnp.float32)
        iv_b = (iv_rhs.reshape(B, Miv).astype(jnp.float32)
                if iv_rhs is not None else jnp.zeros((B, Miv), jnp.float32))
        steps_flat = jnp.concatenate(
            [steps_list[i].reshape(B, self.coord_dims[i] - 1).astype(jnp.float32)
             for i in range(self.n_coord)], axis=1)
        step_vals = jnp.take(steps_flat, self.step_idx, axis=1)      # (B, Md)

        # per-constraint-column step sizes / RHS over the padded constraint axis:
        # [eq(G) | deriv(Md) | iv(Miv) | zero pad to MpadC]
        step_row = jnp.concatenate(
            [jnp.zeros((B, G), jnp.float32), step_vals,
             jnp.zeros((B, MpadC - G - Md), jnp.float32)],
            axis=1).reshape(B, 1, MpadC)
        b_row = jnp.concatenate(
            [rhs, jnp.zeros((B, Md), jnp.float32), iv_b,
             jnp.zeros((B, MpadC - M), jnp.float32)],
            axis=1).reshape(B, 1, MpadC)

        # fused assembly + Gram + A^T b + regularization (single pallas_call)
        gram, atbT = self._gram(coeffs_col, step_row, b_row,
                                self.eqmask, self.onehot_t, self.const_add)
        atb = atbT[:, 0, :]                                           # (B, Npad)

        # TODO(synk): MGS.QPFunction is an interior-point QP solve; approximated
        # here by regularized normal equations with an SPD Cholesky solve (glue,
        # no clean Pallas equivalent for the factorization).
        L = jnp.linalg.cholesky(gram)                                 # (B, Npad, Npad)
        y = lax.linalg.triangular_solve(L, atb[..., None],
                                        left_side=True, lower=True)
        x = lax.linalg.triangular_solve(L, y, left_side=True, lower=True,
                                        transpose_a=True)[..., 0]     # (B, Npad)
        x = x[:, :N]

        # get_solution_reshaped + output split
        u = x.reshape(self.bs, self.n_ind_dim, G, K)
        u0 = u[:, :, :, 0]
        eps = None
        return u0, u, eps


if __name__ == "__main__":
    bs, n_ind_dim = 2, 2
    coord_dims = (8, 8)
    order = 2
    n_iv = 1
    init_index_mi_list = [(0, 0)]

    layer = PDEDenseLayerPallas(bs=bs, order=order, n_ind_dim=n_ind_dim, n_iv=n_iv,
                                init_index_mi_list=init_index_mi_list,
                                coord_dims=coord_dims, solver_dbl=True)

    G, K = layer.grid_size, layer.n_orders
    Miv = layer.Miv

    key = jax.random.PRNGKey(0)
    k1, k2, k3, k4, k5 = jax.random.split(key, 5)
    coeffs = jax.random.normal(k1, (bs, n_ind_dim, G, K), jnp.float32)
    rhs = jax.random.normal(k2, (bs, n_ind_dim, G), jnp.float32)
    iv_rhs = jax.random.normal(k3, (bs, n_ind_dim, Miv), jnp.float32)
    steps0 = 0.01 + 0.005 * jax.random.uniform(
        k4, (bs, n_ind_dim, coord_dims[0] - 1), jnp.float32)
    steps1 = 0.01 + 0.005 * jax.random.uniform(
        k5, (bs, n_ind_dim, coord_dims[1] - 1), jnp.float32)

    u0, u, eps = layer.forward(coeffs, rhs, iv_rhs, [steps0, steps1])
    jax.block_until_ready((u0, u))
    assert u.shape == (bs, n_ind_dim, G, K) and u0.shape == (bs, n_ind_dim, G)
    assert bool(jnp.all(jnp.isfinite(u)))
    print("KERNEL_OK")
</pallas_src>

<mosaic_0001>
module attributes {stable_mosaic.version = 11 : i64} {
  func.func @kernel(%arg0: i32, %arg1: memref<1x384x1xf32, #tpu.memory_space<vmem>>, %arg2: memref<1x1x512xf32, #tpu.memory_space<vmem>>, %arg3: memref<1x1x512xf32, #tpu.memory_space<vmem>>, %arg4: memref<384x512xf32, #tpu.memory_space<vmem>>, %arg5: memref<384x512xf32, #tpu.memory_space<vmem>>, %arg6: memref<384x512xf32, #tpu.memory_space<vmem>>, %arg7: memref<1x384x384xf32, #tpu.memory_space<vmem>>, %arg8: memref<1x8x384xf32, #tpu.memory_space<vmem>>, %arg9: memref<384x512xf32, #tpu.memory_space<vmem>>) attributes {dimension_semantics = [#tpu.dimension_semantics<parallel>], iteration_bounds = array<i64: 4>, scalar_prefetch = 0 : i64, scratch_operands = 1 : i64, tpu.core_type = #tpu.core_type<tc>, window_params = [{transform_indices = @transform_0, window_bounds = array<i64: 1, 384, 1>}, {transform_indices = @transform_1, window_bounds = array<i64: 1, 1, 512>}, {transform_indices = @transform_2, window_bounds = array<i64: 1, 1, 512>}, {pipeline_mode = #tpu.pipeline_mode<synchronous>, transform_indices = @transform_3, window_bounds = array<i64: 384, 512>}, {pipeline_mode = #tpu.pipeline_mode<synchronous>, transform_indices = @transform_4, window_bounds = array<i64: 384, 512>}, {pipeline_mode = #tpu.pipeline_mode<synchronous>, transform_indices = @transform_5, window_bounds = array<i64: 384, 512>}, {transform_indices = @transform_6, window_bounds = array<i64: 1, 384, 384>}, {transform_indices = @transform_7, window_bounds = array<i64: 1, 8, 384>}]} {
    %c0 = arith.constant 0 : index
    %c0_0 = arith.constant 0 : index
    %c0_1 = arith.constant 0 : index
    %0 = vector.load %arg1[%c0, %c0_0, %c0_1] : memref<1x384x1xf32, #tpu.memory_space<vmem>>, vector<1x384x1xf32>
    %1 = vector.shape_cast %0 : vector<1x384x1xf32> to vector<384x1xf32>
    %c0_2 = arith.constant 0 : index
    %c0_3 = arith.constant 0 : index
    %c0_4 = arith.constant 0 : index
    %2 = vector.load %arg2[%c0_2, %c0_3, %c0_4] : memref<1x1x512xf32, #tpu.memory_space<vmem>>, vector<1x1x512xf32>
    %3 = vector.shape_cast %2 : vector<1x1x512xf32> to vector<1x512xf32>
    %c0_5 = arith.constant 0 : index
    %c0_6 = arith.constant 0 : index
    %4 = vector.load %arg4[%c0_5, %c0_6] : memref<384x512xf32, #tpu.memory_space<vmem>>, vector<384x512xf32>
    %5 = vector.broadcast %1 : vector<384x1xf32> to vector<384x512xf32>
    %6 = arith.mulf %4, %5 : vector<384x512xf32>
    %c0_7 = arith.constant 0 : index
    %c0_8 = arith.constant 0 : index
    %7 = vector.load %arg6[%c0_7, %c0_8] : memref<384x512xf32, #tpu.memory_space<vmem>>, vector<384x512xf32>
    %8 = arith.addf %6, %7 : vector<384x512xf32>
    %c0_9 = arith.constant 0 : index
    %c0_10 = arith.constant 0 : index
    %9 = vector.load %arg5[%c0_9, %c0_10] : memref<384x512xf32, #tpu.memory_space<vmem>>, vector<384x512xf32>
    %10 = vector.broadcast %3 : vector<1x512xf32> to vector<384x512xf32>
    %11 = arith.mulf %10, %9 : vector<384x512xf32>
    %12 = arith.subf %8, %11 : vector<384x512xf32>
    %c0_11 = arith.constant 0 : index
    %c0_12 = arith.constant 0 : index
    %13 = vector.load %arg9[%c0_11, %c0_12] : memref<384x512xf32, #tpu.memory_space<vmem>>, vector<384x512xf32>
    tpu.vector_store %arg9[%c0_11, %c0_12], %12 {strides = array<i32>} : memref<384x512xf32, #tpu.memory_space<vmem>>, vector<384x512xf32>,
    %c0_13 = arith.constant 0 : index
    %c0_14 = arith.constant 0 : index
    %14 = vector.load %arg9[%c0_13, %c0_14] : memref<384x512xf32, #tpu.memory_space<vmem>>, vector<384x512xf32>
    %cst = arith.constant dense<0.000000e+00> : vector<384x384xf32>
    %15 = tpu.matmul %14, %14, %cst {dimension_numbers = #tpu.dot_dimension_numbers<[1], [1], [0], [0], [0, 0, 1, 0], [], []>} : vector<384x512xf32>, vector<384x512xf32>, vector<384x384xf32> -> vector<384x384xf32>
    %16 = tpu.iota {dimensions = array<i32: 0>} : vector<8x512xi32>
    %c0_i32 = arith.constant 0 : i32
    %17 = vector.broadcast %c0_i32 : i32 to vector<8x512xi32>
    %18 = arith.cmpi eq, %16, %17 : vector<8x512xi32>
    %c0_15 = arith.constant 0 : index
    %c0_16 = arith.constant 0 : index
    %c0_17 = arith.constant 0 : index
    %19 = vector.load %arg3[%c0_15, %c0_16, %c0_17] : memref<1x1x512xf32, #tpu.memory_space<vmem>>, vector<1x1x512xf32>
    %20 = vector.shape_cast %19 : vector<1x1x512xf32> to vector<1x512xf32>
    %cst_18 = arith.constant 0.000000e+00 : f32
    %21 = vector.shape_cast %20 : vector<1x512xf32> to vector<1x512xf32>
    %22 = vector.broadcast %21 : vector<1x512xf32> to vector<8x512xf32>
    %23 = vector.broadcast %cst_18 : f32 to vector<8x512xf32>
    %24 = arith.select %18, %22, %23 : vector<8x512xi1>, vector<8x512xf32>
    %cst_19 = arith.constant dense<0.000000e+00> : vector<8x384xf32>
    %25 = tpu.matmul %24, %14, %cst_19 {dimension_numbers = #tpu.dot_dimension_numbers<[1], [1], [0], [0], [0, 0, 1, 0], [], []>} : vector<8x512xf32>, vector<384x512xf32>, vector<8x384xf32> -> vector<8x384xf32>
    %26 = tpu.iota {dimensions = array<i32: 0>} : vector<384x384xi32>
    %27 = tpu.iota {dimensions = array<i32: 1>} : vector<384x384xi32>
    %28 = arith.cmpi eq, %26, %27 : vector<384x384xi32>
    %cst_20 = arith.constant 9.99999974E-5 : f32
    %cst_21 = arith.constant 0.000000e+00 : f32
    %29 = vector.broadcast %cst_20 : f32 to vector<384x384xf32>
    %30 = vector.broadcast %cst_21 : f32 to vector<384x384xf32>
    %31 = arith.select %28, %29, %30 : vector<384x384xi1>, vector<384x384xf32>
    %32 = arith.addf %15, %31 : vector<384x384xf32>
    %c0_22 = arith.constant 0 : index
    %c0_23 = arith.constant 0 : index
    %c0_24 = arith.constant 0 : index
    %33 = vector.load %arg7[%c0_22, %c0_23, %c0_24] : memref<1x384x384xf32, #tpu.memory_space<vmem>>, vector<1x384x384xf32>
    %34 = vector.shape_cast %33 : vector<1x384x384xf32> to vector<384x384xf32>
    %35 = vector.shape_cast %32 : vector<384x384xf32> to vector<1x384x384xf32>
    tpu.vector_store %arg7[%c0_22, %c0_23, %c0_24], %35 {strides = array<i32>} : memref<1x384x384xf32, #tpu.memory_space<vmem>>, vector<1x384x384xf32>,
    %c0_25 = arith.constant 0 : index
    %c0_26 = arith.constant 0 : index
    %c0_27 = arith.constant 0 : index
    %36 = vector.load %arg8[%c0_25, %c0_26, %c0_27] : memref<1x8x384xf32, #tpu.memory_space<vmem>>, vector<1x8x384xf32>
    %37 = vector.shape_cast %36 : vector<1x8x384xf32> to vector<8x384xf32>
    %38 = vector.shape_cast %25 : vector<8x384xf32> to vector<1x8x384xf32>
    tpu.vector_store %arg8[%c0_25, %c0_26, %c0_27], %38 {strides = array<i32>} : memref<1x8x384xf32, #tpu.memory_space<vmem>>, vector<1x8x384xf32>,
    return
  }
  func.func @transform_0(%arg0: i32) -> (i32, i32, i32) {
    %c0_i32 = arith.constant 0 : i32
    %c0_i32_0 = arith.constant 0 : i32
    %c0_i32_1 = arith.constant 0 : i32
    return %arg0, %c0_i32, %c0_i32_0 : i32, i32, i32
  }
  func.func @transform_1(%arg0: i32) -> (i32, i32, i32) {
    %c0_i32 = arith.constant 0 : i32
    %c0_i32_0 = arith.constant 0 : i32
    %c0_i32_1 = arith.constant 0 : i32
    return %arg0, %c0_i32, %c0_i32_0 : i32, i32, i32
  }
  func.func @transform_2(%arg0: i32) -> (i32, i32, i32) {
    %c0_i32 = arith.constant 0 : i32
    %c0_i32_0 = arith.constant 0 : i32
    %c0_i32_1 = arith.constant 0 : i32
    return %arg0, %c0_i32, %c0_i32_0 : i32, i32, i32
  }
  func.func @transform_3(%arg0: i32) -> (i32, i32) {
    %c0_i32 = arith.constant 0 : i32
    %c0_i32_0 = arith.constant 0 : i32
    %c0_i32_1 = arith.constant 0 : i32
    return %c0_i32, %c0_i32_0 : i32, i32
  }
  func.func @transform_4(%arg0: i32) -> (i32, i32) {
    %c0_i32 = arith.constant 0 : i32
    %c0_i32_0 = arith.constant 0 : i32
    %c0_i32_1 = arith.constant 0 : i32
    return %c0_i32, %c0_i32_0 : i32, i32
  }
  func.func @transform_5(%arg0: i32) -> (i32, i32) {
    %c0_i32 = arith.constant 0 : i32
    %c0_i32_0 = arith.constant 0 : i32
    %c0_i32_1 = arith.constant 0 : i32
    return %c0_i32, %c0_i32_0 : i32, i32
  }
  func.func @transform_6(%arg0: i32) -> (i32, i32, i32) {
    %c0_i32 = arith.constant 0 : i32
    %c0_i32_0 = arith.constant 0 : i32
    %c0_i32_1 = arith.constant 0 : i32
    return %arg0, %c0_i32, %c0_i32_0 : i32, i32, i32
  }
  func.func @transform_7(%arg0: i32) -> (i32, i32, i32) {
    %c0_i32 = arith.constant 0 : i32
    %c0_i32_0 = arith.constant 0 : i32
    %c0_i32_1 = arith.constant 0 : i32
    return %arg0, %c0_i32, %c0_i32_0 : i32, i32, i32
  }
}

</mosaic_0001>

<bundles_post_ra>
// kernel: tpu_custom_call.1
= control target key start
LH: loop header
LB: loop body
LE: loop exit
PB: predicated region body
PF: predicated region fallthrough
CT: control target
= control target key end

     0   :  { %s8594_s0 = inlined_call_operand.vmem [shape: f32[4,384,1], index: 0, kind: input, shape index: {}]   ;;  %s8595_s1 = inlined_call_operand.hbm [shape: f32[4,1,512], index: 1, kind: input, shape index: {}]   ;;  %s8596_s2 = inlined_call_operand.hbm [shape: f32[4,1,512], index: 2, kind: input, shape index: {}]   ;;  %s8597_s3 = inlined_call_operand.hbm [shape: f32[384,512], index: 3, kind: input, shape index: {}]   ;;  %s8598_s4 = inlined_call_operand.hbm [shape: f32[384,512], index: 4, kind: input, shape index: {}]   ;;  %s8599_s5 = inlined_call_operand.hbm [shape: f32[384,512], index: 5, kind: input, shape index: {}]   ;;  %s8600_s6 = inlined_call_operand.hbm [shape: f32[4,384,384], index: 6, kind: output, shape index: {0}]   ;;  %s8601_s7 = inlined_call_operand.hbm [shape: f32[4,8,384], index: 7, kind: output, shape index: {1}]  }
   0x1   :  { %9118 = sst [smem:[#allocation254_spill]] %s8597_s3 }
   0x2   :  { %9119 = sst [smem:[#allocation255_spill]] %s8598_s4 }
   0x3   :  { %9120 = sst [smem:[#allocation256_spill]] %s8599_s5 }
   0x4   :  { %13 = vsyncpa [#allocation4], 0 }
   0x5   :  { %15 = vsyncpa [#allocation4 + $0x1], 0 }
   0x6   :  { %16 = vsyncpa [#allocation7], 0 }
   0x7   :  { %18 = vsyncpa [#allocation7 + $0x1], 0 }
   0x8   :  { %19 = vsyncpa [#allocation10], 0 }
   0x9   :  { %20 = vsyncpa [#allocation5], 0 }
   0xa   :  { %22 = vsyncpa [#allocation5 + $0x1], 0 }
   0xb   :  { %23 = vsyncpa [#allocation14], 0 }
   0xc   :  { %25 = vsyncpa [#allocation14 + $0x1], 0  ;;  %s5743_s24 = smov 0   ;;  %s5745_s25 = smov 0  }
   0xd   :  { %s5747_s26 = smov 0   ;;  %s5749_s27 = smov 0  }
   0xe LB: > { %s5764_s28 = sadd.s32 4294967295, %s5688_s27   ;;  %s4759_s29 = sadd.s32 4294967294, %s5688_s27   ;;  %s5688_s27 = sphi %s5749_s27, %s9790_s27   ;;  %s5684_s26 = sphi %s5747_s26, %s9789_s26   ;;  %s5680_s25 = sphi %s5745_s25, %s9788_s25   ;;  %s5676_s24 = sphi %s5743_s24, %s9787_s24  }
   0xf   : > { %p77_p0 = scmp.ne.s32.totalorder %s5680_s25, %s5676_s24  ;;  %p8602_p1 = scmp.eq.s32.totalorder %s5764_s28, 0 }
  0x10   : > { %p196_p3 = scmp.eq.s32.totalorder %s4759_s29, 3  ;;  %p4760_p5 = scmp.ge.s32.totalorder %s5688_s27, 1 }
  0x11   : > { %p5773_p4 = por %p8602_p1, %p77_p0  ;;  %p229_p7 = scmp.lt.s32.totalorder %s5688_s27, 5 }
  0x12   : > { %p5778_p6 = por %p196_p3, %p77_p0  ;;  %s5690_s10 = smov [#allocation8]  }
  0x13   : > { %s9121_s30 = scalar_select %p5773_p4, 1, 0 }
  0x14   : > { %s9122_s8 = scalar_select %p5778_p6, 1, 0 }
  0x15   : > { %p5783_p8 = pnand %p4760_p5, %p229_p7  ;;  %s241_s11 = sshll.u32 %s5690_s10, 4  ;;  %s5787_s11 = int_to_ptr.vmem [resolvable:$true] %s241_s11 }
  0x16   : > { %9123 = sst [smem:[#allocation21_spill]] %s9122_s8  ;;  %s5691_s13 = smov [#allocation9]  }
  0x17   : > { %s9124_s9 = scalar_select %p5783_p8, 1, 0 }
  0x18   : > { %p5357_p9 = pneg %p5783_p8  ;;  %s254_s14 = sshll.u32 %s5691_s13, 4  ;;  %s5797_s14 = int_to_ptr.vmem [resolvable:$true] %s254_s14 }
  0x19   : > { %s5692_s15 = smov [#allocation11]   ;;  %s9126_s3 = sld [smem:[#allocation254_spill]] }
  0x1a   : > { %p5793_p10 = pnand %p5357_p9, %p8602_p1  ;;  %s5799_s16 = sshll.u32 %s5692_s15, 4  ;;  %s268_s16 = int_to_ptr.vmem [resolvable:$true] %s5799_s16 }
  0x1c   : > { %p5809_p12 = pneg %p5793_p10 }
  0x1f   : > { %s5434_s19 = scalar_lea.hbm %s9126_s3, 24576 }
  0x20   : > { %p5435_p11 = scmp.ne.s32.totalorder %s9126_s3, %s5434_s19  ;;  %p5441_p3 = scmp.lt.u32.totalorder %s5434_s19, %s9126_s3 }
  0x22   : > { %p5437_p13 = pnand %p5809_p12, %p5435_p11 }
  0x24   : > { %p5438_p0 = pneg %p5437_p13 }
  0x26   : > { %p5443_p5 = pnand %p5441_p3, %p5438_p0 }
  0x28   : > { %5446 = shalt.err (!%p5443_p5)
}
  0x29   : > { %s5447_s10 = scalar_lea.vmem %s5787_s11, 24576  ;;  %p5455_p2 = scmp.lt.s32.totalorder %s5787_s11, %s5787_s11 }
  0x2a   : > { %p5448_p7 = scmp.ne.s32.totalorder %s5787_s11, %s5447_s10  ;;  %p5456_p6 = scmp.lt.s32.totalorder %s5447_s10, %s5447_s10 }
  0x2c   : > { %p5450_p9 = pnand %p5448_p7, %p5809_p12  ;;  %p5457_p11 = por %p5456_p6, %p5455_p2 }
  0x2e   : > { %p5451_p1 = pneg %p5450_p9 }
  0x30   : > { %p5458_p13 = pnand %p5457_p11, %p5451_p1 }
  0x32   : > { %5461 = shalt.err (!%p5458_p13)
}
  0x33   : > { %s5693_s13 = smov 512   ;;  %s5694_s15 = smov 32  }
  0x34   : > { %5360 = dma.hbm_to_vmem [thread:$0]  (!%p5793_p10), %s9126_s3, 24576, %s5787_s11, [#allocation7], %s5693_s13, %s5693_s13, %s5694_s15  }
  0x35   : > { %s9128_s4 = sld [smem:[#allocation255_spill]] }
  0x3b   : > { %s5462_s21 = scalar_lea.hbm %s9128_s4, 24576 }
  0x3c   : > { %p5463_p1 = scmp.ne.s32.totalorder %s9128_s4, %s5462_s21  ;;  %p5469_p0 = scmp.lt.u32.totalorder %s5462_s21, %s9128_s4 }
  0x3e   : > { %p5465_p2 = pnand %p5463_p1, %p5809_p12 }
  0x40   : > { %p5466_p6 = pneg %p5465_p2 }
  0x42   : > { %p5471_p3 = pnand %p5469_p0, %p5466_p6 }
  0x44   : > { %5474 = shalt.err (!%p5471_p3)
}
  0x45   : > { %s5475_s11 = scalar_lea.vmem %s5797_s14, 24576  ;;  %p5483_p11 = scmp.lt.s32.totalorder %s5797_s14, %s5797_s14 }
  0x46   : > { %p5476_p5 = scmp.ne.s32.totalorder %s5797_s14, %s5475_s11  ;;  %p5484_p13 = scmp.lt.s32.totalorder %s5475_s11, %s5475_s11 }
  0x48   : > { %p5478_p7 = pnand %p5476_p5, %p5809_p12  ;;  %p5485_p1 = por %p5484_p13, %p5483_p11 }
  0x4a   : > { %p5479_p9 = pneg %p5478_p7 }
  0x4c   : > { %p5486_p2 = pnand %p5485_p1, %p5479_p9 }
  0x4e   : > { %5489 = shalt.err (!%p5486_p2)
}
  0x4f   : > { %5363 = dma.hbm_to_vmem [thread:$0]  (!%p5793_p10), %s9128_s4, 24576, %s5797_s14, [#allocation10], %s5693_s13, %s5693_s13, %s5694_s15  }
  0x50   : > { %s9129_s5 = sld [smem:[#allocation256_spill]] }
  0x56   : > { %s5490_s20 = scalar_lea.hbm %s9129_s5, 24576 }
  0x57   : > { %p5491_p6 = scmp.ne.s32.totalorder %s9129_s5, %s5490_s20  ;;  %p5497_p5 = scmp.lt.u32.totalorder %s5490_s20, %s9129_s5 }
  0x59   : > { %p5493_p0 = pnand %p5491_p6, %p5809_p12 }
  0x5b   : > { %p5494_p3 = pneg %p5493_p0 }
  0x5d   : > { %p5499_p7 = pnand %p5497_p5, %p5494_p3 }
  0x5f   : > { %5502 = shalt.err (!%p5499_p7)
}
  0x60   : > { %s5503_s11 = scalar_lea.vmem %s268_s16, 24576  ;;  %p5511_p1 = scmp.lt.s32.totalorder %s268_s16, %s268_s16 }
  0x61   : > { %p5504_p9 = scmp.ne.s32.totalorder %s268_s16, %s5503_s11  ;;  %p5512_p2 = scmp.lt.s32.totalorder %s5503_s11, %s5503_s11 }
  0x63   : > { %p5506_p11 = pnand %p5504_p9, %p5809_p12  ;;  %p5513_p4 = por %p5512_p2, %p5511_p1 }
  0x65   : > { %p5507_p13 = pneg %p5506_p11 }
  0x67   : > { %p5514_p8 = pnand %p5513_p4, %p5507_p13 }
  0x69   : > { %5517 = shalt.err (!%p5514_p8)
}
  0x6a   : > { %5366 = dma.hbm_to_vmem [thread:$0]  (!%p5793_p10), %s9129_s5, 24576, %s268_s16, [#allocation10], %s5693_s13, %s5693_s13, %s5694_s15  }
  0x6b   : > { %s5882_s22 = sadd.s32 1, %s5688_s27   ;;  %s64_s17 = sadd.s32 1, %s5684_s26 }
  0x6c   : > { %s61_s12 = ssub.s32 %s5688_s27, %s5882_s22  ;;  %p71_p8 = scmp.ne.s32.totalorder %s5684_s26, %s5680_s25 }
  0x6d   : > { %p62_p4 = scmp.eq.s32.totalorder %s61_s12, 0  ;;  %p72_p12 = scmp.eq.s32.totalorder %s5688_s27, 0 }
  0x6e   : > { %p5384_p6 = scmp.lt.s32.totalorder %s5688_s27, 4  ;;  %p9130_p3 = scmp.eq.s32.totalorder %s5764_s28, 3 }
  0x6f   : > { %s5892_s18 = scalar_select %p62_p4, %s5684_s26, %s64_s17  }
  0x70   : > { %p73_p0 = por %p72_p12, %p71_p8  ;;  %p5896_p5 = por %p9130_p3, %p71_p8 }
  0x71   : > { %s289_s20 = sand.u32 1, %s5684_s26   ;;  %s4790_s21 = sshll.u32 %s5688_s27, 6 }
  0x72   : > { %s9131_s19 = scalar_select %p5896_p5, 1, 0 }
  0x73   : > { %s5902_s16 = sshll.u32 %s289_s20, 2  ;;  %s5907_s23 = scalar_lea.hbm %s8595_s1, %s4790_s21 }
  0x74   : > { %s293_s29 = scalar_lea.vmem [#allocation3], %s5902_s16  ;;  %p5910_p10 = pnand %p5384_p6, %p73_p0 }
  0x75   : > { %s301_s10 = sshll.u32 %s293_s29, 4  ;;  %s5919_s12 = scalar_lea.hbm %s8596_s2, %s4790_s21  ;;  %s5914_s10 = int_to_ptr.vmem [resolvable:$true] %s301_s10 }
  0x76   : > { %s290_s17 = scalar_lea.sflag [#allocation4], %s289_s20  ;;  %s5518_s13 = scalar_lea.hbm %s5907_s23, 64 }
  0x77   : > { %p5519_p7 = scmp.ne.s32.totalorder %s5907_s23, %s5518_s13  ;;  %p5520_p9 = pneg %p5910_p10 }
  0x78   : > { %s5523_s3 = scalar_lea.hbm %s8595_s1, 256  ;;  %p5524_p1 = scmp.lt.u32.totalorder %s5907_s23, %s8595_s1 }
  0x79   : > { %p5521_p11 = pnand %p5520_p9, %p5519_p7  ;;  %p5525_p2 = scmp.lt.u32.totalorder %s5523_s3, %s5518_s13 }
  0x7a   : > { %p5527_p8 = scmp.lt.u32.totalorder %s5518_s13, %s5907_s23 }
  0x7b   : > { %p5522_p13 = pneg %p5521_p11  ;;  %p5526_p4 = por %p5525_p2, %p5524_p1 }
  0x7d   : > { %p5528_p12 = por %p5527_p8, %p5526_p4 }
  0x7f   : > { %p5529_p6 = pnand %p5528_p12, %p5522_p13 }
  0x81   : > { %5532 = shalt.err (!%p5529_p6)
}
  0x82   : > { %s5533_s20 = scalar_lea.vmem %s5914_s10, 64  ;;  %s5695_s21 = smov [#allocation3]  }
  0x83   : > { %p5534_p0 = scmp.ne.s32.totalorder %s5914_s10, %s5533_s20  ;;  %s5538_s14 = sshll.u32 %s5695_s21, 4  ;;  %s5539_s14 = int_to_ptr.vmem [resolvable:$false] %s5538_s14 }
  0x84   : > { %s5540_s4 = scalar_lea.vmem %s5539_s14, 128  ;;  %p5541_p11 = scmp.lt.s32.totalorder %s5914_s10, %s5539_s14 }
  0x85   : > { %p5536_p3 = pnand %p5534_p0, %p5520_p9  ;;  %p5542_p1 = scmp.lt.s32.totalorder %s5540_s4, %s5533_s20 }
  0x87   : > { %p5537_p7 = pneg %p5536_p3  ;;  %p5543_p2 = por %p5542_p1, %p5541_p11 }
  0x89   : > { %p5544_p4 = pnand %p5543_p2, %p5537_p7 }
  0x8b   : > { %5547 = shalt.err (!%p5544_p4)
}
  0x8c   : > { %5370 = dma.hbm_to_vmem [thread:$0]  (!%p5910_p10), %s5907_s23, 64, %s5914_s10, %s290_s17  }
  0x8d   : > { %s308_s3 = sand.u32 1, %s5688_s27   ;;  %s312_s5 = scalar_lea.vmem [#allocation6], %s5902_s16 }
  0x8e   : > { %s320_s8 = sshll.u32 %s312_s5, 4  ;;  %s309_s13 = scalar_lea.sflag [#allocation7], %s308_s3  ;;  %s321_s8 = int_to_ptr.vmem [resolvable:$true] %s320_s8 }
  0x8f   : > { %s5548_s15 = scalar_lea.hbm %s5919_s12, 64  ;;  %s5553_s21 = scalar_lea.hbm %s8596_s2, 256 }
  0x90   : > { %p5549_p13 = scmp.ne.s32.totalorder %s5919_s12, %s5548_s15  ;;  %p5554_p6 = scmp.lt.u32.totalorder %s5919_s12, %s8596_s2 }
  0x91   : > { %p5555_p0 = scmp.lt.u32.totalorder %s5553_s21, %s5548_s15  ;;  %p5557_p7 = scmp.lt.u32.totalorder %s5548_s15, %s5919_s12 }
  0x92   : > { %p5551_p8 = pnand %p5549_p13, %p5520_p9 }
  0x93   : > { %p5556_p3 = por %p5555_p0, %p5554_p6 }
  0x94   : > { %p5552_p12 = pneg %p5551_p8 }
  0x95   : > { %p5558_p11 = por %p5557_p7, %p5556_p3 }
  0x97   : > { %p5559_p1 = pnand %p5558_p11, %p5552_p12 }
  0x99   : > { %5562 = shalt.err (!%p5559_p1)
}
  0x9a   : > { %s5563_s16 = scalar_lea.vmem %s321_s8, 64  ;;  %s5696_s23 = smov [#allocation6]  }
  0x9b   : > { %p5564_p2 = scmp.ne.s32.totalorder %s321_s8, %s5563_s16  ;;  %s5568_s10 = sshll.u32 %s5696_s23, 4  ;;  %s5569_s10 = int_to_ptr.vmem [resolvable:$false] %s5568_s10 }
  0x9c   : > { %s5570_s17 = scalar_lea.vmem %s5569_s10, 128  ;;  %p5571_p8 = scmp.lt.s32.totalorder %s321_s8, %s5569_s10 }
  0x9d   : > { %p5566_p4 = pnand %p5564_p2, %p5520_p9  ;;  %p5572_p5 = scmp.lt.s32.totalorder %s5570_s17, %s5563_s16 }
  0x9f   : > { %p5567_p13 = pneg %p5566_p4  ;;  %p5573_p0 = por %p5572_p5, %p5571_p8 }
  0xa1   : > { %p5574_p6 = pnand %p5573_p0, %p5567_p13 }
  0xa3   : > { %5577 = shalt.err (!%p5574_p6)
}
  0xa4   : > { %5373 = dma.hbm_to_vmem [thread:$0]  (!%p5910_p10), %s5919_s12, 64, %s321_s8, %s309_s13  }
  0xa5   : > { %p9133_p12 = scmp.ne.s32.totalorder %s9124_s9, 0 }
  0xa7   : > { %329 = sbr.rel (%p9133_p12) target bundleno = 1281 (0x501), region = 44 }
  0xae   : > { %s5970_s3 = sand.u32 1, %s5680_s25   ;;  %p9134_p5 = scmp.ne.s32.totalorder %s9121_s30, 0 }
  0xaf   : > { %s4772_s5 = sshll.u32 %s5970_s3, 2  ;;  %s332_s15 = scalar_lea.sflag [#allocation4], %s5970_s3 }
  0xb0   : > { %s5974_s29 = scalar_lea.vmem [#allocation3], %s4772_s5 }
  0xb1   : > { %5651 = dma.done.wait (%p9134_p5), %s332_s15, 64  }
  0xb2   : > { %5653 = vsyncadd (%p9134_p5), %s332_s15, 4294967232  ;;  %s340_s11 = sand.u32 1, %s5764_s28   ;;  %s5981_s12 = scalar_lea.vmem [#allocation6], %s4772_s5 }
  0xb3   : > { %s341_s9 = scalar_lea.sflag [#allocation7], %s340_s11 }
  0xb4   : > { %5655 = dma.done.wait (%p9134_p5), %s341_s9, 64  }
  0xb5   : > { %5657 = vsyncadd (%p9134_p5), %s341_s9, 4294967232  ;;  %p9135_p10 = scmp.eq.s32.totalorder %s5764_s28, 0 }
  0xb7   : > { %5659 = dma.done.wait (%p9135_p10), [#allocation7], 24576   ;;  %p9136_p9 = pmov %p9135_p10 }
  0xb9   : > { %5661 = vsyncadd (%p9136_p9), [#allocation7], 4294942720  ;;  %p9137_p3 = pmov %p9136_p9 }
  0xbb   : > { %5663 = dma.done.wait (%p9137_p3), [#allocation10], 49152   ;;  %p9138_p7 = pmov %p9137_p3 }
  0xbc   : > { %p402_p11 = scmp.lt.s32.totalorder %s5764_s28, 3  ;;  %v5697_v0 = vmov 0   ;;  %v8607_v49 = vlaneseq  ;;  %v455_v54 = vld [vmem:[%s5974_s29] sm:$0xf]  ;;  %v457_v55 = vld [vmem:[#allocation8 + $0x8] sm:$0xff]  ;;  %v584_v59 = vld [vmem:[#allocation8 + $0x400] sm:$0xff] }
  0xbd   : > { %5665 = vsyncadd (%p9138_p7), [#allocation10], 4294918144  ;;  %5431 = vset.pattern.permute.xlu1 %v5697_v0  ;;  %5430 = vset.pattern.permute.xlu0 %v5697_v0  ;;  %v461_v57 = vld [vmem:[#allocation8 + $0x28] sm:$0xff]  ;;  %v456_v63 = vld [vmem:[#allocation8] sm:$0xff]  ;;  %s5333_s14 = smul.u32 24, %s5970_s3  ;;  %s4564_s11 = scalar_lea.sflag [#allocation14], %s5970_s3 }
  0xbe   : > { %s403_s30 = scalar_select %p402_p11, %s5764_s28, 3  ;;  %v6055_v52 = vshrl.u32 %v8607_v49, 7  ;;  %v585_v60 = vld [vmem:[#allocation8 + $0x408] sm:$0xff]  ;;  %v1228_v49 = vld [vmem:[#allocation11 + $0x4a0] sm:$0xff] }
  0xbf   : > { %v589_v61 = vld [vmem:[#allocation8 + $0x428] sm:$0xff]  ;;  %s7647_s4 = scalar_lea.vmem [#allocation13], %s5333_s14  ;;  %s5332_s16 = smul.u32 1152, %s5970_s3 }
  0xc0   : > { %s5334_s8 = smul.u32 384, %s403_s30  ;;  %9139 = vst [vmem:[#allocation22_spill] sm:$0xff] %v6055_v52  ;;  %v8609_v53 = vsub.s32 1, %v6055_v52  ;;  %v8608_v62 = vsub.s32 0, %v6055_v52  ;;  %v1081_v0 = vld [vmem:[#allocation11 + $0x8] sm:$0xff]  ;;  %vm2447_vm0 = vcmp.eq.s32.totalorder %v6055_v52, 0 }
  0xc1   : > { %s8155_s23 = scalar_lea.vmem [#allocation12], %s5332_s16  ;;  %s4594_s10 = sshll.u32 %s7647_s4, 4  ;;  %s8358_s10 = int_to_ptr.vmem [resolvable:$true] %s4594_s10 }
  0xc2   : > { %s6000_s21 = scalar_lea.vmem %s8594_s0, %s5334_s8  ;;  %s5336_s17 = smul.u32 384, %s5764_s28 }
  0xc3   : > { %v439_v1 = vld [vmem:[%s6000_s21 + $0x100] sm:$0xff]  ;;  %v440_v3 = vld [vmem:[%s6000_s21 + $0x108] sm:$0xff]  ;;  %v441_v5 = vld [vmem:[%s6000_s21 + $0x110] sm:$0xff]  ;;  %s5578_s9 = scalar_lea.vmem %s8358_s10, 384  ;;  %p9776_p2 = scmp.ne.s32.totalorder %s9131_s19, 0 }
  0xc4   : > { %v407_v2 = vld [vmem:[%s6000_s21] sm:$0xff]  ;;  %810 = vperm.xlu0 %5430, %v439_v1   ;;  %v408_v4 = vld [vmem:[%s6000_s21 + $0x8] sm:$0xff]  ;;  %v442_v6 = vld [vmem:[%s6000_s21 + $0x118] sm:$0xff]  ;;  %p5579_p1 = scmp.ne.s32.totalorder %s8358_s10, %s5578_s9 }
  0xc5   : > { %650 = vperm.xlu1 %5431, %v407_v2   ;;  %v409_v7 = vld [vmem:[%s6000_s21 + $0x10] sm:$0xff]  ;;  %v410_v8 = vld [vmem:[%s6000_s21 + $0x18] sm:$0xff]  ;;  %v443_v9 = vld [vmem:[%s6000_s21 + $0x120] sm:$0xff] }
  0xc6   : > { %v444_v10 = vld [vmem:[%s6000_s21 + $0x128] sm:$0xff]  ;;  %v411_v11 = vld [vmem:[%s6000_s21 + $0x20] sm:$0xff]  ;;  %v445_v13 = vld [vmem:[%s6000_s21 + $0x130] sm:$0xff]  ;;  %p5580_p4 = pnand %p5579_p1, %p9776_p2 }
  0xc7   : > { %v412_v12 = vld [vmem:[%s6000_s21 + $0x28] sm:$0xff]  ;;  %v446_v14 = vld [vmem:[%s6000_s21 + $0x138] sm:$0xff]  ;;  %v413_v15 = vld [vmem:[%s6000_s21 + $0x30] sm:$0xff] }
  0xc8   : > { %815 = vperm.xlu0 %5430, %v440_v3   ;;  %v414_v16 = vld [vmem:[%s6000_s21 + $0x38] sm:$0xff]  ;;  %v447_v17 = vld [vmem:[%s6000_s21 + $0x140] sm:$0xff]  ;;  %v448_v18 = vld [vmem:[%s6000_s21 + $0x148] sm:$0xff]  ;;  %p5581_p13 = pneg %p5580_p4 }
  0xc9   : > { %655 = vperm.xlu1 %5431, %v408_v4   ;;  %v415_v19 = vld [vmem:[%s6000_s21 + $0x40] sm:$0xff]  ;;  %v416_v20 = vld [vmem:[%s6000_s21 + $0x48] sm:$0xff]  ;;  %v449_v21 = vld [vmem:[%s6000_s21 + $0x150] sm:$0xff] }
  0xca   : > { %v450_v22 = vld [vmem:[%s6000_s21 + $0x158] sm:$0xff]  ;;  %v417_v23 = vld [vmem:[%s6000_s21 + $0x50] sm:$0xff]  ;;  %v451_v25 = vld [vmem:[%s6000_s21 + $0x160] sm:$0xff] }
  0xcb   : > { %v418_v24 = vld [vmem:[%s6000_s21 + $0x58] sm:$0xff]  ;;  %v452_v26 = vld [vmem:[%s6000_s21 + $0x168] sm:$0xff]  ;;  %v419_v27 = vld [vmem:[%s6000_s21 + $0x60] sm:$0xff] }
  0xcc   : > { %820 = vperm.xlu0 %5430, %v441_v5   ;;  %v420_v28 = vld [vmem:[%s6000_s21 + $0x68] sm:$0xff]  ;;  %v453_v29 = vld [vmem:[%s6000_s21 + $0x170] sm:$0xff]  ;;  %v454_v30 = vld [vmem:[%s6000_s21 + $0x178] sm:$0xff] }
  0xcd   : > { %825 = vperm.xlu1 %5431, %v442_v6   ;;  %v421_v31 = vld [vmem:[%s6000_s21 + $0x70] sm:$0xff]  ;;  %v422_v32 = vld [vmem:[%s6000_s21 + $0x78] sm:$0xff]  ;;  %v423_v33 = vld [vmem:[%s6000_s21 + $0x80] sm:$0xff] }
  0xce   : > { %v424_v34 = vld [vmem:[%s6000_s21 + $0x88] sm:$0xff]  ;;  %v425_v35 = vld [vmem:[%s6000_s21 + $0x90] sm:$0xff]  ;;  %v426_v36 = vld [vmem:[%s6000_s21 + $0x98] sm:$0xff] }
  0xcf   : > { %v427_v37 = vld [vmem:[%s6000_s21 + $0xa0] sm:$0xff]  ;;  %v428_v38 = vld [vmem:[%s6000_s21 + $0xa8] sm:$0xff]  ;;  %v429_v39 = vld [vmem:[%s6000_s21 + $0xb0] sm:$0xff] }
  0xd0   : > { %660 = vperm.xlu0 %5430, %v409_v7   ;;  %v430_v40 = vld [vmem:[%s6000_s21 + $0xb8] sm:$0xff]  ;;  %v431_v41 = vld [vmem:[%s6000_s21 + $0xc0] sm:$0xff]  ;;  %v432_v42 = vld [vmem:[%s6000_s21 + $0xc8] sm:$0xff] }
  0xd1   : > { %665 = vperm.xlu1 %5431, %v410_v8   ;;  %v433_v43 = vld [vmem:[%s6000_s21 + $0xd0] sm:$0xff]  ;;  %v434_v44 = vld [vmem:[%s6000_s21 + $0xd8] sm:$0xff]  ;;  %v435_v45 = vld [vmem:[%s6000_s21 + $0xe0] sm:$0xff]  ;;  %v6068_v8 = vrot.slane %v455_v54, %v8609_v53 }
  0xd2   : > { %v436_v46 = vld [vmem:[%s6000_s21 + $0xe8] sm:$0xff]  ;;  %v437_v47 = vld [vmem:[%s6000_s21 + $0xf0] sm:$0xff]  ;;  %v438_v48 = vld [vmem:[%s6000_s21 + $0xf8] sm:$0xff] }
  0xd3   : > { %v460_v1 = vld [vmem:[#allocation8 + $0x20] sm:$0xff]  ;;  %v1209_v2 = vld [vmem:[#allocation11 + $0x408] sm:$0xff] }
  0xd4   : > { %830 = vperm.xlu0 %5430, %v443_v9   ;;  %v588_v4 = vld [vmem:[#allocation8 + $0x420] sm:$0xff]  ;;  %v1465_v6 = vld [vmem:[#allocation9 + $0x8] sm:$0xff] }
  0xd5   : > { %835 = vperm.xlu1 %5431, %v444_v10   ;;  %v1469_v7 = vld [vmem:[#allocation9 + $0x28] sm:$0xff]  ;;  %v1080_v10 = vld [vmem:[#allocation11] sm:$0xff] }
  0xd8   : > { %670 = vperm.xlu0 %5430, %v411_v11  }
  0xd9   : > { %675 = vperm.xlu1 %5431, %v412_v12   ;;  %v1085_v12 = vld [vmem:[#allocation11 + $0x28] sm:$0xff] }
  0xdc   : > { %840 = vperm.xlu0 %5430, %v445_v13   ;;  %v1593_v13 = vld [vmem:[#allocation9 + $0x408] sm:$0xff] }
  0xdd   : > { %845 = vperm.xlu1 %5431, %v446_v14   ;;  %v1597_v14 = vld [vmem:[#allocation9 + $0x428] sm:$0xff] }
  0xe0   : > { %680 = vperm.xlu0 %5430, %v413_v15   ;;  %v1208_v15 = vld [vmem:[#allocation11 + $0x400] sm:$0xff] }
  0xe1   : > { %685 = vperm.xlu1 %5431, %v414_v16  }
  0xe4   : > { %850 = vperm.xlu0 %5430, %v447_v17   ;;  %v1213_v17 = vld [vmem:[#allocation11 + $0x428] sm:$0xff] }
  0xe5   : > { %855 = vperm.xlu1 %5431, %v448_v18  }
  0xe8   : > { %690 = vperm.xlu0 %5430, %v415_v19   ;;  %v1464_v19 = vld [vmem:[#allocation9] sm:$0xff] }
  0xe9   : > { %695 = vperm.xlu1 %5431, %v416_v20   ;;  %v1468_v20 = vld [vmem:[#allocation9 + $0x20] sm:$0xff] }
  0xec   : > { %860 = vperm.xlu0 %5430, %v449_v21   ;;  %v6076_v21 = vrot.slane %v455_v54, %v8608_v62  ;;  %v1100_v62 = vld [vmem:[#allocation11 + $0xa0] sm:$0xff] }
  0xed   : > { %865 = vperm.xlu1 %5431, %v450_v22  }
  0xf0   : > { %700 = vperm.xlu0 %5430, %v417_v23  }
  0xf1   : > { %705 = vperm.xlu1 %5431, %v418_v24   ;;  %v1084_v24 = vld [vmem:[#allocation11 + $0x20] sm:$0xff] }
  0xf4   : > { %870 = vperm.xlu0 %5430, %v451_v25   ;;  %v593_v25 = vld [vmem:[#allocation8 + $0x448] sm:$0xff] }
  0xf5   : > { %875 = vperm.xlu1 %5431, %v452_v26  }
  0xf8   : > { %710 = vperm.xlu0 %5430, %v419_v27   ;;  %v1678_v27 = vmul.f32 %v6068_v8, %v1465_v6 }
  0xf9   : > { %715 = vperm.xlu1 %5431, %v420_v28   ;;  %v1682_v28 = vmul.f32 %v6068_v8, %v1469_v7  ;;  %v464_v7 = vld [vmem:[#allocation8 + $0x40] sm:$0xff] }
  0xfc   : > { %880 = vperm.xlu0 %5430, %v453_v29   ;;  %v1592_v29 = vld [vmem:[#allocation9 + $0x400] sm:$0xff] }
  0xfd   : > { %885 = vperm.xlu1 %5431, %v454_v30  }
 0x100   : > { %720 = vperm.xlu0 %5430, %v421_v31   ;;  %v1212_v31 = vld [vmem:[#allocation11 + $0x420] sm:$0xff] }
 0x101   : > { %725 = vperm.xlu1 %5431, %v422_v32  }
 0x104   : > { %730 = vperm.xlu0 %5430, %v423_v33   ;;  %v597_v33 = vld [vmem:[#allocation8 + $0x468] sm:$0xff] }
 0x105   : > { %735 = vperm.xlu1 %5431, %v424_v34  }
 0x108   : > { %740 = vperm.xlu0 %5430, %v425_v35   ;;  %v1806_v35 = vmul.f32 %v6068_v8, %v1593_v13 }
 0x109   : > { %745 = vperm.xlu1 %5431, %v426_v36   ;;  %v1810_v36 = vmul.f32 %v6068_v8, %v1597_v14  ;;  %v592_v14 = vld [vmem:[#allocation8 + $0x440] sm:$0xff] }
 0x10c   : > { %750 = vperm.xlu0 %5430, %v427_v37   ;;  %v1596_v37 = vld [vmem:[#allocation9 + $0x420] sm:$0xff] }
 0x10d   : > { %755 = vperm.xlu1 %5431, %v428_v38  }
 0x110   : > { %760 = vperm.xlu0 %5430, %v429_v39  }
 0x111   : > { %765 = vperm.xlu1 %5431, %v430_v40   ;;  %v1677_v40 = vmul.f32 %v6076_v21, %v1464_v19 }
 0x114   : > { %770 = vperm.xlu0 %5430, %v431_v41   ;;  %v1681_v41 = vmul.f32 %v6076_v21, %v1468_v20 }
 0x115   : > { %775 = vperm.xlu1 %5431, %v432_v42  }
 0x118   : > { %780 = vperm.xlu0 %5430, %v433_v43  }
 0x119   : > { %785 = vperm.xlu1 %5431, %v434_v44  }
 0x11c   : > { %790 = vperm.xlu0 %5430, %v435_v45   ;;  %v1805_v45 = vmul.f32 %v6076_v21, %v1592_v29 }
 0x11d   : > { %795 = vperm.xlu1 %5431, %v436_v46   ;;  %v1601_v46 = vld [vmem:[#allocation9 + $0x448] sm:$0xff] }
 0x120   : > { %800 = vperm.xlu0 %5430, %v437_v47   ;;  %v1605_v47 = vld [vmem:[#allocation9 + $0x468] sm:$0xff] }
 0x121   : > { %805 = vperm.xlu1 %5431, %v438_v48  }
 0x143   : > { %v6050_v50 = vpop.permute.xlu0 %810 }
 0x144   : > { %v6052_v51 = vpop.permute.xlu1 %650  ;;  %v1017_v9 = vmul.f32 %v6050_v50, %v585_v60  ;;  %v1016_v22 = vmul.f32 %v6050_v50, %v584_v59  ;;  %v1809_v59 = vmul.f32 %v6076_v21, %v1596_v37  ;;  %v1221_v60 = vld [vmem:[#allocation11 + $0x468] sm:$0xff]  ;;  %v1088_v37 = vld [vmem:[#allocation11 + $0x40] sm:$0xff] }
 0x145   : > { %v889_v3 = vmul.f32 %v6052_v51, %v457_v55  ;;  %v888_v16 = vmul.f32 %v6052_v51, %v456_v63  ;;  %v1217_v55 = vld [vmem:[#allocation11 + $0x448] sm:$0xff] }
 0x146   : > { %v1401_v38 = vadd.f32 %v1209_v2, %v1017_v9  ;;  %v1400_v48 = vadd.f32 %v1208_v15, %v1016_v22  ;;  %v469_v9 = vld [vmem:[#allocation8 + $0x68] sm:$0xff]  ;;  %v596_v15 = vld [vmem:[#allocation8 + $0x460] sm:$0xff] }
 0x147   : > { %v6059_v56 = vpop.permute.xlu0 %815  ;;  %v1273_v30 = vadd.f32 %v1081_v0, %v889_v3  ;;  %v1272_v42 = vadd.f32 %v1080_v10, %v888_v16  ;;  %v465_v0 = vld [vmem:[#allocation8 + $0x48] sm:$0xff] }
 0x148   : > { %v6061_v58 = vpop.permute.xlu1 %655  ;;  %v1021_v11 = vmul.f32 %v6059_v56, %v589_v61  ;;  %v1020_v23 = vmul.f32 %v6059_v56, %v588_v4  ;;  %v6100_v2 = vsub.f32 %v1401_v38, %v1806_v35  ;;  %v1814_v4 = vmul.f32 %v6068_v8, %v1601_v46  ;;  %v1089_v22 = vld [vmem:[#allocation11 + $0x48] sm:$0xff] }
 0x149   : > { %v893_v5 = vmul.f32 %v6061_v58, %v461_v57  ;;  %v892_v18 = vmul.f32 %v6061_v58, %v460_v1  ;;  %v6094_v61 = vsub.f32 %v1273_v30, %v1678_v27  ;;  %v6120_v19 = vsub.f32 %v1400_v48, %v1805_v45  ;;  %v1216_v27 = vld [vmem:[#allocation11 + $0x440] sm:$0xff]  ;;  %v1093_v38 = vld [vmem:[#allocation11 + $0x68] sm:$0xff] }
 0x14a   : > { %v1405_v39 = vadd.f32 %v1213_v17, %v1021_v11  ;;  %v1404_v54 = vadd.f32 %v1212_v31, %v1020_v23  ;;  %9142 = vst [vmem:[#allocation25_spill] sm:$0xff] %v6100_v2  ;;  %v468_v17 = vld [vmem:[#allocation8 + $0x60] sm:$0xff]  ;;  %v1477_v31 = vld [vmem:[#allocation9 + $0x68] sm:$0xff] }
 0x14b   : > { %v6080_v26 = vpop.permute.xlu0 %820  ;;  %v1277_v32 = vadd.f32 %v1085_v12, %v893_v5  ;;  %v1276_v43 = vadd.f32 %v1084_v24, %v892_v18  ;;  %9140 = vst [vmem:[#allocation23_spill] sm:$0xff] %v6094_v61  ;;  %v1818_v5 = vmul.f32 %v6068_v8, %v1605_v47  ;;  %v6112_v12 = vsub.f32 %v1272_v42, %v1677_v40  ;;  %v1600_v40 = vld [vmem:[#allocation9 + $0x440] sm:$0xff] }
 0x14c   : > { %v6084_v34 = vpop.permute.xlu1 %825  ;;  %v1025_v44 = vmul.f32 %v6080_v26, %v593_v25  ;;  %v6102_v3 = vsub.f32 %v1405_v39, %v1810_v36  ;;  %9149 = vst [vmem:[#allocation32_spill] sm:$0xff] %v6120_v19  ;;  %v6122_v20 = vsub.f32 %v1404_v54, %v1809_v59  ;;  %v1473_v25 = vld [vmem:[#allocation9 + $0x48] sm:$0xff]  ;;  %v1024_v35 = vmul.f32 %v6080_v26, %v592_v14  ;;  %v1092_v42 = vld [vmem:[#allocation11 + $0x60] sm:$0xff] }
 0x14d   : > { %v1029_v57 = vmul.f32 %v6084_v34, %v597_v33  ;;  %v6096_v63 = vsub.f32 %v1277_v32, %v1682_v28  ;;  %9146 = vst [vmem:[#allocation29_spill] sm:$0xff] %v6112_v12  ;;  %v6114_v13 = vsub.f32 %v1276_v43, %v1681_v41  ;;  %v1472_v32 = vld [vmem:[#allocation9 + $0x40] sm:$0xff]  ;;  %v1028_v36 = vmul.f32 %v6084_v34, %v596_v15  ;;  %v601_v54 = vld [vmem:[#allocation8 + $0x488] sm:$0xff] }
 0x14e   : > { %9143 = vst [vmem:[#allocation26_spill] sm:$0xff] %v6102_v3  ;;  %v1409_v6 = vadd.f32 %v1217_v55, %v1025_v44  ;;  %v6118_v18 = vpack.c.bf16 %v6102_v3, %v6100_v2  ;;  %9150 = vst [vmem:[#allocation33_spill] sm:$0xff] %v6122_v20  ;;  %v6135_v30 = vpack.c.bf16 %v6122_v20, %v6120_v19  ;;  %v1476_v33 = vld [vmem:[#allocation9 + $0x60] sm:$0xff] }
 0x14f   : > { %9141 = vst [vmem:[#allocation24_spill] sm:$0xff] %v6096_v63  ;;  %v6098_v1 = vpop.permute.xlu0 %660  ;;  %v6110_v11 = vpack.c.bf16 %v6096_v63, %v6094_v61  ;;  %9147 = vst [vmem:[#allocation30_spill] sm:$0xff] %v6114_v13  ;;  %v1413_v16 = vadd.f32 %v1221_v60, %v1029_v57  ;;  %v6128_v24 = vpack.c.bf16 %v6114_v13, %v6112_v12  ;;  %v1220_v41 = vld [vmem:[#allocation11 + $0x460] sm:$0xff]  ;;  %v1230_v61 = vld [vmem:[#allocation11 + $0x4b0] sm:$0xff] }
 0x150   : > { %v6106_v10 = vpop.permute.xlu1 %665  ;;  %9148 = vst [vmem:[#allocation31_spill] sm:$0xff] %v6118_v18  ;;  %v897_v23 = vmul.f32 %v6098_v1, %v465_v0  ;;  %v896_v28 = vmul.f32 %v6098_v1, %v464_v7  ;;  %4921 = vmatprep.subr.bf16.mxu1 %v6118_v18  ;;  %9152 = vst [vmem:[#allocation35_spill] sm:$0xff] %v6135_v30  ;;  %v6144_v44 = vsub.f32 %v1409_v6, %v1814_v4  ;;  %v1604_v47 = vld [vmem:[#allocation9 + $0x460] sm:$0xff] }
 0x151   : > { %9144 = vst [vmem:[#allocation27_spill] sm:$0xff] %v6106_v10  ;;  %9145 = vst [vmem:[#allocation28_spill] sm:$0xff] %v6110_v11  ;;  %4793 = vmatprep.subr.bf16.mxu0 %v6110_v11  ;;  %v901_v29 = vmul.f32 %v6106_v10, %v469_v9  ;;  %v900_v39 = vmul.f32 %v6106_v10, %v468_v17  ;;  %4923 = vmatpush1.bf16.xpose.msra.mxu1 %v6135_v30  ;;  %v605_v9 = vld [vmem:[#allocation8 + $0x4a8] sm:$0xff]  ;;  %v1612_v19 = vld [vmem:[#allocation9 + $0x4a0] sm:$0xff] }
 0x152   : > { %9151 = vst [vmem:[#allocation34_spill] sm:$0xff] %v6128_v24  ;;  %4795 = vmatpush1.bf16.xpose.msra.mxu0 %v6128_v24  ;;  %9153 = vst [vmem:[#allocation36_spill] sm:$0xff] %v6144_v44  ;;  %v6146_v45 = vsub.f32 %v1413_v16, %v1818_v5  ;;  %v1686_v46 = vmul.f32 %v6068_v8, %v1473_v25  ;;  %v1281_v48 = vadd.f32 %v1089_v22, %v897_v23  ;;  %v1225_v22 = vld [vmem:[#allocation11 + $0x488] sm:$0xff]  ;;  %v1112_v13 = vld [vmem:[#allocation11 + $0x100] sm:$0xff] }
 0x153   : > { %v6142_v43 = vpop.permute.xlu0 %830  ;;  %v1690_v57 = vmul.f32 %v6068_v8, %v1477_v31  ;;  %v1685_v59 = vmul.f32 %v6076_v21, %v1472_v32  ;;  %v1689_v60 = vmul.f32 %v6076_v21, %v1476_v33  ;;  %v1280_v0 = vadd.f32 %v1088_v37, %v896_v28  ;;  %v1609_v28 = vld [vmem:[#allocation9 + $0x488] sm:$0xff]  ;;  %v544_v11 = vld [vmem:[#allocation8 + $0x2c0] sm:$0xff] }
 0x154   : > { %9154 = vst [vmem:[#allocation37_spill] sm:$0xff] %v6146_v45  ;;  %v6149_v55 = vpop.permute.xlu1 %835  ;;  %v1285_v7 = vadd.f32 %v1093_v38, %v901_v29  ;;  %v6156_v4 = vpack.c.bf16 %v6146_v45, %v6144_v44  ;;  %v1813_v5 = vmul.f32 %v6076_v21, %v1600_v40  ;;  %v1408_v6 = vadd.f32 %v1216_v27, %v1024_v35  ;;  %v1613_v29 = vld [vmem:[#allocation9 + $0x4a8] sm:$0xff] }
 0x155   : > { %v1412_v14 = vadd.f32 %v1220_v41, %v1028_v36  ;;  %v1284_v15 = vadd.f32 %v1092_v42, %v900_v39  ;;  %v1817_v16 = vmul.f32 %v6076_v21, %v1604_v47  ;;  %v1033_v17 = vmul.f32 %v6142_v43, %v601_v54  ;;  %v1229_v31 = vld [vmem:[#allocation11 + $0x4a8] sm:$0xff]  ;;  %v472_v36 = vld [vmem:[#allocation8 + $0x80] sm:$0xff] }
 0x156   : > { %9155 = vst [vmem:[#allocation38_spill] sm:$0xff] %v6156_v4  ;;  %4925 = vmatprep.subr.bf16.mxu1 %v6156_v4  ;;  %v1037_v23 = vmul.f32 %v6149_v55, %v605_v9  ;;  %v6163_v25 = vsub.f32 %v1281_v48, %v1686_v46  ;;  %v473_v32 = vld [vmem:[#allocation8 + $0x88] sm:$0xff]  ;;  %v6167_v27 = vsub.f32 %v1285_v7, %v1690_v57  ;;  %v600_v42 = vld [vmem:[#allocation8 + $0x480] sm:$0xff] }
 0x157   : > { %v6165_v33 = vpop.permute.xlu0 %670  ;;  %v6169_v35 = vsub.f32 %v1280_v0, %v1685_v59  ;;  %v477_v37 = vld [vmem:[#allocation8 + $0xa8] sm:$0xff]  ;;  %v6173_v39 = vsub.f32 %v1284_v15, %v1689_v60  ;;  %v6175_v40 = vsub.f32 %v1408_v6, %v1813_v5  ;;  %v6177_v41 = vsub.f32 %v1412_v14, %v1817_v16  ;;  %v476_v47 = vld [vmem:[#allocation8 + $0xa0] sm:$0xff] }
 0x158   : > { %9156 = vst [vmem:[#allocation39_spill] sm:$0xff] %v6163_v25  ;;  %9157 = vst [vmem:[#allocation40_spill] sm:$0xff] %v6165_v33  ;;  %v6171_v38 = vpop.permute.xlu1 %675  ;;  %v1417_v46 = vadd.f32 %v1225_v22, %v1033_v17  ;;  %v6181_v48 = vpack.c.bf16 %v6167_v27, %v6163_v25  ;;  %v1822_v54 = vmul.f32 %v6068_v8, %v1609_v28  ;;  %v604_v59 = vld [vmem:[#allocation8 + $0x4a0] sm:$0xff]  ;;  %v1097_v14 = vld [vmem:[#allocation11 + $0x88] sm:$0xff] }
 0x159   : > { %9158 = vst [vmem:[#allocation41_spill] sm:$0xff] %v6167_v27  ;;  %9159 = vst [vmem:[#allocation42_spill] sm:$0xff] %v6169_v35  ;;  %v1826_v57 = vmul.f32 %v6068_v8, %v1613_v29  ;;  %v1421_v0 = vadd.f32 %v1229_v31, %v1037_v23  ;;  %v1096_v7 = vld [vmem:[#allocation11 + $0x80] sm:$0xff]  ;;  %v905_v60 = vmul.f32 %v6165_v33, %v473_v32  ;;  %v1481_v17 = vld [vmem:[#allocation9 + $0x88] sm:$0xff] }
 0x15a   : > { %9160 = vst [vmem:[#allocation43_spill] sm:$0xff] %v6171_v38  ;;  %9161 = vst [vmem:[#allocation44_spill] sm:$0xff] %v6173_v39  ;;  %v6188_v9 = vpack.c.bf16 %v6173_v39, %v6169_v35  ;;  %v6192_v5 = vpack.c.bf16 %v6177_v41, %v6175_v40  ;;  %v1224_v6 = vld [vmem:[#allocation11 + $0x480] sm:$0xff]  ;;  %v904_v15 = vmul.f32 %v6165_v33, %v472_v36  ;;  %4797 = vmatprep.subr.bf16.mxu0 %v6181_v48  ;;  %v1485_v22 = vld [vmem:[#allocation9 + $0xa8] sm:$0xff] }
 0x15b   : > { %9162 = vst [vmem:[#allocation45_spill] sm:$0xff] %v6175_v40  ;;  %9163 = vst [vmem:[#allocation46_spill] sm:$0xff] %v6177_v41  ;;  %v909_v16 = vmul.f32 %v6171_v38, %v477_v37  ;;  %v1032_v23 = vmul.f32 %v6142_v43, %v600_v42  ;;  %v1101_v28 = vld [vmem:[#allocation11 + $0xa8] sm:$0xff]  ;;  %v908_v29 = vmul.f32 %v6171_v38, %v476_v47  ;;  %v1480_v31 = vld [vmem:[#allocation9 + $0x80] sm:$0xff]  ;;  %v6202_v37 = vpop.permute.xlu0 %840 }
 0x15c   : > { %9164 = vst [vmem:[#allocation47_spill] sm:$0xff] %v6181_v48  ;;  %9165 = vst [vmem:[#allocation48_spill] sm:$0xff] %v6188_v9  ;;  %4799 = vmatpush1.bf16.xpose.msra.mxu0 %v6188_v9  ;;  %4927 = vmatpush1.bf16.xpose.msra.mxu1 %v6192_v5  ;;  %v1484_v32 = vld [vmem:[#allocation9 + $0xa0] sm:$0xff]  ;;  %v1036_v36 = vmul.f32 %v6149_v55, %v604_v59  ;;  %v6204_v53 = vsub.f32 %v1417_v46, %v1822_v54  ;;  %v609_v42 = vld [vmem:[#allocation8 + $0x4c8] sm:$0xff]  ;;  %v6206_v44 = vpop.permute.xlu1 %845 }
 0x15d   : > { %9166 = vst [vmem:[#allocation49_spill] sm:$0xff] %v6192_v5  ;;  %v1608_v41 = vld [vmem:[#allocation9 + $0x480] sm:$0xff]  ;;  %v1289_v45 = vadd.f32 %v1097_v14, %v905_v60  ;;  %v613_v40 = vld [vmem:[#allocation8 + $0x4e8] sm:$0xff]  ;;  %v6208_v47 = vsub.f32 %v1421_v0, %v1826_v57  ;;  %v1694_v20 = vmul.f32 %v6068_v8, %v1481_v17  ;;  %v1698_v3 = vmul.f32 %v6068_v8, %v1485_v22  ;;  %v631_v33 = vld [vmem:[#allocation8 + $0x578] sm:$0xff] }
 0x15e   : > { %9167 = vst [vmem:[#allocation50_spill] sm:$0xff] %v6204_v53  ;;  %v1288_v2 = vadd.f32 %v1096_v7, %v904_v15  ;;  %v1293_v59 = vadd.f32 %v1101_v28, %v909_v16  ;;  %v1693_v5 = vmul.f32 %v6076_v21, %v1480_v31  ;;  %v1697_v46 = vmul.f32 %v6076_v21, %v1484_v32  ;;  %v1617_v15 = vld [vmem:[#allocation9 + $0x4c8] sm:$0xff]  ;;  %v1620_v35 = vld [vmem:[#allocation9 + $0x4e0] sm:$0xff] }
 0x15f   : > { %9168 = vst [vmem:[#allocation51_spill] sm:$0xff] %v6208_v47  ;;  %v1416_v54 = vadd.f32 %v1224_v6, %v1032_v23  ;;  %v1292_v39 = vadd.f32 %v1100_v62, %v908_v29  ;;  %v6216_v60 = vpack.c.bf16 %v6208_v47, %v6204_v53  ;;  %v1821_v57 = vmul.f32 %v6076_v21, %v1608_v41  ;;  %v1621_v16 = vld [vmem:[#allocation9 + $0x4e8] sm:$0xff]  ;;  %v6225_v23 = vpop.permute.xlu0 %680  ;;  %v480_v47 = vld [vmem:[#allocation8 + $0xc0] sm:$0xff] }
 0x160   : > { %v1420_v0 = vadd.f32 %v1228_v49, %v1036_v36  ;;  %v1041_v14 = vmul.f32 %v6202_v37, %v609_v42  ;;  %v1045_v17 = vmul.f32 %v6206_v44, %v613_v40  ;;  %v1825_v7 = vmul.f32 %v6076_v21, %v1612_v19  ;;  %v1233_v22 = vld [vmem:[#allocation11 + $0x4c8] sm:$0xff]  ;;  %9171 = vst [vmem:[#allocation54_spill] sm:$0xff] %v6225_v23  ;;  %v6231_v31 = vpop.permute.xlu1 %685  ;;  %v484_v53 = vld [vmem:[#allocation8 + $0xe0] sm:$0xff] }
 0x161   : > { %9169 = vst [vmem:[#allocation52_spill] sm:$0xff] %v6216_v60  ;;  %v1237_v28 = vld [vmem:[#allocation11 + $0x4e8] sm:$0xff]  ;;  %4929 = vmatprep.subr.bf16.mxu1 %v6216_v60  ;;  %v6223_v62 = vsub.f32 %v1289_v45, %v1694_v20  ;;  %v6227_v29 = vsub.f32 %v1293_v59, %v1698_v3  ;;  %v6229_v49 = vsub.f32 %v1288_v2, %v1693_v5  ;;  %9174 = vst [vmem:[#allocation57_spill] sm:$0xff] %v6231_v31  ;;  %v608_v20 = vld [vmem:[#allocation8 + $0x4c0] sm:$0xff] }
 0x162   : > { %v481_v6 = vld [vmem:[#allocation8 + $0xc8] sm:$0xff]  ;;  %v6233_v40 = vsub.f32 %v1292_v39, %v1697_v46  ;;  %v6235_v19 = vsub.f32 %v1416_v54, %v1821_v57  ;;  %v1830_v32 = vmul.f32 %v6068_v8, %v1617_v15  ;;  %v1834_v36 = vmul.f32 %v6068_v8, %v1621_v16  ;;  %v612_v5 = vld [vmem:[#allocation8 + $0x4e0] sm:$0xff] }
 0x163   : > { %9170 = vst [vmem:[#allocation53_spill] sm:$0xff] %v6223_v62  ;;  %9172 = vst [vmem:[#allocation55_spill] sm:$0xff] %v6227_v29  ;;  %v485_v41 = vld [vmem:[#allocation8 + $0xe8] sm:$0xff]  ;;  %v1425_v45 = vadd.f32 %v1233_v22, %v1041_v14  ;;  %v1429_v42 = vadd.f32 %v1237_v28, %v1045_v17  ;;  %v6241_v2 = vpack.c.bf16 %v6227_v29, %v6223_v62  ;;  %v1232_v46 = vld [vmem:[#allocation11 + $0x4c0] sm:$0xff] }
 0x164   : > { %9173 = vst [vmem:[#allocation56_spill] sm:$0xff] %v6229_v49  ;;  %9175 = vst [vmem:[#allocation58_spill] sm:$0xff] %v6233_v40  ;;  %v6243_v3 = vsub.f32 %v1420_v0, %v1825_v7  ;;  %v913_v39 = vmul.f32 %v6225_v23, %v481_v6  ;;  %v6248_v59 = vpack.c.bf16 %v6233_v40, %v6229_v49  ;;  %v1105_v54 = vld [vmem:[#allocation11 + $0xc8] sm:$0xff]  ;;  %v1488_v28 = vld [vmem:[#allocation9 + $0xc0] sm:$0xff]  ;;  %v6268_v62 = vpop.permute.xlu1 %855 }
 0x165   : > { %9176 = vst [vmem:[#allocation59_spill] sm:$0xff] %v6235_v19  ;;  %9177 = vst [vmem:[#allocation60_spill] sm:$0xff] %v6241_v2  ;;  %v917_v57 = vmul.f32 %v6231_v31, %v485_v41  ;;  %4801 = vmatprep.subr.bf16.mxu0 %v6241_v2  ;;  %v1489_v17 = vld [vmem:[#allocation9 + $0xc8] sm:$0xff]  ;;  %v1040_v7 = vmul.f32 %v6202_v37, %v608_v20  ;;  %v912_v15 = vmul.f32 %v6225_v23, %v480_v47  ;;  %v1492_v6 = vld [vmem:[#allocation9 + $0xe0] sm:$0xff] }
 0x166   : > { %9178 = vst [vmem:[#allocation61_spill] sm:$0xff] %v6243_v3  ;;  %9179 = vst [vmem:[#allocation62_spill] sm:$0xff] %v6248_v59  ;;  %v6254_v14 = vpack.c.bf16 %v6243_v3, %v6235_v19  ;;  %v1493_v0 = vld [vmem:[#allocation9 + $0xe8] sm:$0xff]  ;;  %v916_v22 = vmul.f32 %v6231_v31, %v484_v53  ;;  %4803 = vmatpush1.bf16.xpose.msra.mxu0 %v6248_v59  ;;  %v1044_v41 = vmul.f32 %v6206_v44, %v612_v5  ;;  %v1104_v40 = vld [vmem:[#allocation11 + $0xc0] sm:$0xff]  ;;  %v6262_v3 = vpop.permute.xlu0 %850 }
 0x167   : > { %v1109_v16 = vld [vmem:[#allocation11 + $0xe8] sm:$0xff]  ;;  %v1108_v29 = vld [vmem:[#allocation11 + $0xe0] sm:$0xff]  ;;  %v6264_v19 = vsub.f32 %v1425_v45, %v1830_v32  ;;  %v6266_v20 = vsub.f32 %v1429_v42, %v1834_v36  ;;  %v1297_v60 = vadd.f32 %v1105_v54, %v913_v39  ;;  %v1702_v27 = vmul.f32 %v6068_v8, %v1489_v17 }
 0x168   : > { %9180 = vst [vmem:[#allocation63_spill] sm:$0xff] %v6254_v14  ;;  %4931 = vmatpush1.bf16.xpose.msra.mxu1 %v6254_v14  ;;  %v1616_v47 = vld [vmem:[#allocation9 + $0x4c0] sm:$0xff]  ;;  %v617_v53 = vld [vmem:[#allocation8 + $0x508] sm:$0xff]  ;;  %v1706_v5 = vmul.f32 %v6068_v8, %v1493_v0  ;;  %v1301_v25 = vadd.f32 %v1109_v16, %v917_v57  ;;  %v1701_v32 = vmul.f32 %v6076_v21, %v1488_v28 }
 0x169   : > { %9181 = vst [vmem:[#allocation64_spill] sm:$0xff] %v6264_v19  ;;  %9182 = vst [vmem:[#allocation65_spill] sm:$0xff] %v6266_v20  ;;  %v1236_v49 = vld [vmem:[#allocation11 + $0x4e0] sm:$0xff]  ;;  %v621_v4 = vld [vmem:[#allocation8 + $0x528] sm:$0xff]  ;;  %v6274_v14 = vpack.c.bf16 %v6266_v20, %v6264_v19  ;;  %v1705_v36 = vmul.f32 %v6076_v21, %v1492_v6  ;;  %v1424_v45 = vadd.f32 %v1232_v46, %v1040_v7 }
 0x16a   : > { %v1296_v42 = vadd.f32 %v1104_v40, %v912_v15  ;;  %v1300_v39 = vadd.f32 %v1108_v29, %v916_v22  ;;  %v1829_v54 = vmul.f32 %v6076_v21, %v1616_v47  ;;  %v1428_v30 = vadd.f32 %v1236_v49, %v1044_v41  ;;  %v1241_v0 = vld [vmem:[#allocation11 + $0x508] sm:$0xff]  ;;  %v6285_v46 = vpop.permute.xlu0 %690  ;;  %v488_v49 = vld [vmem:[#allocation8 + $0x100] sm:$0xff]  ;;  %v6289_v15 = vpop.permute.xlu1 %695 }
 0x16b   : > { %9183 = vst [vmem:[#allocation66_spill] sm:$0xff] %v6274_v14  ;;  %v1049_v17 = vmul.f32 %v6262_v3, %v617_v53  ;;  %4933 = vmatprep.subr.bf16.mxu1 %v6274_v14  ;;  %v1833_v57 = vmul.f32 %v6076_v21, %v1620_v35  ;;  %v1053_v16 = vmul.f32 %v6268_v62, %v621_v4  ;;  %v1625_v28 = vld [vmem:[#allocation9 + $0x508] sm:$0xff]  ;;  %9185 = vst [vmem:[#allocation68_spill] sm:$0xff] %v6285_v46  ;;  %v616_v4 = vld [vmem:[#allocation8 + $0x500] sm:$0xff] }
 0x16c   : > { %v6283_v20 = vsub.f32 %v1297_v60, %v1702_v27  ;;  %v1245_v19 = vld [vmem:[#allocation11 + $0x528] sm:$0xff]  ;;  %v6287_v29 = vsub.f32 %v1301_v25, %v1706_v5  ;;  %9187 = vst [vmem:[#allocation70_spill] sm:$0xff] %v6289_v15  ;;  %v6291_v22 = vsub.f32 %v1296_v42, %v1701_v32  ;;  %v6293_v35 = vsub.f32 %v1300_v39, %v1705_v36  ;;  %v492_v60 = vld [vmem:[#allocation8 + $0x120] sm:$0xff] }
 0x16d   : > { %v489_v6 = vld [vmem:[#allocation8 + $0x108] sm:$0xff]  ;;  %v6295_v41 = vsub.f32 %v1424_v45, %v1829_v54  ;;  %v1433_v27 = vadd.f32 %v1241_v0, %v1049_v17  ;;  %v6301_v25 = vsub.f32 %v1428_v30, %v1833_v57  ;;  %v1838_v53 = vmul.f32 %v6068_v8, %v1625_v28  ;;  %v620_v5 = vld [vmem:[#allocation8 + $0x520] sm:$0xff] }
 0x16e   : > { %9184 = vst [vmem:[#allocation67_spill] sm:$0xff] %v6283_v20  ;;  %9186 = vst [vmem:[#allocation69_spill] sm:$0xff] %v6287_v29  ;;  %v1629_v40 = vld [vmem:[#allocation9 + $0x528] sm:$0xff]  ;;  %v6299_v47 = vpack.c.bf16 %v6287_v29, %v6283_v20  ;;  %v1437_v14 = vadd.f32 %v1245_v19, %v1053_v16  ;;  %v921_v32 = vmul.f32 %v6285_v46, %v489_v6  ;;  %v1240_v42 = vld [vmem:[#allocation11 + $0x500] sm:$0xff]  ;;  %v6322_v29 = vpop.permute.xlu0 %860  ;;  %v6326_v63 = vpop.permute.xlu1 %865 }
 0x16f   : > { %v493_v7 = vld [vmem:[#allocation8 + $0x128] sm:$0xff]  ;;  %9188 = vst [vmem:[#allocation71_spill] sm:$0xff] %v6291_v22  ;;  %9189 = vst [vmem:[#allocation72_spill] sm:$0xff] %v6293_v35  ;;  %v6307_v36 = vpack.c.bf16 %v6293_v35, %v6291_v22  ;;  %v1842_v45 = vmul.f32 %v6068_v8, %v1629_v40  ;;  %v920_v54 = vmul.f32 %v6285_v46, %v488_v49  ;;  %v1496_v6 = vld [vmem:[#allocation9 + $0x100] sm:$0xff] }
 0x170   : > { %9190 = vst [vmem:[#allocation73_spill] sm:$0xff] %v6295_v41  ;;  %9191 = vst [vmem:[#allocation74_spill] sm:$0xff] %v6299_v47  ;;  %v1113_v39 = vld [vmem:[#allocation11 + $0x108] sm:$0xff]  ;;  %v925_v30 = vmul.f32 %v6289_v15, %v493_v7  ;;  %4805 = vmatprep.subr.bf16.mxu0 %v6299_v47  ;;  %v6315_v19 = vpack.c.bf16 %v6301_v25, %v6295_v41  ;;  %v1048_v0 = vmul.f32 %v6262_v3, %v616_v4  ;;  %v1500_v40 = vld [vmem:[#allocation9 + $0x120] sm:$0xff] }
 0x171   : > { %9192 = vst [vmem:[#allocation75_spill] sm:$0xff] %v6301_v25  ;;  %9193 = vst [vmem:[#allocation76_spill] sm:$0xff] %v6307_v36  ;;  %v1497_v17 = vld [vmem:[#allocation9 + $0x108] sm:$0xff]  ;;  %v924_v28 = vmul.f32 %v6289_v15, %v492_v60  ;;  %4807 = vmatpush1.bf16.xpose.msra.mxu0 %v6307_v36  ;;  %v1244_v49 = vld [vmem:[#allocation11 + $0x520] sm:$0xff]  ;;  %v1052_v7 = vmul.f32 %v6268_v62, %v620_v5  ;;  %v6324_v25 = vsub.f32 %v1433_v27, %v1838_v53 }
 0x172   : > { %9194 = vst [vmem:[#allocation77_spill] sm:$0xff] %v6315_v19  ;;  %v1501_v57 = vld [vmem:[#allocation9 + $0x128] sm:$0xff]  ;;  %v1116_v35 = vld [vmem:[#allocation11 + $0x120] sm:$0xff]  ;;  %4935 = vmatpush1.bf16.xpose.msra.mxu1 %v6315_v19  ;;  %v1305_v22 = vadd.f32 %v1113_v39, %v921_v32  ;;  %v6328_v60 = vsub.f32 %v1437_v14, %v1842_v45  ;;  %v1710_v12 = vmul.f32 %v6068_v8, %v1497_v17 }
 0x173   : > { %v1117_v16 = vld [vmem:[#allocation11 + $0x128] sm:$0xff]  ;;  %9195 = vst [vmem:[#allocation78_spill] sm:$0xff] %v6324_v25  ;;  %v1624_v41 = vld [vmem:[#allocation9 + $0x500] sm:$0xff]  ;;  %v1714_v18 = vmul.f32 %v6068_v8, %v1501_v57  ;;  %v1304_v36 = vadd.f32 %v1112_v13, %v920_v54  ;;  %v1709_v19 = vmul.f32 %v6076_v21, %v1496_v6  ;;  %v1713_v27 = vmul.f32 %v6076_v21, %v1500_v40  ;;  %v6351_v40 = vpop.permute.xlu1 %705 }
 0x174   : > { %v625_v4 = vld [vmem:[#allocation8 + $0x548] sm:$0xff]  ;;  %9196 = vst [vmem:[#allocation79_spill] sm:$0xff] %v6328_v60  ;;  %v1628_v5 = vld [vmem:[#allocation9 + $0x520] sm:$0xff]  ;;  %v1309_v47 = vadd.f32 %v1117_v16, %v925_v30  ;;  %v1432_v53 = vadd.f32 %v1240_v42, %v1048_v0  ;;  %v1308_v59 = vadd.f32 %v1116_v35, %v924_v28  ;;  %v6336_v32 = vpack.c.bf16 %v6328_v60, %v6324_v25  ;;  %v6345_v0 = vpop.permute.xlu0 %700 }
 0x175   : > { %v629_v20 = vld [vmem:[#allocation8 + $0x568] sm:$0xff]  ;;  %v1837_v14 = vmul.f32 %v6076_v21, %v1624_v41  ;;  %v1436_v45 = vadd.f32 %v1244_v49, %v1052_v7  ;;  %v1057_v39 = vmul.f32 %v6322_v29, %v625_v4  ;;  %v1841_v13 = vmul.f32 %v6076_v21, %v1628_v5  ;;  %9199 = vst [vmem:[#allocation82_spill] sm:$0xff] %v6345_v0  ;;  %v496_v60 = vld [vmem:[#allocation8 + $0x140] sm:$0xff] }
 0x176   : > { %9197 = vst [vmem:[#allocation80_spill] sm:$0xff] %v6336_v32  ;;  %v1061_v17 = vmul.f32 %v6326_v63, %v629_v20  ;;  %v1633_v54 = vld [vmem:[#allocation9 + $0x548] sm:$0xff]  ;;  %4937 = vmatprep.subr.bf16.mxu1 %v6336_v32  ;;  %v6343_v35 = vsub.f32 %v1305_v22, %v1710_v12  ;;  %v6347_v28 = vsub.f32 %v1309_v47, %v1714_v18  ;;  %9202 = vst [vmem:[#allocation85_spill] sm:$0xff] %v6351_v40  ;;  %v624_v12 = vld [vmem:[#allocation8 + $0x540] sm:$0xff] }
 0x177   : > { %v1637_v30 = vld [vmem:[#allocation9 + $0x568] sm:$0xff]  ;;  %v6349_v41 = vsub.f32 %v1304_v36, %v1709_v19  ;;  %v6353_v20 = vsub.f32 %v1308_v59, %v1713_v27  ;;  %v6355_v49 = vsub.f32 %v1432_v53, %v1837_v14  ;;  %v1846_v7 = vmul.f32 %v6068_v8, %v1633_v54  ;;  %v500_v25 = vld [vmem:[#allocation8 + $0x160] sm:$0xff] }
 0x178   : > { %v1249_v57 = vld [vmem:[#allocation11 + $0x548] sm:$0xff]  ;;  %9198 = vst [vmem:[#allocation81_spill] sm:$0xff] %v6343_v35  ;;  %9200 = vst [vmem:[#allocation83_spill] sm:$0xff] %v6347_v28  ;;  %v1850_v4 = vmul.f32 %v6068_v8, %v1637_v30  ;;  %v6361_v18 = vpack.c.bf16 %v6347_v28, %v6343_v35  ;;  %v6363_v47 = vsub.f32 %v1436_v45, %v1841_v13  ;;  %v628_v36 = vld [vmem:[#allocation8 + $0x560] sm:$0xff]  ;;  %v6386_v35 = vpop.permute.xlu0 %870 }
 0x179   : > { %v1253_v16 = vld [vmem:[#allocation11 + $0x568] sm:$0xff]  ;;  %9201 = vst [vmem:[#allocation84_spill] sm:$0xff] %v6349_v41  ;;  %9203 = vst [vmem:[#allocation86_spill] sm:$0xff] %v6353_v20  ;;  %v1441_v22 = vadd.f32 %v1249_v57, %v1057_v39  ;;  %v6368_v19 = vpack.c.bf16 %v6353_v20, %v6349_v41  ;;  %v1248_v27 = vld [vmem:[#allocation11 + $0x540] sm:$0xff]  ;;  %v1056_v13 = vmul.f32 %v6322_v29, %v624_v12 }
 0x17a   : > { %v497_v42 = vld [vmem:[#allocation8 + $0x148] sm:$0xff]  ;;  %9204 = vst [vmem:[#allocation87_spill] sm:$0xff] %v6355_v49  ;;  %v1445_v5 = vadd.f32 %v1253_v16, %v1061_v17  ;;  %9205 = vst [vmem:[#allocation88_spill] sm:$0xff] %v6361_v18  ;;  %4809 = vmatprep.subr.bf16.mxu0 %v6361_v18  ;;  %v6374_v39 = vpack.c.bf16 %v6363_v47, %v6355_v49  ;;  %v928_v54 = vmul.f32 %v6345_v0, %v496_v60  ;;  %v1504_v16 = vld [vmem:[#allocation9 + $0x140] sm:$0xff] }
 0x17b   : > { %v501_v6 = vld [vmem:[#allocation8 + $0x168] sm:$0xff]  ;;  %9206 = vst [vmem:[#allocation89_spill] sm:$0xff] %v6363_v47  ;;  %v929_v59 = vmul.f32 %v6345_v0, %v497_v42  ;;  %9207 = vst [vmem:[#allocation90_spill] sm:$0xff] %v6368_v19  ;;  %v932_v57 = vmul.f32 %v6351_v40, %v500_v25  ;;  %4811 = vmatpush1.bf16.xpose.msra.mxu0 %v6368_v19  ;;  %v1508_v42 = vld [vmem:[#allocation9 + $0x160] sm:$0xff]  ;;  %v6382_v47 = vsub.f32 %v1441_v22, %v1846_v7  ;;  %v6390_v0 = vpop.permute.xlu1 %875 }
 0x17c   : > { %v1121_v53 = vld [vmem:[#allocation11 + $0x148] sm:$0xff]  ;;  %v933_v14 = vmul.f32 %v6351_v40, %v501_v6  ;;  %9208 = vst [vmem:[#allocation91_spill] sm:$0xff] %v6374_v39  ;;  %v1060_v6 = vmul.f32 %v6326_v63, %v628_v36  ;;  %v1120_v20 = vld [vmem:[#allocation11 + $0x140] sm:$0xff]  ;;  %4939 = vmatpush1.bf16.xpose.msra.mxu1 %v6374_v39  ;;  %v6384_v49 = vsub.f32 %v1445_v5, %v1850_v4 }
 0x17d   : > { %v1505_v17 = vld [vmem:[#allocation9 + $0x148] sm:$0xff]  ;;  %v1124_v28 = vld [vmem:[#allocation11 + $0x160] sm:$0xff]  ;;  %9209 = vst [vmem:[#allocation92_spill] sm:$0xff] %v6382_v47  ;;  %v1313_v60 = vadd.f32 %v1121_v53, %v929_v59  ;;  %v1717_v4 = vmul.f32 %v6076_v21, %v1504_v16  ;;  %v1721_v22 = vmul.f32 %v6076_v21, %v1508_v42  ;;  %v1440_v5 = vadd.f32 %v1248_v27, %v1056_v13 }
 0x17e   : > { %v1509_v45 = vld [vmem:[#allocation9 + $0x168] sm:$0xff]  ;;  %9210 = vst [vmem:[#allocation93_spill] sm:$0xff] %v6384_v49  ;;  %v1632_v12 = vld [vmem:[#allocation9 + $0x540] sm:$0xff]  ;;  %v1718_v25 = vmul.f32 %v6068_v8, %v1505_v17  ;;  %v6394_v7 = vpack.c.bf16 %v6384_v49, %v6382_v47  ;;  %v1312_v59 = vadd.f32 %v1120_v20, %v928_v54  ;;  %v1316_v53 = vadd.f32 %v1124_v28, %v932_v57  ;;  %v6413_v54 = vpop.permute.xlu0 %710 }
 0x17f   : > { %v1125_v30 = vld [vmem:[#allocation11 + $0x168] sm:$0xff]  ;;  %v1252_v41 = vld [vmem:[#allocation11 + $0x560] sm:$0xff]  ;;  %v1722_v19 = vmul.f32 %v6068_v8, %v1509_v45  ;;  %v1845_v17 = vmul.f32 %v6076_v21, %v1632_v12  ;;  %9217 = vst [vmem:[#allocation100_spill] sm:$0xff] %v6413_v54 }
 0x180   : > { %v633_v32 = vld [vmem:[#allocation8 + $0x588] sm:$0xff]  ;;  %v1636_v18 = vld [vmem:[#allocation9 + $0x560] sm:$0xff]  ;;  %v1317_v36 = vadd.f32 %v1125_v30, %v933_v14  ;;  %9211 = vst [vmem:[#allocation94_spill] sm:$0xff] %v6394_v7  ;;  %v1444_v39 = vadd.f32 %v1252_v41, %v1060_v6  ;;  %4941 = vmatprep.subr.bf16.mxu1 %v6394_v7  ;;  %v6403_v47 = vsub.f32 %v1313_v60, %v1718_v25  ;;  %v6422_v60 = vpop.permute.xlu1 %715 }
 0x181   : > { %v637_v40 = vld [vmem:[#allocation8 + $0x5a8] sm:$0xff]  ;;  %v1065_v45 = vmul.f32 %v6386_v35, %v633_v32  ;;  %v1849_v14 = vmul.f32 %v6076_v21, %v1636_v18  ;;  %v6407_v28 = vsub.f32 %v1312_v59, %v1717_v4  ;;  %v6409_v27 = vsub.f32 %v1316_v53, %v1721_v22  ;;  %v504_v6 = vld [vmem:[#allocation8 + $0x180] sm:$0xff]  ;;  %9220 = vst [vmem:[#allocation103_spill] sm:$0xff] %v6422_v60 }
 0x182   : > { %v1257_v30 = vld [vmem:[#allocation11 + $0x588] sm:$0xff]  ;;  %v1069_v49 = vmul.f32 %v6390_v0, %v637_v40  ;;  %9212 = vst [vmem:[#allocation95_spill] sm:$0xff] %v6403_v47  ;;  %v6405_v42 = vsub.f32 %v1317_v36, %v1722_v19  ;;  %v6411_v41 = vsub.f32 %v1440_v5, %v1845_v17  ;;  %v936_v59 = vmul.f32 %v6413_v54, %v504_v6  ;;  %v1132_v6 = vld [vmem:[#allocation11 + $0x1a0] sm:$0xff] }
 0x183   : > { %v1641_v16 = vld [vmem:[#allocation9 + $0x588] sm:$0xff]  ;;  %9214 = vst [vmem:[#allocation97_spill] sm:$0xff] %v6407_v28  ;;  %9215 = vst [vmem:[#allocation98_spill] sm:$0xff] %v6409_v27  ;;  %v1449_v32 = vadd.f32 %v1257_v30, %v1065_v45  ;;  %v6419_v18 = vsub.f32 %v1444_v39, %v1849_v14  ;;  %v6426_v25 = vpack.c.bf16 %v6409_v27, %v6407_v28  ;;  %v632_v39 = vld [vmem:[#allocation8 + $0x580] sm:$0xff]  ;;  %v6450_v28 = vpop.permute.xlu0 %880 }
 0x184   : > { %v1261_v15 = vld [vmem:[#allocation11 + $0x5a8] sm:$0xff]  ;;  %9213 = vst [vmem:[#allocation96_spill] sm:$0xff] %v6405_v42  ;;  %9216 = vst [vmem:[#allocation99_spill] sm:$0xff] %v6411_v41  ;;  %v6417_v40 = vpack.c.bf16 %v6405_v42, %v6403_v47  ;;  %v1854_v19 = vmul.f32 %v6068_v8, %v1641_v16  ;;  %v1128_v45 = vld [vmem:[#allocation11 + $0x180] sm:$0xff]  ;;  %v6454_v47 = vpop.permute.xlu1 %885 }
 0x185   : > { %v1645_v20 = vld [vmem:[#allocation9 + $0x5a8] sm:$0xff]  ;;  %9219 = vst [vmem:[#allocation102_spill] sm:$0xff] %v6419_v18  ;;  %v1453_v57 = vadd.f32 %v1261_v15, %v1069_v49  ;;  %9221 = vst [vmem:[#allocation104_spill] sm:$0xff] %v6426_v25  ;;  %v6432_v4 = vpack.c.bf16 %v6419_v18, %v6411_v41  ;;  %v508_v15 = vld [vmem:[#allocation8 + $0x1a0] sm:$0xff]  ;;  %v1320_v42 = vadd.f32 %v1128_v45, %v936_v59 }
 0x186   : > { %v505_v13 = vld [vmem:[#allocation8 + $0x188] sm:$0xff]  ;;  %9218 = vst [vmem:[#allocation101_spill] sm:$0xff] %v6417_v40  ;;  %v1858_v36 = vmul.f32 %v6068_v8, %v1645_v20  ;;  %4813 = vmatprep.subr.bf16.mxu0 %v6417_v40  ;;  %v636_v49 = vld [vmem:[#allocation8 + $0x5a0] sm:$0xff]  ;;  %v6439_v17 = vsub.f32 %v1449_v32, %v1854_v19  ;;  %v1064_v20 = vmul.f32 %v6386_v35, %v632_v39 }
 0x187   : > { %v509_v12 = vld [vmem:[#allocation8 + $0x1a8] sm:$0xff]  ;;  %9222 = vst [vmem:[#allocation105_spill] sm:$0xff] %v6432_v4  ;;  %v937_v22 = vmul.f32 %v6413_v54, %v505_v13  ;;  %4815 = vmatpush1.bf16.xpose.msra.mxu0 %v6426_v25  ;;  %4943 = vmatpush1.bf16.xpose.msra.mxu1 %v6432_v4  ;;  %v1256_v16 = vld [vmem:[#allocation11 + $0x580] sm:$0xff]  ;;  %v940_v13 = vmul.f32 %v6422_v60, %v508_v15 }
 0x188   : > { %v1129_v5 = vld [vmem:[#allocation11 + $0x188] sm:$0xff]  ;;  %v941_v53 = vmul.f32 %v6422_v60, %v509_v12  ;;  %9223 = vst [vmem:[#allocation106_spill] sm:$0xff] %v6439_v17  ;;  %v6441_v30 = vsub.f32 %v1453_v57, %v1858_v36  ;;  %v1068_v41 = vmul.f32 %v6390_v0, %v636_v49  ;;  %v1512_v19 = vld [vmem:[#allocation9 + $0x180] sm:$0xff] }
 0x189   : > { %v1133_v14 = vld [vmem:[#allocation11 + $0x1a8] sm:$0xff]  ;;  %v1321_v27 = vadd.f32 %v1129_v5, %v937_v22  ;;  %v1260_v4 = vld [vmem:[#allocation11 + $0x5a0] sm:$0xff]  ;;  %v1448_v22 = vadd.f32 %v1256_v16, %v1064_v20  ;;  %v1324_v5 = vadd.f32 %v1132_v6, %v940_v13 }
 0x18a   : > { %9224 = vst [vmem:[#allocation107_spill] sm:$0xff] %v6441_v30  ;;  %v1513_v18 = vld [vmem:[#allocation9 + $0x188] sm:$0xff]  ;;  %v6448_v12 = vpack.c.bf16 %v6441_v30, %v6439_v17  ;;  %v1325_v57 = vadd.f32 %v1133_v14, %v941_v53  ;;  %v1516_v15 = vld [vmem:[#allocation9 + $0x1a0] sm:$0xff]  ;;  %v1725_v17 = vmul.f32 %v6076_v21, %v1512_v19  ;;  %v1452_v53 = vadd.f32 %v1260_v4, %v1068_v41 }
 0x18b   : > { %v1517_v32 = vld [vmem:[#allocation9 + $0x1a8] sm:$0xff]  ;;  %v1726_v39 = vmul.f32 %v6068_v8, %v1513_v18  ;;  %v1640_v49 = vld [vmem:[#allocation9 + $0x580] sm:$0xff]  ;;  %v1729_v18 = vmul.f32 %v6076_v21, %v1516_v15 }
 0x18c   : > { %9225 = vst [vmem:[#allocation108_spill] sm:$0xff] %v6448_v12  ;;  %v641_v36 = vld [vmem:[#allocation8 + $0x5c8] sm:$0xff]  ;;  %4945 = vmatprep.subr.bf16.mxu1 %v6448_v12  ;;  %v1730_v30 = vmul.f32 %v6068_v8, %v1517_v32  ;;  %v1644_v59 = vld [vmem:[#allocation9 + $0x5a0] sm:$0xff]  ;;  %v6464_v25 = vsub.f32 %v1320_v42, %v1725_v17  ;;  %v1853_v16 = vmul.f32 %v6076_v21, %v1640_v49 }
 0x18d   : > { %v645_v7 = vld [vmem:[#allocation8 + $0x5e8] sm:$0xff]  ;;  %v1073_v45 = vmul.f32 %v6450_v28, %v641_v36  ;;  %v6459_v14 = vsub.f32 %v1321_v27, %v1726_v39  ;;  %v1857_v6 = vmul.f32 %v6076_v21, %v1644_v59  ;;  %v6473_v27 = vsub.f32 %v1324_v5, %v1729_v18  ;;  %v6479_v36 = vpop.permute.xlu0 %720  ;;  %v6481_v39 = vpop.permute.xlu1 %725  ;;  %v516_v5 = vld [vmem:[#allocation8 + $0x1e0] sm:$0xff]  ;;  %v587_v18 = vld [vmem:[#allocation8 + $0x418] sm:$0xff] }
 0x18e   : > { %v6461_v12 = vsub.f32 %v1325_v57, %v1730_v30  ;;  %9228 = vst [vmem:[#allocation111_spill] sm:$0xff] %v6464_v25  ;;  %v1265_v20 = vld [vmem:[#allocation11 + $0x5c8] sm:$0xff]  ;;  %v1077_v13 = vmul.f32 %v6454_v47, %v645_v7  ;;  %v6475_v4 = vsub.f32 %v1448_v22, %v1853_v16  ;;  %v512_v30 = vld [vmem:[#allocation8 + $0x1c0] sm:$0xff]  ;;  %9233 = vst [vmem:[#allocation116_spill] sm:$0xff] %v6479_v36 }
 0x18f   : > { %9226 = vst [vmem:[#allocation109_spill] sm:$0xff] %v6459_v14  ;;  %v1269_v32 = vld [vmem:[#allocation11 + $0x5e8] sm:$0xff]  ;;  %9230 = vst [vmem:[#allocation113_spill] sm:$0xff] %v6473_v27  ;;  %v6477_v19 = vsub.f32 %v1452_v53, %v1857_v6  ;;  %v1457_v17 = vadd.f32 %v1265_v20, %v1073_v45  ;;  %v6486_v15 = vpack.c.bf16 %v6473_v27, %v6464_v25  ;;  %v640_v53 = vld [vmem:[#allocation8 + $0x5c0] sm:$0xff] }
 0x190   : > { %9227 = vst [vmem:[#allocation110_spill] sm:$0xff] %v6461_v12  ;;  %v6471_v41 = vpack.c.bf16 %v6461_v12, %v6459_v14  ;;  %9231 = vst [vmem:[#allocation114_spill] sm:$0xff] %v6475_v4  ;;  %v1649_v42 = vld [vmem:[#allocation9 + $0x5c8] sm:$0xff]  ;;  %v1461_v22 = vadd.f32 %v1269_v32, %v1077_v13  ;;  %v591_v16 = vld [vmem:[#allocation8 + $0x438] sm:$0xff]  ;;  %v944_v6 = vmul.f32 %v6479_v36, %v512_v30 }
 0x191   : > { %9232 = vst [vmem:[#allocation115_spill] sm:$0xff] %v6477_v19  ;;  %v513_v57 = vld [vmem:[#allocation8 + $0x1c8] sm:$0xff]  ;;  %9234 = vst [vmem:[#allocation117_spill] sm:$0xff] %v6481_v39  ;;  %v6490_v59 = vpack.c.bf16 %v6477_v19, %v6475_v4  ;;  %v1862_v45 = vmul.f32 %v6068_v8, %v1649_v42  ;;  %v644_v20 = vld [vmem:[#allocation8 + $0x5e0] sm:$0xff]  ;;  %v948_v25 = vmul.f32 %v6481_v39, %v516_v5  ;;  %v6519_v23 = vpop.permute.xlu0 %730 }
 0x192   : > { %9229 = vst [vmem:[#allocation112_spill] sm:$0xff] %v6471_v41  ;;  %v517_v7 = vld [vmem:[#allocation8 + $0x1e8] sm:$0xff]  ;;  %4817 = vmatprep.subr.bf16.mxu0 %v6471_v41  ;;  %9235 = vst [vmem:[#allocation118_spill] sm:$0xff] %v6486_v15  ;;  %v945_v27 = vmul.f32 %v6479_v36, %v513_v57  ;;  %v1136_v32 = vld [vmem:[#allocation11 + $0x1c0] sm:$0xff]  ;;  %v1072_v30 = vmul.f32 %v6450_v28, %v640_v53 }
 0x193   : > { %v1653_v49 = vld [vmem:[#allocation9 + $0x5e8] sm:$0xff]  ;;  %9236 = vst [vmem:[#allocation119_spill] sm:$0xff] %v6490_v59  ;;  %4819 = vmatpush1.bf16.xpose.msra.mxu0 %v6486_v15  ;;  %v949_v12 = vmul.f32 %v6481_v39, %v517_v7  ;;  %4947 = vmatpush1.bf16.xpose.msra.mxu1 %v6490_v59  ;;  %v6500_v14 = vsub.f32 %v1457_v17, %v1862_v45  ;;  %v1211_v15 = vld [vmem:[#allocation11 + $0x418] sm:$0xff]  ;;  %v1264_v41 = vld [vmem:[#allocation11 + $0x5c0] sm:$0xff] }
 0x194   : > { %v1866_v13 = vmul.f32 %v6068_v8, %v1653_v49  ;;  %v1137_v19 = vld [vmem:[#allocation11 + $0x1c8] sm:$0xff]  ;;  %v1140_v57 = vld [vmem:[#allocation11 + $0x1e0] sm:$0xff]  ;;  %v1019_v7 = vmul.f32 %v6050_v50, %v587_v18  ;;  %v1023_v49 = vmul.f32 %v6059_v56, %v591_v16  ;;  %v1076_v59 = vmul.f32 %v6454_v47, %v644_v20  ;;  %v1215_v45 = vld [vmem:[#allocation11 + $0x438] sm:$0xff]  ;;  %9241 = vst [vmem:[#allocation123_spill] sm:$0xff] %v6519_v23 }
 0x195   : > { %v1141_v4 = vld [vmem:[#allocation11 + $0x1e8] sm:$0xff]  ;;  %9237 = vst [vmem:[#allocation120_spill] sm:$0xff] %v6500_v14  ;;  %v1520_v17 = vld [vmem:[#allocation9 + $0x1c0] sm:$0xff]  ;;  %v1328_v42 = vadd.f32 %v1136_v32, %v944_v6  ;;  %v1329_v60 = vadd.f32 %v1137_v19, %v945_v27  ;;  %v5432_v16 = vld [vmem:[%s5974_s29] sm:$0xf]  ;;  %v9240_v20 = vsub.s32 3, %v6055_v52  ;;  %v1456_v9 = vadd.f32 %v1264_v41, %v1072_v30  ;;  %s8372_s29 = scalar_lea.hbm %s8601_s7, %s5336_s17 }
 0x196   : > { %v6504_v36 = vsub.f32 %v1461_v22, %v1866_v13  ;;  %v1521_v40 = vld [vmem:[#allocation9 + $0x1c8] sm:$0xff]  ;;  %v1268_v39 = vld [vmem:[#allocation11 + $0x5e0] sm:$0xff]  ;;  %v1333_v54 = vadd.f32 %v1141_v4, %v949_v12  ;;  %v1332_v13 = vadd.f32 %v1140_v57, %v948_v25  ;;  %v1733_v4 = vmul.f32 %v6076_v21, %v1520_v17  ;;  %v1595_v25 = vld [vmem:[#allocation9 + $0x418] sm:$0xff] }
 0x197   : > { %v1525_v5 = vld [vmem:[#allocation9 + $0x1e8] sm:$0xff]  ;;  %v1524_v22 = vld [vmem:[#allocation9 + $0x1e0] sm:$0xff]  ;;  %v6517_v2 = vrot.slane %v5432_v16, %v9240_v20  ;;  %v1734_v12 = vmul.f32 %v6068_v8, %v1521_v40  ;;  %v1403_v6 = vadd.f32 %v1211_v15, %v1019_v7  ;;  %v1407_v32 = vadd.f32 %v1215_v45, %v1023_v49  ;;  %v6525_v20 = vpop.permute.xlu1 %735  ;;  %v1599_v30 = vld [vmem:[#allocation9 + $0x438] sm:$0xff] }
 0x198   : > { %9238 = vst [vmem:[#allocation121_spill] sm:$0xff] %v6504_v36  ;;  %v6511_v53 = vpack.c.bf16 %v6504_v36, %v6500_v14  ;;  %v1648_v46 = vld [vmem:[#allocation9 + $0x5c0] sm:$0xff]  ;;  %v521_v31 = vld [vmem:[#allocation8 + $0x208] sm:$0xff]  ;;  %v1738_v27 = vmul.f32 %v6068_v8, %v1525_v5  ;;  %v1460_v57 = vadd.f32 %v1268_v39, %v1076_v59  ;;  %9242 = vst [vmem:[#allocation124_spill] sm:$0xff] %v6525_v20 }
 0x199   : > { %v1652_v19 = vld [vmem:[#allocation9 + $0x5e0] sm:$0xff]  ;;  %v525_v18 = vld [vmem:[#allocation8 + $0x228] sm:$0xff]  ;;  %v1737_v41 = vmul.f32 %v6076_v21, %v1524_v22  ;;  %v6528_v36 = vsub.f32 %v1329_v60, %v1734_v12  ;;  %v6532_v40 = vsub.f32 %v1328_v42, %v1733_v4  ;;  %v1861_v5 = vmul.f32 %v6076_v21, %v1648_v46  ;;  %v586_v59 = vld [vmem:[#allocation8 + $0x410] sm:$0xff] }
 0x19a   : > { %9239 = vst [vmem:[#allocation122_spill] sm:$0xff] %v6511_v53  ;;  %4949 = vmatprep.subr.bf16.mxu1 %v6511_v53  ;;  %v6530_v14 = vsub.f32 %v1333_v54, %v1738_v27  ;;  %v953_v17 = vmul.f32 %v6519_v23, %v521_v31  ;;  %v1865_v39 = vmul.f32 %v6076_v21, %v1652_v19  ;;  %v590_v7 = vld [vmem:[#allocation8 + $0x430] sm:$0xff]  ;;  %v1145_v42 = vld [vmem:[#allocation11 + $0x208] sm:$0xff]  ;;  %v9251_v12 = vsub.s32 2, %v6055_v52 }
 0x19b   : > { %9243 = vst [vmem:[#allocation125_spill] sm:$0xff] %v6528_v36  ;;  %9245 = vst [vmem:[#allocation127_spill] sm:$0xff] %v6532_v40  ;;  %v6536_v53 = vsub.f32 %v1332_v13, %v1737_v41  ;;  %v1808_v15 = vmul.f32 %v6517_v2, %v1595_v25  ;;  %v957_v49 = vmul.f32 %v6525_v20, %v525_v18  ;;  %v1149_v31 = vld [vmem:[#allocation11 + $0x228] sm:$0xff]  ;;  %v1210_v13 = vld [vmem:[#allocation11 + $0x410] sm:$0xff] }
 0x19c   : > { %9244 = vst [vmem:[#allocation126_spill] sm:$0xff] %v6530_v14  ;;  %v6543_v54 = vpack.c.bf16 %v6530_v14, %v6528_v36  ;;  %v6545_v60 = vsub.f32 %v1456_v9, %v1861_v5  ;;  %v1812_v46 = vmul.f32 %v6517_v2, %v1599_v30  ;;  %v6552_v22 = vsub.f32 %v1460_v57, %v1865_v39  ;;  %v1594_v4 = vld [vmem:[#allocation9 + $0x410] sm:$0xff]  ;;  %v1529_v41 = vld [vmem:[#allocation9 + $0x208] sm:$0xff]  ;;  %v520_v39 = vld [vmem:[#allocation8 + $0x200] sm:$0xff] }
 0x19d   : > { %9246 = vst [vmem:[#allocation128_spill] sm:$0xff] %v6536_v53  ;;  %v6550_v45 = vpack.c.bf16 %v6536_v53, %v6532_v40  ;;  %v6556_v18 = vrot.slane %v5432_v16, %v9251_v12  ;;  %v6559_v27 = vsub.f32 %v1403_v6, %v1808_v15  ;;  %v1018_v19 = vmul.f32 %v6050_v50, %v586_v59  ;;  %v1533_v16 = vld [vmem:[#allocation9 + $0x228] sm:$0xff]  ;;  %v1214_v30 = vld [vmem:[#allocation11 + $0x430] sm:$0xff]  ;;  %v524_v50 = vld [vmem:[#allocation8 + $0x220] sm:$0xff] }
 0x19e   : > { %9247 = vst [vmem:[#allocation129_spill] sm:$0xff] %v6543_v54  ;;  %9248 = vst [vmem:[#allocation130_spill] sm:$0xff] %v6545_v60  ;;  %4821 = vmatprep.subr.bf16.mxu0 %v6543_v54  ;;  %v6561_v9 = vsub.f32 %v1407_v32, %v1812_v46  ;;  %v1022_v25 = vmul.f32 %v6059_v56, %v590_v7  ;;  %v6568_v57 = vpack.c.bf16 %v6552_v22, %v6545_v60  ;;  %v1598_v5 = vld [vmem:[#allocation9 + $0x430] sm:$0xff]  ;;  %v529_v59 = vld [vmem:[#allocation8 + $0x248] sm:$0xff]  ;;  %v6574_v56 = vpop.permute.xlu0 %740 }
 0x19f   : > { %9249 = vst [vmem:[#allocation131_spill] sm:$0xff] %v6550_v45  ;;  %9250 = vst [vmem:[#allocation132_spill] sm:$0xff] %v6552_v22  ;;  %4823 = vmatpush1.bf16.xpose.msra.mxu0 %v6550_v45  ;;  %v1337_v6 = vadd.f32 %v1145_v42, %v953_v17  ;;  %v1341_v15 = vadd.f32 %v1149_v31, %v957_v49  ;;  %v1807_v7 = vmul.f32 %v6556_v18, %v1594_v4  ;;  %v595_v46 = vld [vmem:[#allocation8 + $0x458] sm:$0xff]  ;;  %v533_v12 = vld [vmem:[#allocation8 + $0x268] sm:$0xff]  ;;  %v6578_v22 = vpop.permute.xlu1 %745 }
 0x1a0   : > { %9252 = vst [vmem:[#allocation133_spill] sm:$0xff] %v6559_v27  ;;  %9253 = vst [vmem:[#allocation134_spill] sm:$0xff] %v6561_v9  ;;  %v6572_v32 = vpack.c.bf16 %v6561_v9, %v6559_v27  ;;  %4951 = vmatpush1.bf16.xpose.msra.mxu1 %v6568_v57  ;;  %v1742_v17 = vmul.f32 %v6068_v8, %v1529_v41  ;;  %v1746_v49 = vmul.f32 %v6068_v8, %v1533_v16  ;;  %v599_v27 = vld [vmem:[#allocation8 + $0x478] sm:$0xff]  ;;  %v1144_v4 = vld [vmem:[#allocation11 + $0x200] sm:$0xff] }
 0x1a1   : > { %9254 = vst [vmem:[#allocation135_spill] sm:$0xff] %v6568_v57  ;;  %9256 = vst [vmem:[#allocation137_spill] sm:$0xff] %v6574_v56  ;;  %v1402_v42 = vadd.f32 %v1210_v13, %v1018_v19  ;;  %v1811_v31 = vmul.f32 %v6556_v18, %v1598_v5  ;;  %v1406_v9 = vadd.f32 %v1214_v30, %v1022_v25  ;;  %v594_v57 = vld [vmem:[#allocation8 + $0x450] sm:$0xff]  ;;  %v1148_v16 = vld [vmem:[#allocation11 + $0x220] sm:$0xff] }
 0x1a2   : > { %9255 = vst [vmem:[#allocation136_spill] sm:$0xff] %v6572_v32  ;;  %9257 = vst [vmem:[#allocation138_spill] sm:$0xff] %v6578_v22  ;;  %4953 = vmatprep.subr.bf16.mxu1 %v6572_v32  ;;  %v952_v60 = vmul.f32 %v6519_v23, %v520_v39  ;;  %v956_v53 = vmul.f32 %v6525_v20, %v524_v50  ;;  %v961_v14 = vmul.f32 %v6574_v56, %v529_v59  ;;  %v1153_v13 = vld [vmem:[#allocation11 + $0x248] sm:$0xff]  ;;  %v6594_v25 = vld [vmem:[%s5981_s12] sm:$0xf] }
 0x1a3   : > { %v6587_v40 = vsub.f32 %v1337_v6, %v1742_v17  ;;  %v6589_v32 = vsub.f32 %v1341_v15, %v1746_v49  ;;  %v1027_v41 = vmul.f32 %v6080_v26, %v595_v46  ;;  %v965_v19 = vmul.f32 %v6578_v22, %v533_v12  ;;  %v1219_v30 = vld [vmem:[#allocation11 + $0x458] sm:$0xff]  ;;  %v1157_v39 = vld [vmem:[#allocation11 + $0x268] sm:$0xff]  ;;  %v1528_v6 = vld [vmem:[#allocation9 + $0x200] sm:$0xff] }
 0x1a4   : > { %v1031_v5 = vmul.f32 %v6084_v34, %v599_v27  ;;  %v6601_v59 = vsub.f32 %v1406_v9, %v1811_v31  ;;  %v1223_v15 = vld [vmem:[#allocation11 + $0x478] sm:$0xff]  ;;  %v1336_v17 = vadd.f32 %v1144_v4, %v952_v60  ;;  %v1532_v46 = vld [vmem:[#allocation9 + $0x220] sm:$0xff]  ;;  %v1537_v49 = vld [vmem:[#allocation9 + $0x248] sm:$0xff]  ;;  %v6604_v12 = vsub.f32 %v1402_v42, %v1807_v7 }
 0x1a5   : > { %9258 = vst [vmem:[#allocation139_spill] sm:$0xff] %v6587_v40  ;;  %9259 = vst [vmem:[#allocation140_spill] sm:$0xff] %v6589_v32  ;;  %v6599_v50 = vpack.c.bf16 %v6589_v32, %v6587_v40  ;;  %v1340_v36 = vadd.f32 %v1148_v16, %v956_v53  ;;  %v1345_v45 = vadd.f32 %v1153_v13, %v961_v14  ;;  %v9263_v27 = vsub.s32 1, %v6055_v52  ;;  %v1541_v40 = vld [vmem:[#allocation9 + $0x268] sm:$0xff]  ;;  %v1603_v54 = vld [vmem:[#allocation9 + $0x458] sm:$0xff] }
 0x1a6   : > { %9261 = vst [vmem:[#allocation142_spill] sm:$0xff] %v6601_v59  ;;  %9262 = vst [vmem:[#allocation143_spill] sm:$0xff] %v6604_v12  ;;  %v1026_v9 = vmul.f32 %v6080_v26, %v594_v57  ;;  %v1411_v31 = vadd.f32 %v1219_v30, %v1027_v41  ;;  %v598_v60 = vld [vmem:[#allocation8 + $0x470] sm:$0xff]  ;;  %v1349_v4 = vadd.f32 %v1157_v39, %v965_v19  ;;  %v1607_v23 = vld [vmem:[#allocation9 + $0x478] sm:$0xff]  ;;  %v9264_v53 = vsub.s32 0, %v6055_v52 }
 0x1a7   : > { %9260 = vst [vmem:[#allocation141_spill] sm:$0xff] %v6599_v50  ;;  %4825 = vmatprep.subr.bf16.mxu0 %v6599_v50  ;;  %v2457_v32 = vrot.slane %v6594_v25, %v9263_v27  ;;  %v1741_v20 = vmul.f32 %v6076_v21, %v1528_v6  ;;  %v1415_v7 = vadd.f32 %v1223_v15, %v1031_v5  ;;  %v1602_v19 = vld [vmem:[#allocation9 + $0x450] sm:$0xff]  ;;  %v1165_v50 = vld [vmem:[#allocation11 + $0x2a8] sm:$0xff] }
 0x1a8   : > { %v1745_v14 = vmul.f32 %v6076_v21, %v1532_v46  ;;  %v6618_v42 = vrot.slane %v6594_v25, %v9264_v53  ;;  %v1750_v16 = vmul.f32 %v6068_v8, %v1537_v49  ;;  %v6625_v57 = vpack.c.bf16 %v6601_v59, %v6604_v12  ;;  %v1606_v30 = vld [vmem:[#allocation9 + $0x470] sm:$0xff]  ;;  %v603_v49 = vld [vmem:[#allocation8 + $0x498] sm:$0xff]  ;;  %v537_v53 = vld [vmem:[#allocation8 + $0x288] sm:$0xff] }
 0x1a9   : > { %4782 = vmatprep.mubr.msk.f32.mxu1 %vm2447_vm0, %v2457_v32  ;;  %v6621_v26 = vsub.f32 %v1336_v17, %v1741_v20  ;;  %v1754_v41 = vmul.f32 %v6068_v8, %v1541_v40  ;;  %v1816_v13 = vmul.f32 %v6517_v2, %v1603_v54  ;;  %4778 = vmatprep.mubr.msk.f32.mxu0 %vm2447_vm0, %v2457_v32  ;;  %v1218_v40 = vld [vmem:[#allocation11 + $0x450] sm:$0xff]  ;;  %v528_v54 = vld [vmem:[#allocation8 + $0x240] sm:$0xff]  ;;  %v557_v10 = vld [vmem:[#allocation8 + $0x328] sm:$0xff] }
 0x1aa   : > { %9265 = vst [vmem:[#allocation144_spill] sm:$0xff] %v6618_v42  ;;  %9267 = vst [vmem:[#allocation146_spill] sm:$0xff] %v6625_v57  ;;  %v1030_v5 = vmul.f32 %v6084_v34, %v598_v60  ;;  %v6632_v39 = vsub.f32 %v1340_v36, %v1745_v14  ;;  %4783 = vmatmul.mubr.msk.f32.vlgmr.msra.gmra.mrb[0].mxu1 %vm2447_vm0, %v6618_v42  ;;  %v6637_v20 = vsub.f32 %v1345_v45, %v1750_v16  ;;  %v1222_v15 = vld [vmem:[#allocation11 + $0x470] sm:$0xff]  ;;  %v532_v34 = vld [vmem:[#allocation8 + $0x260] sm:$0xff]  ;;  %v6658_v16 = vpop.permute.xlu0 %750 }
 0x1ab   : > { %9266 = vst [vmem:[#allocation145_spill] sm:$0xff] %v6621_v26  ;;  %v1820_v6 = vmul.f32 %v6517_v2, %v1607_v23  ;;  %4955 = vmatpush1.bf16.xpose.msra.mxu1 %v6625_v57  ;;  %v6641_v32 = vsub.f32 %v1349_v4, %v1754_v41  ;;  %v6643_v17 = vsub.f32 %v1411_v31, %v1816_v13  ;;  %v1610_v31 = vld [vmem:[#allocation9 + $0x490] sm:$0xff]  ;;  %9275 = vst [vmem:[#allocation154_spill] sm:$0xff] %v6658_v16  ;;  %v541_v41 = vld [vmem:[#allocation8 + $0x2a8] sm:$0xff] }
 0x1ac   : > { %9268 = vst [vmem:[#allocation147_spill] sm:$0xff] %v6632_v39  ;;  %9269 = vst [vmem:[#allocation148_spill] sm:$0xff] %v6637_v20  ;;  %v6647_v36 = vpack.c.bf16 %v6632_v39, %v6621_v26  ;;  %v1815_v45 = vmul.f32 %v6556_v18, %v1602_v19  ;;  %v1819_v23 = vmul.f32 %v6556_v18, %v1606_v30  ;;  %v602_v19 = vld [vmem:[#allocation8 + $0x490] sm:$0xff]  ;;  %v607_v30 = vld [vmem:[#allocation8 + $0x4b8] sm:$0xff] }
 0x1ad   : > { %9270 = vst [vmem:[#allocation149_spill] sm:$0xff] %v6641_v32  ;;  %9271 = vst [vmem:[#allocation150_spill] sm:$0xff] %v6643_v17  ;;  %v6649_v46 = vsub.f32 %v1415_v7, %v1820_v6  ;;  %v6655_v27 = vpack.c.bf16 %v6641_v32, %v6637_v20  ;;  %v1410_v60 = vadd.f32 %v1218_v40, %v1026_v9  ;;  %v6660_v7 = vpop.permute.xlu1 %755  ;;  %v1614_v6 = vld [vmem:[#allocation9 + $0x4b0] sm:$0xff]  ;;  %v1152_v9 = vld [vmem:[#allocation11 + $0x240] sm:$0xff] }
 0x1ae   : > { %9272 = vst [vmem:[#allocation151_spill] sm:$0xff] %v6647_v36  ;;  %v1414_v4 = vadd.f32 %v1222_v15, %v1030_v5  ;;  %v960_v14 = vmul.f32 %v6574_v56, %v528_v54  ;;  %9276 = vst [vmem:[#allocation155_spill] sm:$0xff] %v6660_v7  ;;  %4827 = vmatpush1.bf16.xpose.msra.mxu0 %v6647_v36  ;;  %v964_v5 = vmul.f32 %v6578_v22, %v532_v34  ;;  %v1227_v40 = vld [vmem:[#allocation11 + $0x498] sm:$0xff]  ;;  %v1618_v15 = vld [vmem:[#allocation9 + $0x4d0] sm:$0xff] }
 0x1af   : > { %9273 = vst [vmem:[#allocation152_spill] sm:$0xff] %v6649_v46  ;;  %9274 = vst [vmem:[#allocation153_spill] sm:$0xff] %v6655_v27  ;;  %v6665_v13 = vpack.c.bf16 %v6649_v46, %v6643_v17  ;;  %4829 = vmatprep.subr.bf16.mxu0 %v6655_v27  ;;  %v1622_v54 = vld [vmem:[#allocation9 + $0x4f0] sm:$0xff]  ;;  %v1156_v59 = vld [vmem:[#allocation11 + $0x260] sm:$0xff]  ;;  %v6671_v12 = vmul.f32 %v6556_v18, %v1610_v31  ;;  %v1035_v46 = vmul.f32 %v6142_v43, %v603_v49 }
 0x1b0   : > { %v606_v17 = vld [vmem:[#allocation8 + $0x4b0] sm:$0xff]  ;;  %v969_v20 = vmul.f32 %v6658_v16, %v537_v53  ;;  %v973_v57 = vmul.f32 %v6660_v7, %v541_v41  ;;  %v1536_v34 = vld [vmem:[#allocation9 + $0x240] sm:$0xff]  ;;  %v6676_v39 = vsub.f32 %v1410_v60, %v1815_v45  ;;  %v6678_v26 = vsub.f32 %v1414_v4, %v1819_v23  ;;  %v1231_v56 = vld [vmem:[#allocation11 + $0x4b8] sm:$0xff] }
 0x1b1   : > { %9277 = vst [vmem:[#allocation156_spill] sm:$0xff] %v6665_v13  ;;  %4957 = vmatprep.subr.bf16.mxu1 %v6665_v13  ;;  %v1626_v32 = vld [vmem:[#allocation9 + $0x510] sm:$0xff]  ;;  %v1039_v27 = vmul.f32 %v6149_v55, %v607_v30  ;;  %v1344_v36 = vadd.f32 %v1152_v9, %v960_v14  ;;  %v1161_v13 = vld [vmem:[#allocation11 + $0x288] sm:$0xff]  ;;  %v1540_v31 = vld [vmem:[#allocation9 + $0x260] sm:$0xff]  ;;  %v6682_v49 = vmul.f32 %v6556_v18, %v1614_v6 }
 0x1b2   : > { %9278 = vst [vmem:[#allocation157_spill] sm:$0xff] %v6676_v39  ;;  %9279 = vst [vmem:[#allocation158_spill] sm:$0xff] %v6678_v26  ;;  %v1226_v22 = vld [vmem:[#allocation11 + $0x490] sm:$0xff]  ;;  %v6685_v53 = vmul.f32 %v6556_v18, %v1618_v15  ;;  %v6688_v45 = vmul.f32 %v6556_v18, %v1622_v54  ;;  %v1348_v23 = vadd.f32 %v1156_v59, %v964_v5  ;;  %v1545_v30 = vld [vmem:[#allocation9 + $0x288] sm:$0xff] }
 0x1b3   : > { %v610_v42 = vld [vmem:[#allocation8 + $0x4d0] sm:$0xff]  ;;  %v1034_v60 = vmul.f32 %v6142_v43, %v602_v19  ;;  %v1038_v4 = vmul.f32 %v6149_v55, %v606_v17  ;;  %v6693_v14 = vmul.f32 %v6556_v18, %v1626_v32  ;;  %v1749_v41 = vmul.f32 %v6076_v21, %v1536_v34  ;;  %v1549_v6 = vld [vmem:[#allocation9 + $0x2a8] sm:$0xff]  ;;  %v1611_v9 = vld [vmem:[#allocation9 + $0x498] sm:$0xff] }
 0x1b4   : > { %v1419_v48 = vadd.f32 %v1227_v40, %v1035_v46  ;;  %v1630_v15 = vld [vmem:[#allocation9 + $0x530] sm:$0xff]  ;;  %v1353_v24 = vadd.f32 %v1161_v13, %v969_v20  ;;  %v1357_v38 = vadd.f32 %v1165_v50, %v973_v57  ;;  %v1753_v54 = vmul.f32 %v6076_v21, %v1540_v31  ;;  %v1615_v59 = vld [vmem:[#allocation9 + $0x4b8] sm:$0xff] }
 0x1b5   : > { %v1423_v5 = vadd.f32 %v1231_v56, %v1039_v27  ;;  %v1042_v43 = vmul.f32 %v6202_v37, %v610_v42  ;;  %v6698_v55 = vsub.f32 %v1344_v36, %v1749_v41  ;;  %v6702_v32 = vpack.c.bf16 %v6678_v26, %v6676_v39  ;;  %v614_v17 = vld [vmem:[#allocation8 + $0x4f0] sm:$0xff]  ;;  %v611_v42 = vld [vmem:[#allocation8 + $0x4d8] sm:$0xff] }
 0x1b6   : > { %v618_v19 = vld [vmem:[#allocation8 + $0x510] sm:$0xff]  ;;  %v6704_v46 = vsub.f32 %v1348_v23, %v1753_v54  ;;  %v1758_v20 = vmul.f32 %v6068_v8, %v1545_v30  ;;  %v1762_v50 = vmul.f32 %v6068_v8, %v1549_v6  ;;  %v1824_v57 = vmul.f32 %v6517_v2, %v1611_v9 }
 0x1b7   : > { %9280 = vst [vmem:[#allocation159_spill] sm:$0xff] %v6698_v55  ;;  %9281 = vst [vmem:[#allocation160_spill] sm:$0xff] %v6702_v32  ;;  %v1634_v34 = vld [vmem:[#allocation9 + $0x550] sm:$0xff]  ;;  %v1418_v56 = vadd.f32 %v1226_v22, %v1034_v60  ;;  %v1422_v27 = vadd.f32 %v1230_v61, %v1038_v4  ;;  %v6710_v40 = vmul.f32 %v6556_v18, %v1630_v15  ;;  %4959 = vmatpush1.bf16.xpose.msra.mxu1 %v6702_v32  ;;  %v1235_v60 = vld [vmem:[#allocation11 + $0x4d8] sm:$0xff] }
 0x1b8   : > { %9282 = vst [vmem:[#allocation161_spill] sm:$0xff] %v6704_v46  ;;  %v1234_v36 = vld [vmem:[#allocation11 + $0x4d0] sm:$0xff]  ;;  %v1828_v31 = vmul.f32 %v6517_v2, %v1615_v59  ;;  %v6716_v30 = vpack.c.bf16 %v6704_v46, %v6698_v55  ;;  %v6718_v6 = vsub.f32 %v1353_v24, %v1758_v20  ;;  %v6720_v61 = vsub.f32 %v1357_v38, %v1762_v50  ;;  %v615_v4 = vld [vmem:[#allocation8 + $0x4f8] sm:$0xff] }
 0x1b9   : > { %v622_v13 = vld [vmem:[#allocation8 + $0x530] sm:$0xff]  ;;  %v6722_v22 = vsub.f32 %v1419_v48, %v1824_v57  ;;  %v1046_v15 = vmul.f32 %v6206_v44, %v614_v17  ;;  %v1050_v59 = vmul.f32 %v6262_v3, %v618_v19  ;;  %v6727_v26 = vmul.f32 %v6556_v18, %v1634_v34  ;;  %v619_v38 = vld [vmem:[#allocation8 + $0x518] sm:$0xff] }
 0x1ba   : > { %v626_v23 = vld [vmem:[#allocation8 + $0x550] sm:$0xff]  ;;  %9283 = vst [vmem:[#allocation162_spill] sm:$0xff] %v6716_v30  ;;  %9284 = vst [vmem:[#allocation163_spill] sm:$0xff] %v6718_v6  ;;  %v6729_v32 = vsub.f32 %v1423_v5, %v1828_v31  ;;  %v1043_v24 = vmul.f32 %v6202_v37, %v611_v42  ;;  %v1426_v20 = vadd.f32 %v1234_v36, %v1042_v43  ;;  %v623_v48 = vld [vmem:[#allocation8 + $0x538] sm:$0xff]  ;;  %4831 = vmatpush1.bf16.xpose.msra.mxu0 %v6716_v30  ;;  %v6745_v42 = vpop.permute.xlu0 %760 }
 0x1bb   : > { %v1638_v41 = vld [vmem:[#allocation9 + $0x570] sm:$0xff]  ;;  %9285 = vst [vmem:[#allocation164_spill] sm:$0xff] %v6720_v61  ;;  %9286 = vst [vmem:[#allocation165_spill] sm:$0xff] %v6722_v22  ;;  %v1054_v57 = vmul.f32 %v6268_v62, %v622_v13  ;;  %v6736_v17 = vpack.c.bf16 %v6720_v61, %v6718_v6  ;;  %v1239_v19 = vld [vmem:[#allocation11 + $0x4f8] sm:$0xff]  ;;  %v1058_v5 = vmul.f32 %v6322_v29, %v626_v23 }
 0x1bc   : > { %v1642_v54 = vld [vmem:[#allocation9 + $0x590] sm:$0xff]  ;;  %9287 = vst [vmem:[#allocation166_spill] sm:$0xff] %v6729_v32  ;;  %v627_v46 = vld [vmem:[#allocation8 + $0x558] sm:$0xff]  ;;  %v6740_v37 = vmul.f32 %v6556_v18, %v1638_v41  ;;  %9289 = vst [vmem:[#allocation168_spill] sm:$0xff] %v6745_v42  ;;  %v6749_v36 = vpack.c.bf16 %v6729_v32, %v6722_v22  ;;  %v6752_v13 = vsub.f32 %v1418_v56, %v6671_v12 }
 0x1bd   : > { %v1238_v9 = vld [vmem:[#allocation11 + $0x4f0] sm:$0xff]  ;;  %9288 = vst [vmem:[#allocation167_spill] sm:$0xff] %v6736_v17  ;;  %v6743_v43 = vmul.f32 %v6556_v18, %v1642_v54  ;;  %v6755_v31 = vsub.f32 %v1422_v27, %v6682_v49  ;;  %v1047_v23 = vmul.f32 %v6206_v44, %v615_v4  ;;  %v536_v61 = vld [vmem:[#allocation8 + $0x280] sm:$0xff]  ;;  %v545_v6 = vld [vmem:[#allocation8 + $0x2c8] sm:$0xff]  ;;  %4833 = vmatprep.subr.bf16.mxu0 %v6736_v17  ;;  %v6764_v27 = vpop.permute.xlu1 %765 }
 0x1be   : > { %v1646_v39 = vld [vmem:[#allocation9 + $0x5b0] sm:$0xff]  ;;  %9290 = vst [vmem:[#allocation169_spill] sm:$0xff] %v6749_v36  ;;  %9291 = vst [vmem:[#allocation170_spill] sm:$0xff] %v6752_v13  ;;  %v540_v54 = vld [vmem:[#allocation8 + $0x2a0] sm:$0xff]  ;;  %v1430_v30 = vadd.f32 %v1238_v9, %v1046_v15  ;;  %v1051_v32 = vmul.f32 %v6262_v3, %v619_v38  ;;  %v1055_v12 = vmul.f32 %v6268_v62, %v623_v48  ;;  %4961 = vmatprep.subr.bf16.mxu1 %v6749_v36 }
 0x1bf   : > { %v1242_v50 = vld [vmem:[#allocation11 + $0x510] sm:$0xff]  ;;  %9292 = vst [vmem:[#allocation171_spill] sm:$0xff] %v6755_v31  ;;  %v6759_v41 = vmul.f32 %v6556_v18, %v1646_v39  ;;  %v549_v49 = vld [vmem:[#allocation8 + $0x2e8] sm:$0xff]  ;;  %9293 = vst [vmem:[#allocation172_spill] sm:$0xff] %v6764_v27  ;;  %v6767_v44 = vadd.f32 %v1235_v60, %v1043_v24  ;;  %v6770_v39 = vsub.f32 %v1426_v20, %v6685_v53 }
 0x1c0   : > { %v1246_v34 = vld [vmem:[#allocation11 + $0x530] sm:$0xff]  ;;  %v1434_v22 = vadd.f32 %v1242_v50, %v1050_v59  ;;  %v1243_v4 = vld [vmem:[#allocation11 + $0x518] sm:$0xff]  ;;  %v1059_v3 = vmul.f32 %v6322_v29, %v627_v46  ;;  %v968_v50 = vmul.f32 %v6658_v16, %v536_v61  ;;  %v972_v48 = vmul.f32 %v6660_v7, %v540_v54  ;;  %v548_v24 = vld [vmem:[#allocation8 + $0x2e0] sm:$0xff] }
 0x1c1   : > { %v1250_v55 = vld [vmem:[#allocation11 + $0x550] sm:$0xff]  ;;  %9294 = vst [vmem:[#allocation173_spill] sm:$0xff] %v6770_v39  ;;  %v1247_v17 = vld [vmem:[#allocation11 + $0x538] sm:$0xff]  ;;  %v1438_v9 = vadd.f32 %v1246_v34, %v1054_v57  ;;  %v977_v60 = vmul.f32 %v6745_v42, %v545_v6  ;;  %v6776_v36 = vadd.f32 %v1239_v19, %v1047_v23  ;;  %v1063_v20 = vmul.f32 %v6326_v63, %v631_v33  ;;  %v1160_v57 = vld [vmem:[#allocation11 + $0x280] sm:$0xff] }
 0x1c2   : > { %v630_v56 = vld [vmem:[#allocation8 + $0x570] sm:$0xff]  ;;  %v1251_v15 = vld [vmem:[#allocation11 + $0x558] sm:$0xff]  ;;  %v1442_v59 = vadd.f32 %v1250_v55, %v1058_v5  ;;  %v1164_v34 = vld [vmem:[#allocation11 + $0x2a0] sm:$0xff]  ;;  %v981_v55 = vmul.f32 %v6764_v27, %v549_v49  ;;  %v6782_v46 = vsub.f32 %v1430_v30, %v6688_v45  ;;  %v6784_v61 = vadd.f32 %v1243_v4, %v1051_v32 }
 0x1c3   : > { %v1254_v62 = vld [vmem:[#allocation11 + $0x570] sm:$0xff]  ;;  %v1255_v38 = vld [vmem:[#allocation11 + $0x578] sm:$0xff]  ;;  %v1062_v53 = vmul.f32 %v6326_v63, %v630_v56  ;;  %v1169_v29 = vld [vmem:[#allocation11 + $0x2c8] sm:$0xff]  ;;  %v6787_v5 = vsub.f32 %v1434_v22, %v6693_v14  ;;  %v6789_v6 = vadd.f32 %v1247_v17, %v1055_v12  ;;  %v6791_v56 = vpop.permute.xlu0 %770  ;;  %v6794_v63 = vsub.f32 %v1438_v9, %v6710_v40  ;;  %v6803_v40 = vpop.permute.xlu1 %775 }
 0x1c4   : > { %9295 = vst [vmem:[#allocation174_spill] sm:$0xff] %v6782_v46  ;;  %v1168_v19 = vld [vmem:[#allocation11 + $0x2c0] sm:$0xff]  ;;  %v1173_v23 = vld [vmem:[#allocation11 + $0x2e8] sm:$0xff]  ;;  %v6796_v33 = vadd.f32 %v1251_v15, %v1059_v3  ;;  %v976_v45 = vmul.f32 %v6745_v42, %v544_v11  ;;  %v980_v32 = vmul.f32 %v6764_v27, %v548_v24  ;;  %v6801_v22 = vsub.f32 %v1442_v59, %v6727_v26 }
 0x1c5   : > { %9296 = vst [vmem:[#allocation175_spill] sm:$0xff] %v6787_v5  ;;  %v553_v54 = vld [vmem:[#allocation8 + $0x308] sm:$0xff]  ;;  %9297 = vst [vmem:[#allocation176_spill] sm:$0xff] %v6794_v63  ;;  %v1544_v30 = vld [vmem:[#allocation9 + $0x280] sm:$0xff]  ;;  %v1352_v17 = vadd.f32 %v1160_v57, %v968_v50  ;;  %v1356_v12 = vadd.f32 %v1164_v34, %v972_v48  ;;  %v1361_v4 = vadd.f32 %v1169_v29, %v977_v60 }
 0x1c6   : > { %v1548_v49 = vld [vmem:[#allocation9 + $0x2a0] sm:$0xff]  ;;  %v1553_v14 = vld [vmem:[#allocation9 + $0x2c8] sm:$0xff]  ;;  %9298 = vst [vmem:[#allocation177_spill] sm:$0xff] %v6801_v22  ;;  %9299 = vst [vmem:[#allocation178_spill] sm:$0xff] %v6803_v40  ;;  %v6805_v9 = vadd.f32 %v1254_v62, %v1062_v53  ;;  %v6807_v15 = vadd.f32 %v1255_v38, %v1063_v20  ;;  %v1365_v11 = vadd.f32 %v1173_v23, %v981_v55 }
 0x1c7   : > { %v1172_v7 = vld [vmem:[#allocation11 + $0x2e0] sm:$0xff]  ;;  %v1177_v3 = vld [vmem:[#allocation11 + $0x308] sm:$0xff]  ;;  %v985_v24 = vmul.f32 %v6791_v56, %v553_v54  ;;  %v1757_v26 = vmul.f32 %v6076_v21, %v1544_v30  ;;  %v1761_v59 = vmul.f32 %v6076_v21, %v1548_v49  ;;  %v6814_v50 = vpack.c.bf16 %v6755_v31, %v6752_v13  ;;  %v1619_v62 = vld [vmem:[#allocation9 + $0x4d8] sm:$0xff]  ;;  %v6832_v31 = vpop.permute.xlu1 %785 }
 0x1c8   : > { %v552_v16 = vld [vmem:[#allocation8 + $0x300] sm:$0xff]  ;;  %v1557_v27 = vld [vmem:[#allocation9 + $0x2e8] sm:$0xff]  ;;  %v1766_v48 = vmul.f32 %v6068_v8, %v1553_v14  ;;  %v1623_v60 = vld [vmem:[#allocation9 + $0x4f8] sm:$0xff]  ;;  %v1360_v38 = vadd.f32 %v1168_v19, %v976_v45  ;;  %v1364_v53 = vadd.f32 %v1172_v7, %v980_v32  ;;  %v989_v57 = vmul.f32 %v6803_v40, %v557_v10  ;;  %v6828_v45 = vpop.permute.xlu0 %780 }
 0x1c9   : > { %v556_v42 = vld [vmem:[#allocation8 + $0x320] sm:$0xff]  ;;  %9300 = vst [vmem:[#allocation179_spill] sm:$0xff] %v6814_v50  ;;  %v984_v20 = vmul.f32 %v6791_v56, %v552_v16  ;;  %v1181_v55 = vld [vmem:[#allocation11 + $0x328] sm:$0xff]  ;;  %v6819_v23 = vsub.f32 %v1352_v17, %v1757_v26  ;;  %v6821_v54 = vsub.f32 %v1356_v12, %v1761_v59  ;;  %4963 = vmatpush1.bf16.xpose.msra.mxu1 %v6814_v50  ;;  %v1627_v12 = vld [vmem:[#allocation9 + $0x518] sm:$0xff] }
 0x1ca   : > { %v1552_v34 = vld [vmem:[#allocation9 + $0x2c0] sm:$0xff]  ;;  %v1770_v30 = vmul.f32 %v6068_v8, %v1557_v27  ;;  %v6825_v49 = vsub.f32 %v1361_v4, %v1766_v48  ;;  %v1561_v14 = vld [vmem:[#allocation9 + $0x308] sm:$0xff]  ;;  %v1369_v19 = vadd.f32 %v1177_v3, %v985_v24  ;;  %v988_v7 = vmul.f32 %v6803_v40, %v556_v42  ;;  %v634_v26 = vld [vmem:[#allocation8 + $0x590] sm:$0xff] }
 0x1cb   : > { %v1556_v29 = vld [vmem:[#allocation9 + $0x2e0] sm:$0xff]  ;;  %9301 = vst [vmem:[#allocation180_spill] sm:$0xff] %v6819_v23  ;;  %9302 = vst [vmem:[#allocation181_spill] sm:$0xff] %v6821_v54  ;;  %v561_v16 = vld [vmem:[#allocation8 + $0x348] sm:$0xff]  ;;  %v1832_v10 = vmul.f32 %v6517_v2, %v1619_v62  ;;  %v1836_v32 = vmul.f32 %v6517_v2, %v1623_v60  ;;  %v6836_v27 = vpack.c.bf16 %v6821_v54, %v6819_v23 }
 0x1cc   : > { %9303 = vst [vmem:[#allocation182_spill] sm:$0xff] %v6825_v49  ;;  %v1565_v17 = vld [vmem:[#allocation9 + $0x328] sm:$0xff]  ;;  %v6838_v4 = vsub.f32 %v1365_v11, %v1770_v30  ;;  %v1765_v42 = vmul.f32 %v6076_v21, %v1552_v34  ;;  %v1769_v3 = vmul.f32 %v6076_v21, %v1556_v29  ;;  %v1631_v24 = vld [vmem:[#allocation9 + $0x538] sm:$0xff]  ;;  %v1373_v48 = vadd.f32 %v1181_v55, %v989_v57  ;;  %v1176_v40 = vld [vmem:[#allocation11 + $0x300] sm:$0xff] }
 0x1cd   : > { %v565_v59 = vld [vmem:[#allocation8 + $0x368] sm:$0xff]  ;;  %v6843_v62 = vsub.f32 %v6767_v44, %v1832_v10  ;;  %v6846_v60 = vsub.f32 %v6776_v36, %v1836_v32  ;;  %v1774_v13 = vmul.f32 %v6068_v8, %v1561_v14  ;;  %v635_v50 = vld [vmem:[#allocation8 + $0x598] sm:$0xff]  ;;  %v993_v54 = vmul.f32 %v6828_v45, %v561_v16  ;;  %4835 = vmatpush1.bf16.xpose.msra.mxu0 %v6836_v27  ;;  %v1180_v36 = vld [vmem:[#allocation11 + $0x320] sm:$0xff] }
 0x1ce   : > { %9304 = vst [vmem:[#allocation183_spill] sm:$0xff] %v6838_v4  ;;  %v6853_v11 = vpack.c.bf16 %v6838_v4, %v6825_v49  ;;  %v1778_v57 = vmul.f32 %v6068_v8, %v1565_v17  ;;  %v1840_v44 = vmul.f32 %v6517_v2, %v1627_v12  ;;  %v1066_v34 = vmul.f32 %v6386_v35, %v634_v26  ;;  %v1185_v29 = vld [vmem:[#allocation11 + $0x348] sm:$0xff]  ;;  %v1635_v16 = vld [vmem:[#allocation9 + $0x558] sm:$0xff] }
 0x1cf   : > { %9305 = vst [vmem:[#allocation184_spill] sm:$0xff] %v6843_v62  ;;  %9306 = vst [vmem:[#allocation185_spill] sm:$0xff] %v6846_v60  ;;  %v997_v55 = vmul.f32 %v6832_v31, %v565_v59  ;;  %v6861_v30 = vpack.c.bf16 %v6846_v60, %v6843_v62  ;;  %v1844_v14 = vmul.f32 %v6517_v2, %v1631_v24  ;;  %v1189_v10 = vld [vmem:[#allocation11 + $0x368] sm:$0xff]  ;;  %v1560_v59 = vld [vmem:[#allocation9 + $0x300] sm:$0xff] }
 0x1d0   : > { %4837 = vmatprep.subr.bf16.mxu0 %v6853_v11  ;;  %v6865_v32 = vsub.f32 %v1360_v38, %v1765_v42  ;;  %v6867_v17 = vsub.f32 %v1364_v53, %v1769_v3  ;;  %v6871_v12 = vpack.c.bf16 %v6782_v46, %v6770_v39  ;;  %v6874_v26 = vsub.f32 %v6784_v61, %v1840_v44  ;;  %v1639_v60 = vld [vmem:[#allocation9 + $0x578] sm:$0xff]  ;;  %v1564_v53 = vld [vmem:[#allocation9 + $0x320] sm:$0xff]  ;;  %v1569_v42 = vld [vmem:[#allocation9 + $0x348] sm:$0xff] }
 0x1d1   : > { %9307 = vst [vmem:[#allocation186_spill] sm:$0xff] %v6861_v30  ;;  %v1067_v62 = vmul.f32 %v6386_v35, %v635_v50  ;;  %4965 = vmatprep.subr.bf16.mxu1 %v6861_v30  ;;  %v6878_v24 = vsub.f32 %v1369_v19, %v1774_v13  ;;  %v6880_v4 = vsub.f32 %v1373_v48, %v1778_v57  ;;  %v1573_v3 = vld [vmem:[#allocation9 + $0x368] sm:$0xff]  ;;  %v639_v46 = vld [vmem:[#allocation8 + $0x5b8] sm:$0xff]  ;;  %v1258_v50 = vld [vmem:[#allocation11 + $0x590] sm:$0xff] }
 0x1d2   : > { %9308 = vst [vmem:[#allocation187_spill] sm:$0xff] %v6865_v32  ;;  %9309 = vst [vmem:[#allocation188_spill] sm:$0xff] %v6867_v17  ;;  %v6883_v38 = vsub.f32 %v6789_v6, %v1844_v14  ;;  %v1368_v39 = vadd.f32 %v1176_v40, %v984_v20  ;;  %v1372_v61 = vadd.f32 %v1180_v36, %v988_v7  ;;  %4967 = vmatpush1.bf16.xpose.msra.mxu1 %v6871_v12  ;;  %v1259_v49 = vld [vmem:[#allocation11 + $0x598] sm:$0xff]  ;;  %v560_v13 = vld [vmem:[#allocation8 + $0x340] sm:$0xff]  ;;  %v6893_v20 = vpop.permute.xlu0 %790  ;;  %v6895_v7 = vpop.permute.xlu1 %795 }
 0x1d3   : > { %9310 = vst [vmem:[#allocation189_spill] sm:$0xff] %v6871_v12  ;;  %9311 = vst [vmem:[#allocation190_spill] sm:$0xff] %v6874_v26  ;;  %v1377_v44 = vadd.f32 %v1185_v29, %v993_v54  ;;  %v1848_v35 = vmul.f32 %v6517_v2, %v1635_v16  ;;  %v1381_v19 = vadd.f32 %v1189_v10, %v997_v55  ;;  %v564_v14 = vld [vmem:[#allocation8 + $0x360] sm:$0xff]  ;;  %v569_v40 = vld [vmem:[#allocation8 + $0x388] sm:$0xff] }
 0x1d4   : > { %9312 = vst [vmem:[#allocation191_spill] sm:$0xff] %v6878_v24  ;;  %9313 = vst [vmem:[#allocation192_spill] sm:$0xff] %v6880_v4  ;;  %v6889_v48 = vpack.c.bf16 %v6883_v38, %v6874_v26  ;;  %v1773_v6 = vmul.f32 %v6076_v21, %v1560_v59  ;;  %v1852_v57 = vmul.f32 %v6517_v2, %v1639_v60  ;;  %v573_v54 = vld [vmem:[#allocation8 + $0x3a8] sm:$0xff]  ;;  %v638_v10 = vld [vmem:[#allocation8 + $0x5b0] sm:$0xff] }
 0x1d5   : > { %9314 = vst [vmem:[#allocation193_spill] sm:$0xff] %v6883_v38  ;;  %v6899_v36 = vpack.c.bf16 %v6867_v17, %v6865_v32  ;;  %v1777_v29 = vmul.f32 %v6076_v21, %v1564_v53  ;;  %v1782_v55 = vmul.f32 %v6068_v8, %v1569_v42  ;;  %v1786_v16 = vmul.f32 %v6068_v8, %v1573_v3  ;;  %v1263_v59 = vld [vmem:[#allocation11 + $0x5b8] sm:$0xff] }
 0x1d6   : > { %9315 = vst [vmem:[#allocation194_spill] sm:$0xff] %v6889_v48  ;;  %v1071_v60 = vmul.f32 %v6390_v0, %v639_v46  ;;  %v6907_v38 = vpack.c.bf16 %v6880_v4, %v6878_v24  ;;  %4969 = vmatprep.subr.bf16.mxu1 %v6889_v48  ;;  %v6911_v26 = vsub.f32 %v6796_v33, %v1848_v35  ;;  %v643_v46 = vld [vmem:[#allocation8 + $0x5d8] sm:$0xff]  ;;  %v1184_v33 = vld [vmem:[#allocation11 + $0x340] sm:$0xff] }
 0x1d7   : > { %v6914_v12 = vsub.f32 %v6807_v15, %v1852_v57  ;;  %v6918_v53 = vsub.f32 %v6805_v9, %v6740_v37  ;;  %v6920_v42 = vadd.f32 %v1258_v50, %v1066_v34  ;;  %v1451_v3 = vadd.f32 %v1259_v49, %v1067_v62  ;;  %4839 = vmatpush1.bf16.xpose.msra.mxu0 %v6899_v36  ;;  %v1643_v4 = vld [vmem:[#allocation9 + $0x598] sm:$0xff]  ;;  %v1188_v35 = vld [vmem:[#allocation11 + $0x360] sm:$0xff]  ;;  %v1193_v49 = vld [vmem:[#allocation11 + $0x388] sm:$0xff] }
 0x1d8   : > { %9316 = vst [vmem:[#allocation195_spill] sm:$0xff] %v6911_v26  ;;  %v992_v17 = vmul.f32 %v6828_v45, %v560_v13  ;;  %v1647_v24 = vld [vmem:[#allocation9 + $0x5b8] sm:$0xff]  ;;  %v996_v15 = vmul.f32 %v6832_v31, %v564_v14  ;;  %v1001_v57 = vmul.f32 %v6893_v20, %v569_v40  ;;  %v1005_v37 = vmul.f32 %v6895_v7, %v573_v54  ;;  %v1197_v62 = vld [vmem:[#allocation11 + $0x3a8] sm:$0xff]  ;;  %v1568_v14 = vld [vmem:[#allocation9 + $0x340] sm:$0xff] }
 0x1d9   : > { %9317 = vst [vmem:[#allocation196_spill] sm:$0xff] %v6914_v12  ;;  %9318 = vst [vmem:[#allocation197_spill] sm:$0xff] %v6918_v53  ;;  %v647_v48 = vld [vmem:[#allocation8 + $0x5f8] sm:$0xff]  ;;  %4841 = vmatprep.subr.bf16.mxu0 %v6907_v38  ;;  %v6928_v9 = vsub.f32 %v1368_v39, %v1773_v6  ;;  %v6930_v34 = vsub.f32 %v1372_v61, %v1777_v29  ;;  %v6934_v50 = vpack.c.bf16 %v6794_v63, %v6787_v5  ;;  %v1572_v39 = vld [vmem:[#allocation9 + $0x360] sm:$0xff] }
 0x1da   : > { %v6936_v13 = vsub.f32 %v1377_v44, %v1782_v55  ;;  %v6938_v32 = vsub.f32 %v1381_v19, %v1786_v16  ;;  %v1455_v40 = vadd.f32 %v1263_v59, %v1071_v60  ;;  %v6942_v54 = vpack.c.bf16 %v6914_v12, %v6911_v26  ;;  %v1577_v6 = vld [vmem:[#allocation9 + $0x388] sm:$0xff]  ;;  %v1262_v29 = vld [vmem:[#allocation11 + $0x5b0] sm:$0xff]  ;;  %v1267_v59 = vld [vmem:[#allocation11 + $0x5d8] sm:$0xff] }
 0x1db   : > { %9319 = vst [vmem:[#allocation198_spill] sm:$0xff] %v6928_v9  ;;  %9320 = vst [vmem:[#allocation199_spill] sm:$0xff] %v6930_v34  ;;  %v1856_v30 = vmul.f32 %v6517_v2, %v1643_v4  ;;  %v1860_v61 = vmul.f32 %v6517_v2, %v1647_v24  ;;  %v1070_v63 = vmul.f32 %v6390_v0, %v638_v10  ;;  %4971 = vmatpush1.bf16.xpose.msra.mxu1 %v6934_v50  ;;  %v1581_v16 = vld [vmem:[#allocation9 + $0x3a8] sm:$0xff]  ;;  %v1271_v60 = vld [vmem:[#allocation11 + $0x5f8] sm:$0xff]  ;;  %v6952_v10 = vpop.permute.xlu0 %800 }
 0x1dc   : > { %9321 = vst [vmem:[#allocation200_spill] sm:$0xff] %v6934_v50  ;;  %9322 = vst [vmem:[#allocation201_spill] sm:$0xff] %v6936_v13  ;;  %v1075_v44 = vmul.f32 %v6450_v28, %v643_v46  ;;  %v1079_v19 = vmul.f32 %v6454_v47, %v647_v48  ;;  %v1376_v55 = vadd.f32 %v1184_v33, %v992_v17  ;;  %v568_v26 = vld [vmem:[#allocation8 + $0x380] sm:$0xff]  ;;  %4973 = vmatprep.subr.bf16.mxu1 %v6942_v54  ;;  %v577_v0 = vld [vmem:[#allocation8 + $0x3c8] sm:$0xff]  ;;  %v6954_v48 = vpop.permute.xlu1 %805 }
 0x1dd   : > { %9323 = vst [vmem:[#allocation202_spill] sm:$0xff] %v6938_v32  ;;  %9324 = vst [vmem:[#allocation203_spill] sm:$0xff] %v6942_v54  ;;  %v1380_v12 = vadd.f32 %v1188_v35, %v996_v15  ;;  %v1385_v5 = vadd.f32 %v1193_v49, %v1001_v57  ;;  %v1389_v23 = vadd.f32 %v1197_v62, %v1005_v37  ;;  %v572_v24 = vld [vmem:[#allocation8 + $0x3a0] sm:$0xff]  ;;  %v581_v46 = vld [vmem:[#allocation8 + $0x3e8] sm:$0xff]  ;;  %v9327_v62 = vsub.s32 3, %v6055_v52 }
 0x1de   : > { %v1781_v4 = vmul.f32 %v6076_v21, %v1568_v14  ;;  %v6958_v17 = vpack.c.bf16 %v6930_v34, %v6928_v9  ;;  %v6962_v33 = vpack.c.bf16 %v6938_v32, %v6936_v13  ;;  %v1785_v35 = vmul.f32 %v6076_v21, %v1572_v39  ;;  %v1651_v39 = vld [vmem:[#allocation9 + $0x5d8] sm:$0xff]  ;;  %v642_v13 = vld [vmem:[#allocation8 + $0x5d0] sm:$0xff] }
 0x1df   : > { %v1790_v15 = vmul.f32 %v6068_v8, %v1577_v6  ;;  %v1794_v57 = vmul.f32 %v6068_v8, %v1581_v16  ;;  %v6967_v37 = vsub.f32 %v1451_v3, %v1856_v30  ;;  %v6969_v49 = vsub.f32 %v1455_v40, %v1860_v61  ;;  %v1655_v6 = vld [vmem:[#allocation9 + $0x5f8] sm:$0xff]  ;;  %v646_v16 = vld [vmem:[#allocation8 + $0x5f0] sm:$0xff]  ;;  %v1192_v30 = vld [vmem:[#allocation11 + $0x380] sm:$0xff] }
 0x1e0   : > { %v6974_v14 = vrot.slane %v6594_v25, %v9327_v62  ;;  %v1454_v54 = vadd.f32 %v1262_v29, %v1070_v63  ;;  %v1459_v50 = vadd.f32 %v1267_v59, %v1075_v44  ;;  %v1463_v34 = vadd.f32 %v1271_v60, %v1079_v19  ;;  %4843 = vmatpush1.bf16.xpose.msra.mxu0 %v6958_v17  ;;  %v1196_v25 = vld [vmem:[#allocation11 + $0x3a0] sm:$0xff]  ;;  %v1585_v63 = vld [vmem:[#allocation9 + $0x3c8] sm:$0xff] }
 0x1e1   : > { %9325 = vst [vmem:[#allocation204_spill] sm:$0xff] %v6967_v37  ;;  %9326 = vst [vmem:[#allocation205_spill] sm:$0xff] %v6969_v49  ;;  %v1000_v32 = vmul.f32 %v6893_v20, %v568_v26  ;;  %v1004_v3 = vmul.f32 %v6895_v7, %v572_v24  ;;  %v1009_v40 = vmul.f32 %v6952_v10, %v577_v0  ;;  %4845 = vmatprep.subr.bf16.mxu0 %v6962_v33  ;;  %v1589_v26 = vld [vmem:[#allocation9 + $0x3e8] sm:$0xff]  ;;  %v1580_v62 = vld [vmem:[#allocation9 + $0x3a0] sm:$0xff] }
 0x1e2   : > { %v1013_v61 = vmul.f32 %v6954_v48, %v581_v46  ;;  %4784 = vmatprep.mubr.msk.f32.mxu1 %vm2447_vm0, %v6974_v14  ;;  %v6985_v29 = vsub.f32 %v1376_v55, %v1781_v4  ;;  %v6987_v44 = vsub.f32 %v1380_v12, %v1785_v35  ;;  %v6991_v19 = vpack.c.bf16 %v6918_v53, %v6801_v22  ;;  %v1201_v60 = vld [vmem:[#allocation11 + $0x3c8] sm:$0xff]  ;;  %v1576_v46 = vld [vmem:[#allocation9 + $0x380] sm:$0xff] }
 0x1e3   : > { %v6993_v59 = vsub.f32 %v1385_v5, %v1790_v15  ;;  %v6995_v24 = vsub.f32 %v1389_v23, %v1794_v57  ;;  %v6999_v0 = vpack.c.bf16 %v6969_v49, %v6967_v37  ;;  %v1864_v55 = vmul.f32 %v6517_v2, %v1651_v39  ;;  %v1205_v15 = vld [vmem:[#allocation11 + $0x3e8] sm:$0xff]  ;;  %v1266_v57 = vld [vmem:[#allocation11 + $0x5d0] sm:$0xff] }
 0x1e4   : > { %9328 = vst [vmem:[#allocation206_spill] sm:$0xff] %v6985_v29  ;;  %9329 = vst [vmem:[#allocation207_spill] sm:$0xff] %v6987_v44  ;;  %v1868_v12 = vmul.f32 %v6517_v2, %v1655_v6  ;;  %v7005_v4 = vsub.f32 %v6920_v42, %v6743_v43  ;;  %v7008_v5 = vsub.f32 %v1454_v54, %v6759_v41  ;;  %4975 = vmatpush1.bf16.xpose.msra.mxu1 %v6991_v19  ;;  %v1650_v49 = vld [vmem:[#allocation9 + $0x5d0] sm:$0xff]  ;;  %v576_v42 = vld [vmem:[#allocation8 + $0x3c0] sm:$0xff] }
 0x1e5   : > { %9330 = vst [vmem:[#allocation208_spill] sm:$0xff] %v6991_v19  ;;  %9331 = vst [vmem:[#allocation209_spill] sm:$0xff] %v6993_v59  ;;  %v1074_v23 = vmul.f32 %v6450_v28, %v642_v13  ;;  %v1078_v35 = vmul.f32 %v6454_v47, %v646_v16  ;;  %v1384_v37 = vadd.f32 %v1192_v30, %v1000_v32  ;;  %4977 = vmatprep.subr.bf16.mxu1 %v6999_v0  ;;  %v1270_v43 = vld [vmem:[#allocation11 + $0x5f0] sm:$0xff]  ;;  %v580_v32 = vld [vmem:[#allocation8 + $0x3e0] sm:$0xff] }
 0x1e6   : > { %9332 = vst [vmem:[#allocation210_spill] sm:$0xff] %v6995_v24  ;;  %9333 = vst [vmem:[#allocation211_spill] sm:$0xff] %v6999_v0  ;;  %v1388_v39 = vadd.f32 %v1196_v25, %v1004_v3  ;;  %v1798_v6 = vmul.f32 %v6068_v8, %v1585_v63  ;;  %v1802_v53 = vmul.f32 %v6068_v8, %v1589_v26  ;;  %v1654_v41 = vld [vmem:[#allocation9 + $0x5f0] sm:$0xff]  ;;  %v463_v25 = vld [vmem:[#allocation8 + $0x38] sm:$0xff] }
 0x1e7   : > { %9334 = vst [vmem:[#allocation212_spill] sm:$0xff] %v7005_v4  ;;  %9335 = vst [vmem:[#allocation213_spill] sm:$0xff] %v7008_v5  ;;  %v1393_v54 = vadd.f32 %v1201_v60, %v1009_v40  ;;  %v7018_v47 = vpack.c.bf16 %v6987_v44, %v6985_v29  ;;  %v1789_v28 = vmul.f32 %v6076_v21, %v1576_v46  ;;  %v1519_v19 = vld [vmem:[#allocation9 + $0x1b8] sm:$0xff]  ;;  %v506_v44 = vld [vmem:[#allocation8 + $0x190] sm:$0xff] }
 0x1e8   : > { %v1793_v13 = vmul.f32 %v6076_v21, %v1580_v62  ;;  %v1397_v16 = vadd.f32 %v1205_v15, %v1013_v61  ;;  %v7024_v30 = vpack.c.bf16 %v6995_v24, %v6993_v59  ;;  %v7026_v8 = vsub.f32 %v1459_v50, %v1864_v55  ;;  %v459_v61 = vld [vmem:[#allocation8 + $0x18] sm:$0xff]  ;;  %v1584_v62 = vld [vmem:[#allocation9 + $0x3c0] sm:$0xff] }
 0x1e9   : > { %v7028_v3 = vsub.f32 %v1463_v34, %v1868_v12  ;;  %v1863_v40 = vmul.f32 %v6556_v18, %v1650_v49  ;;  %4847 = vmatpush1.bf16.xpose.msra.mxu0 %v7018_v47  ;;  %v1458_v63 = vadd.f32 %v1266_v57, %v1074_v23  ;;  %v1867_v26 = vmul.f32 %v6556_v18, %v1654_v41  ;;  %v1200_v23 = vld [vmem:[#allocation11 + $0x3c0] sm:$0xff]  ;;  %v1503_v24 = vld [vmem:[#allocation9 + $0x138] sm:$0xff] }
 0x1ea   : > { %9336 = vst [vmem:[#allocation214_spill] sm:$0xff] %v7026_v8  ;;  %v1462_v60 = vadd.f32 %v1270_v43, %v1078_v35  ;;  %v1008_v46 = vmul.f32 %v6952_v10, %v576_v42  ;;  %4849 = vmatprep.subr.bf16.mxu0 %v7024_v30  ;;  %v1012_v50 = vmul.f32 %v6954_v48, %v580_v32  ;;  %v1204_v15 = vld [vmem:[#allocation11 + $0x3e0] sm:$0xff]  ;;  %v1083_v42 = vld [vmem:[#allocation11 + $0x18] sm:$0xff] }
 0x1eb   : > { %9337 = vst [vmem:[#allocation215_spill] sm:$0xff] %v7028_v3  ;;  %v7036_v55 = vsub.f32 %v1384_v37, %v1789_v28  ;;  %v7038_v34 = vsub.f32 %v1388_v39, %v1793_v13  ;;  %v7042_v49 = vpack.c.bf16 %v7008_v5, %v7005_v4  ;;  %v895_v12 = vmul.f32 %v6061_v58, %v463_v25  ;;  %v1588_v57 = vld [vmem:[#allocation9 + $0x3e0] sm:$0xff]  ;;  %v1087_v37 = vld [vmem:[#allocation11 + $0x38] sm:$0xff] }
 0x1ec   : > { %v7045_v35 = vsub.f32 %v1393_v54, %v1798_v6  ;;  %v7047_v43 = vsub.f32 %v1397_v16, %v1802_v53  ;;  %v7051_v41 = vpack.c.bf16 %v7028_v3, %v7026_v8  ;;  %v1471_v39 = vld [vmem:[#allocation9 + $0x38] sm:$0xff]  ;;  %v891_v28 = vmul.f32 %v6052_v51, %v459_v61  ;;  %v462_v53 = vld [vmem:[#allocation8 + $0x30] sm:$0xff] }
 0x1ed   : > { %9338 = vst [vmem:[#allocation216_spill] sm:$0xff] %v7036_v55  ;;  %9339 = vst [vmem:[#allocation217_spill] sm:$0xff] %v7038_v34  ;;  %4979 = vmatpush1.bf16.xpose.msra.mxu1 %v7042_v49  ;;  %v7055_v13 = vsub.f32 %v1458_v63, %v1863_v40  ;;  %v7057_v32 = vsub.f32 %v1462_v60, %v1867_v26  ;;  %v1797_v6 = vmul.f32 %v6076_v21, %v1584_v62  ;;  %v467_v54 = vld [vmem:[#allocation8 + $0x58] sm:$0xff]  ;;  %v458_v60 = vld [vmem:[#allocation8 + $0x10] sm:$0xff] }
 0x1ee   : > { %9340 = vst [vmem:[#allocation218_spill] sm:$0xff] %v7042_v49  ;;  %9341 = vst [vmem:[#allocation219_spill] sm:$0xff] %v7045_v35  ;;  %4981 = vmatprep.subr.bf16.mxu1 %v7051_v41  ;;  %v1392_v16 = vadd.f32 %v1200_v23, %v1008_v46  ;;  %v1801_v25 = vmul.f32 %v6076_v21, %v1588_v57  ;;  %v1396_v3 = vadd.f32 %v1204_v15, %v1012_v50  ;;  %v1467_v5 = vld [vmem:[#allocation9 + $0x18] sm:$0xff]  ;;  %v9363_v49 = vld [vmem:[#allocation144_spill] sm:$0xff] }
 0x1ef   : > { %9342 = vst [vmem:[#allocation220_spill] sm:$0xff] %v7047_v43  ;;  %9343 = vst [vmem:[#allocation221_spill] sm:$0xff] %v7051_v41  ;;  %v7064_v8 = vpack.c.bf16 %v7038_v34, %v7036_v55  ;;  %v1279_v61 = vadd.f32 %v1087_v37, %v895_v12  ;;  %v471_v40 = vld [vmem:[#allocation8 + $0x78] sm:$0xff]  ;;  %v7068_v63 = vpack.c.bf16 %v7047_v43, %v7045_v35  ;;  %v1470_v12 = vld [vmem:[#allocation9 + $0x30] sm:$0xff]  ;;  %v9353_v43 = vsub.s32 2, %v6055_v52 }
 0x1f0   : > { %9344 = vst [vmem:[#allocation222_spill] sm:$0xff] %v7055_v13  ;;  %9345 = vst [vmem:[#allocation223_spill] sm:$0xff] %v7057_v32  ;;  %v1684_v26 = vmul.f32 %v6517_v2, %v1471_v39  ;;  %v1275_v46 = vadd.f32 %v1083_v42, %v891_v28  ;;  %v894_v21 = vmul.f32 %v6061_v58, %v462_v53  ;;  %v9346_v23 = vld [vmem:[#allocation27_spill] sm:$0xff]  ;;  %v1086_v42 = vld [vmem:[#allocation11 + $0x30] sm:$0xff] }
 0x1f1   : > { %4851 = vmatpush1.bf16.xpose.msra.mxu0 %v7064_v8  ;;  %v899_v62 = vmul.f32 %v6098_v1, %v467_v54  ;;  %v1680_v50 = vmul.f32 %v6517_v2, %v1467_v5  ;;  %v903_v15 = vmul.f32 %v9346_v23, %v471_v40  ;;  %v7077_v57 = vsub.f32 %v1392_v16, %v1797_v6  ;;  %v1091_v28 = vld [vmem:[#allocation11 + $0x58] sm:$0xff]  ;;  %v1082_v6 = vld [vmem:[#allocation11 + $0x10] sm:$0xff]  ;;  %v9499_v52 = vld [vmem:[#allocation97_spill] sm:$0xff] }
 0x1f2   : > { %4853 = vmatprep.subr.bf16.mxu0 %v7068_v63  ;;  %v7079_v37 = vsub.f32 %v1396_v3, %v1801_v25  ;;  %v7083_v39 = vpack.c.bf16 %v7057_v32, %v7055_v13  ;;  %v1095_v58 = vld [vmem:[#allocation11 + $0x78] sm:$0xff]  ;;  %v7085_v53 = vsub.f32 %v1279_v61, %v1684_v26  ;;  %v890_v54 = vmul.f32 %v6052_v51, %v458_v60  ;;  %v1466_v16 = vld [vmem:[#allocation9 + $0x10] sm:$0xff]  ;;  %v9352_v32 = vld [vmem:[#allocation28_spill] sm:$0xff] }
 0x1f3   : > { %9347 = vst [vmem:[#allocation27_spill] sm:$0xff] %v7077_v57  ;;  %v1475_v5 = vld [vmem:[#allocation9 + $0x58] sm:$0xff]  ;;  %v1683_v3 = vmul.f32 %v6556_v18, %v1470_v12  ;;  %v7090_v25 = vsub.f32 %v1275_v46, %v1680_v50  ;;  %v1278_v13 = vadd.f32 %v1086_v42, %v894_v21  ;;  %v1283_v4 = vadd.f32 %v1091_v28, %v899_v62  ;;  %v466_v51 = vld [vmem:[#allocation8 + $0x50] sm:$0xff] }
 0x1f4   : > { %9348 = vst [vmem:[#allocation224_spill] sm:$0xff] %v7079_v37  ;;  %9349 = vst [vmem:[#allocation225_spill] sm:$0xff] %v7083_v39  ;;  %v1479_v40 = vld [vmem:[#allocation9 + $0x78] sm:$0xff]  ;;  %v1287_v22 = vadd.f32 %v1095_v58, %v903_v15  ;;  %v7095_v61 = vpack.c.bf16 %v7079_v37, %v7077_v57  ;;  %v470_v26 = vld [vmem:[#allocation8 + $0x70] sm:$0xff]  ;;  %v1679_v62 = vmul.f32 %v6556_v18, %v1466_v16 }
 0x1f5   : > { %9350 = vst [vmem:[#allocation226_spill] sm:$0xff] %v7085_v53  ;;  %4983 = vmatpush1.bf16.xpose.msra.mxu1 %v7083_v39  ;;  %9351 = vst [vmem:[#allocation227_spill] sm:$0xff] %v7090_v25  ;;  %v475_v60 = vld [vmem:[#allocation8 + $0x98] sm:$0xff]  ;;  %v7104_v46 = vpack.c.bf16 %v7085_v53, %v7090_v25  ;;  %v1692_v21 = vmul.f32 %v6517_v2, %v1479_v40  ;;  %v1274_v50 = vadd.f32 %v1082_v6, %v890_v54  ;;  %v1478_v42 = vld [vmem:[#allocation9 + $0x70] sm:$0xff] }
 0x1f6   : > { %4985 = vmatprep.subr.bf16.mxu1 %v9352_v32  ;;  %v5433_v39 = vld [vmem:[%s5981_s12] sm:$0xf]  ;;  %v1688_v32 = vmul.f32 %v6517_v2, %v1475_v5  ;;  %v7111_v15 = vsub.f32 %v1278_v13, %v1683_v3  ;;  %v902_v28 = vmul.f32 %v9346_v23, %v470_v26  ;;  %v9355_v58 = vld [vmem:[#allocation40_spill] sm:$0xff]  ;;  %v1090_v53 = vld [vmem:[#allocation11 + $0x50] sm:$0xff]  ;;  %s5699_s12 = smov [#allocation13]  }
 0x1f7   : > { %v7100_v35 = vrot.slane %v5433_v39, %v9353_v43  ;;  %v479_v12 = vld [vmem:[#allocation8 + $0xb8] sm:$0xff]  ;;  %v1474_v43 = vld [vmem:[#allocation9 + $0x50] sm:$0xff]  ;;  %v898_v39 = vmul.f32 %v6098_v1, %v466_v51  ;;  %v907_v5 = vmul.f32 %v9355_v58, %v475_v60  ;;  %v7122_v13 = vsub.f32 %v1287_v22, %v1692_v21  ;;  %s5582_s30 = sshll.u32 %s5699_s12, 4  ;;  %s5583_s30 = int_to_ptr.vmem [resolvable:$false] %s5582_s30 }
 0x1f8   : > { %9354 = vst [vmem:[#allocation28_spill] sm:$0xff] %v7111_v15  ;;  %v1094_v40 = vld [vmem:[#allocation11 + $0x70] sm:$0xff]  ;;  %v1099_v25 = vld [vmem:[#allocation11 + $0x98] sm:$0xff]  ;;  %v7120_v6 = vsub.f32 %v1283_v4, %v1688_v32  ;;  %v7124_v3 = vsub.f32 %v1274_v50, %v1679_v62  ;;  %v1687_v37 = vmul.f32 %v6556_v18, %v1474_v43  ;;  %s5584_s8 = scalar_lea.vmem %s5583_s30, 768  ;;  %p5585_p8 = scmp.lt.s32.totalorder %s8358_s10, %s5583_s30 }
 0x1f9   : > { %4855 = vmatpush1.bf16.xpose.msra.mxu0 %v7095_v61  ;;  %v9356_v16 = vld [vmem:[#allocation43_spill] sm:$0xff]  ;;  %v9360_v51 = vld [vmem:[#allocation34_spill] sm:$0xff]  ;;  %v1282_v41 = vadd.f32 %v1090_v53, %v898_v39  ;;  %v1286_v4 = vadd.f32 %v1094_v40, %v902_v28  ;;  %v1291_v22 = vadd.f32 %v1099_v25, %v907_v5  ;;  %p5586_p0 = scmp.lt.s32.totalorder %s5584_s8, %s5578_s9 }
 0x1fa   : > { %4857 = vmatprep.subr.bf16.mxu0 %v7104_v46  ;;  %v911_v54 = vmul.f32 %v9356_v16, %v479_v12  ;;  %9357 = vst [vmem:[#allocation40_spill] sm:$0xff] %v7120_v6  ;;  %9358 = vst [vmem:[#allocation43_spill] sm:$0xff] %v7122_v13  ;;  %v1103_v1 = vld [vmem:[#allocation11 + $0xb8] sm:$0xff]  ;;  %v1691_v12 = vmul.f32 %v6556_v18, %v1478_v42  ;;  %v474_v32 = vld [vmem:[#allocation8 + $0x90] sm:$0xff]  ;;  %v7133_v21 = vpack.c.bf16 %v7111_v15, %v7124_v3 }
 0x1fb   : > { %9359 = vst [vmem:[#allocation228_spill] sm:$0xff] %v7124_v3  ;;  %v9361_v23 = vld [vmem:[#allocation23_spill] sm:$0xff]  ;;  %v478_v62 = vld [vmem:[#allocation8 + $0xb0] sm:$0xff]  ;;  %v7140_v43 = vpack.c.bf16 %v7122_v13, %v7120_v6  ;;  %v906_v39 = vmul.f32 %v9355_v58, %v474_v32  ;;  %v9367_v6 = vld [vmem:[#allocation57_spill] sm:$0xff]  ;;  %p5587_p6 = por %p5586_p0, %p5585_p8 }
 0x1fc   : > { %4785 = vmatmul.mubr.msk.f32.vlgmr.msra.gmra.mrb[0].mxu1 %vm2447_vm0, %v7100_v35  ;;  %v1483_v26 = vld [vmem:[#allocation9 + $0x98] sm:$0xff]  ;;  %v1295_v50 = vadd.f32 %v1103_v1, %v911_v54  ;;  %v7152_v42 = vsub.f32 %v1286_v4, %v1691_v12  ;;  %v1098_v28 = vld [vmem:[#allocation11 + $0x90] sm:$0xff]  ;;  %v910_v40 = vmul.f32 %v9356_v16, %v478_v62  ;;  %v9371_v16 = vld [vmem:[#allocation60_spill] sm:$0xff] }
 0x1fd   : > { %4987 = vmatpush1.bf16.xpose.msra.mxu1 %v9360_v51  ;;  %3159 = vmatprep.mubr.f32.mxu1 %v9361_v23  ;;  %v1487_v60 = vld [vmem:[#allocation9 + $0xb8] sm:$0xff]  ;;  %v1482_v5 = vld [vmem:[#allocation9 + $0x90] sm:$0xff]  ;;  %v1290_v3 = vadd.f32 %v1098_v28, %v906_v39  ;;  %p5588_p12 = pnand %p5587_p6, %p5581_p13 }
 0x1fe   : > { %v9362_v57 = vld [vmem:[#allocation47_spill] sm:$0xff]  ;;  %v1700_v53 = vmul.f32 %v6517_v2, %v1487_v60  ;;  %9365 = vst [vmem:[#allocation23_spill] sm:$0xff] %v7152_v42  ;;  %v9366_v54 = vld [vmem:[#allocation54_spill] sm:$0xff]  ;;  %v1695_v4 = vmul.f32 %v6556_v18, %v1482_v5 }
 0x1ff   : > { %4989 = vmatprep.subr.bf16.mxu1 %v9362_v57  ;;  %v483_v51 = vld [vmem:[#allocation8 + $0xd8] sm:$0xff]  ;;  %v1696_v57 = vmul.f32 %v6517_v2, %v1483_v26  ;;  %v1102_v26 = vld [vmem:[#allocation11 + $0xb0] sm:$0xff] }
 0x200   : > { %4779 = vmatmul.mubr.msk.f32.vlgmr.msra.gmra.mrb[0].mxu0 %vm2447_vm0, %v9363_v49  ;;  %v487_v25 = vld [vmem:[#allocation8 + $0xf8] sm:$0xff]  ;;  %v7150_v49 = vsub.f32 %v1282_v41, %v1687_v37  ;;  %v915_v1 = vmul.f32 %v9366_v54, %v483_v51  ;;  %v1486_v60 = vld [vmem:[#allocation9 + $0xb0] sm:$0xff]  ;;  %v7159_v58 = vsub.f32 %v1295_v50, %v1700_v53  ;;  %v9370_v41 = vld [vmem:[#allocation48_spill] sm:$0xff]  ;;  %v1294_v51 = vadd.f32 %v1102_v26, %v910_v40 }
 0x201   : > { %4859 = vmatpush1.bf16.xpose.msra.mxu0 %v7133_v21  ;;  %4780 = vmatprep.mubr.msk.f32.mxu0 %vm2447_vm0, %v6974_v14  ;;  %v1107_v13 = vld [vmem:[#allocation11 + $0xd8] sm:$0xff]  ;;  %v919_v15 = vmul.f32 %v9367_v6, %v487_v25  ;;  %v7157_v14 = vsub.f32 %v1291_v22, %v1696_v57  ;;  %v1699_v62 = vmul.f32 %v6556_v18, %v1486_v60  ;;  %v482_v50 = vld [vmem:[#allocation8 + $0xd0] sm:$0xff] }
 0x202   : > { %4861 = vmatprep.subr.bf16.mxu0 %v7140_v43  ;;  %9364 = vst [vmem:[#allocation34_spill] sm:$0xff] %v7150_v49  ;;  %9369 = vst [vmem:[#allocation144_spill] sm:$0xff] %v7159_v58  ;;  %v1111_v32 = vld [vmem:[#allocation11 + $0xf8] sm:$0xff]  ;;  %v1299_v34 = vadd.f32 %v1107_v13, %v915_v1  ;;  %v7167_v22 = vpack.c.bf16 %v7152_v42, %v7150_v49  ;;  %v486_v57 = vld [vmem:[#allocation8 + $0xf0] sm:$0xff]  ;;  %v7176_v13 = vsub.f32 %v1290_v3, %v1695_v4 }
 0x203   : > { %9368 = vst [vmem:[#allocation47_spill] sm:$0xff] %v7157_v14  ;;  %v1491_v37 = vld [vmem:[#allocation9 + $0xd8] sm:$0xff]  ;;  %v1303_v53 = vadd.f32 %v1111_v32, %v919_v15  ;;  %v7179_v40 = vsub.f32 %v1294_v51, %v1699_v62  ;;  %v1490_v1 = vld [vmem:[#allocation9 + $0xd0] sm:$0xff]  ;;  %v914_v15 = vmul.f32 %v9366_v54, %v482_v50  ;;  %v918_v60 = vmul.f32 %v9367_v6, %v486_v57  ;;  %v9374_v32 = vld [vmem:[#allocation68_spill] sm:$0xff] }
 0x204   : > { %v1495_v12 = vld [vmem:[#allocation9 + $0xf8] sm:$0xff]  ;;  %v1704_v39 = vmul.f32 %v6517_v2, %v1491_v37  ;;  %9372 = vst [vmem:[#allocation54_spill] sm:$0xff] %v7176_v13  ;;  %v1494_v26 = vld [vmem:[#allocation9 + $0xf0] sm:$0xff]  ;;  %v1703_v54 = vmul.f32 %v6556_v18, %v1490_v1 }
 0x205   : > { %4991 = vmatpush1.bf16.xpose.msra.mxu1 %v9370_v41  ;;  %v491_v25 = vld [vmem:[#allocation8 + $0x118] sm:$0xff]  ;;  %v7171_v41 = vpack.c.bf16 %v7159_v58, %v7157_v14  ;;  %v1708_v28 = vmul.f32 %v6517_v2, %v1495_v12  ;;  %9373 = vst [vmem:[#allocation57_spill] sm:$0xff] %v7179_v40  ;;  %v1106_v37 = vld [vmem:[#allocation11 + $0xd0] sm:$0xff]  ;;  %v1707_v6 = vmul.f32 %v6556_v18, %v1494_v26 }
 0x206   : > { %4993 = vmatprep.subr.bf16.mxu1 %v9371_v16  ;;  %v495_v5 = vld [vmem:[#allocation8 + $0x138] sm:$0xff]  ;;  %v923_v16 = vmul.f32 %v9374_v32, %v491_v25  ;;  %v1110_v58 = vld [vmem:[#allocation11 + $0xf0] sm:$0xff]  ;;  %v7185_v49 = vsub.f32 %v1299_v34, %v1704_v39  ;;  %v1298_v57 = vadd.f32 %v1106_v37, %v914_v15  ;;  %v7195_v34 = vpack.c.bf16 %v7179_v40, %v7176_v13 }
 0x207   : > { %v1115_v12 = vld [vmem:[#allocation11 + $0x118] sm:$0xff]  ;;  %v9375_v14 = vld [vmem:[#allocation70_spill] sm:$0xff]  ;;  %v7187_v3 = vsub.f32 %v1303_v53, %v1708_v28  ;;  %v1302_v25 = vadd.f32 %v1110_v58, %v918_v60  ;;  %v1716_v26 = vmul.f32 %v6517_v2, %v1503_v24 }
 0x208   : > { %v927_v42 = vmul.f32 %v9375_v14, %v495_v5  ;;  %9376 = vst [vmem:[#allocation48_spill] sm:$0xff] %v7185_v49  ;;  %v1119_v4 = vld [vmem:[#allocation11 + $0x138] sm:$0xff]  ;;  %v9378_v62 = vld [vmem:[#allocation62_spill] sm:$0xff]  ;;  %v1307_v59 = vadd.f32 %v1115_v12, %v923_v16  ;;  %v7206_v15 = vsub.f32 %v1298_v57, %v1703_v54  ;;  %v9386_v54 = vld [vmem:[#allocation76_spill] sm:$0xff] }
 0x209   : > { %4863 = vmatpush1.bf16.xpose.msra.mxu0 %v7167_v22  ;;  %9377 = vst [vmem:[#allocation60_spill] sm:$0xff] %v7187_v3  ;;  %v1499_v51 = vld [vmem:[#allocation9 + $0x118] sm:$0xff]  ;;  %v9379_v50 = vld [vmem:[#allocation74_spill] sm:$0xff]  ;;  %v7199_v5 = vpack.c.bf16 %v7187_v3, %v7185_v49  ;;  %v7208_v60 = vsub.f32 %v1302_v25, %v1707_v6  ;;  %v9383_v3 = vld [vmem:[#allocation85_spill] sm:$0xff] }
 0x20a   : > { %4865 = vmatprep.subr.bf16.mxu0 %v7171_v41  ;;  %v490_v55 = vld [vmem:[#allocation8 + $0x110] sm:$0xff]  ;;  %v1311_v39 = vadd.f32 %v1119_v4, %v927_v42  ;;  %v499_v28 = vld [vmem:[#allocation8 + $0x158] sm:$0xff]  ;;  %v1712_v1 = vmul.f32 %v6517_v2, %v1499_v51  ;;  %9380 = vst [vmem:[#allocation68_spill] sm:$0xff] %v7206_v15 }
 0x20b   : > { %v494_v53 = vld [vmem:[#allocation8 + $0x130] sm:$0xff]  ;;  %v922_v58 = vmul.f32 %v9374_v32, %v490_v55  ;;  %9381 = vst [vmem:[#allocation70_spill] sm:$0xff] %v7208_v60  ;;  %v1123_v24 = vld [vmem:[#allocation11 + $0x158] sm:$0xff] }
 0x20c   : > { %v1114_v42 = vld [vmem:[#allocation11 + $0x110] sm:$0xff]  ;;  %v926_v37 = vmul.f32 %v9375_v14, %v494_v53  ;;  %v7213_v40 = vsub.f32 %v1307_v59, %v1712_v1  ;;  %v7215_v55 = vsub.f32 %v1311_v39, %v1716_v26  ;;  %v1127_v32 = vld [vmem:[#allocation11 + $0x178] sm:$0xff]  ;;  %v9387_v14 = vld [vmem:[#allocation88_spill] sm:$0xff]  ;;  %v7223_v59 = vpack.c.bf16 %v7208_v60, %v7206_v15 }
 0x20d   : > { %4995 = vmatpush1.bf16.xpose.msra.mxu1 %v9378_v62  ;;  %v503_v62 = vld [vmem:[#allocation8 + $0x178] sm:$0xff]  ;;  %v1498_v16 = vld [vmem:[#allocation9 + $0x110] sm:$0xff]  ;;  %v1306_v13 = vadd.f32 %v1114_v42, %v922_v58 }
 0x20e   : > { %4997 = vmatprep.subr.bf16.mxu1 %v9379_v50  ;;  %v9382_v12 = vld [vmem:[#allocation82_spill] sm:$0xff]  ;;  %v935_v49 = vmul.f32 %v9383_v3, %v503_v62  ;;  %9384 = vst [vmem:[#allocation62_spill] sm:$0xff] %v7213_v40  ;;  %9385 = vst [vmem:[#allocation74_spill] sm:$0xff] %v7215_v55  ;;  %v1507_v6 = vld [vmem:[#allocation9 + $0x158] sm:$0xff]  ;;  %v1711_v25 = vmul.f32 %v6556_v18, %v1498_v16 }
 0x20f   : > { %v931_v4 = vmul.f32 %v9382_v12, %v499_v28  ;;  %v1118_v51 = vld [vmem:[#allocation11 + $0x130] sm:$0xff]  ;;  %v1511_v57 = vld [vmem:[#allocation9 + $0x178] sm:$0xff]  ;;  %v1720_v58 = vmul.f32 %v6517_v2, %v1507_v6 }
 0x210   : > { %v1502_v50 = vld [vmem:[#allocation9 + $0x130] sm:$0xff]  ;;  %v1310_v28 = vadd.f32 %v1118_v51, %v926_v37  ;;  %v1319_v26 = vadd.f32 %v1127_v32, %v935_v49  ;;  %v507_v62 = vld [vmem:[#allocation8 + $0x198] sm:$0xff]  ;;  %v1724_v42 = vmul.f32 %v6517_v2, %v1511_v57  ;;  %v7232_v37 = vsub.f32 %v1306_v13, %v1711_v25  ;;  %v9390_v32 = vld [vmem:[#allocation100_spill] sm:$0xff] }
 0x211   : > { %4867 = vmatpush1.bf16.xpose.msra.mxu0 %v7195_v34  ;;  %v1715_v53 = vmul.f32 %v6556_v18, %v1502_v50  ;;  %v1315_v0 = vadd.f32 %v1123_v24, %v931_v4  ;;  %v498_v39 = vld [vmem:[#allocation8 + $0x150] sm:$0xff]  ;;  %v511_v16 = vld [vmem:[#allocation8 + $0x1b8] sm:$0xff] }
 0x212   : > { %4869 = vmatprep.subr.bf16.mxu0 %v7199_v5  ;;  %v502_v1 = vld [vmem:[#allocation8 + $0x170] sm:$0xff]  ;;  %9388 = vst [vmem:[#allocation82_spill] sm:$0xff] %v7232_v37  ;;  %v930_v49 = vmul.f32 %v9382_v12, %v498_v39  ;;  %v1131_v57 = vld [vmem:[#allocation11 + $0x198] sm:$0xff]  ;;  %v7243_v13 = vsub.f32 %v1319_v26, %v1724_v42  ;;  %v9395_v39 = vld [vmem:[#allocation101_spill] sm:$0xff] }
 0x213   : > { %v7235_v4 = vsub.f32 %v1310_v28, %v1715_v53  ;;  %v1506_v51 = vld [vmem:[#allocation9 + $0x150] sm:$0xff]  ;;  %v934_v24 = vmul.f32 %v9383_v3, %v502_v1  ;;  %v7241_v15 = vsub.f32 %v1315_v0, %v1720_v58  ;;  %v1135_v25 = vld [vmem:[#allocation11 + $0x1b8] sm:$0xff] }
 0x214   : > { %v1510_v50 = vld [vmem:[#allocation9 + $0x170] sm:$0xff]  ;;  %9393 = vst [vmem:[#allocation88_spill] sm:$0xff] %v7243_v13  ;;  %v1515_v28 = vld [vmem:[#allocation9 + $0x198] sm:$0xff]  ;;  %v1719_v12 = vmul.f32 %v6556_v18, %v1506_v51 }
 0x215   : > { %4999 = vmatpush1.bf16.xpose.msra.mxu1 %v9386_v54  ;;  %v7227_v54 = vpack.c.bf16 %v7215_v55, %v7213_v40  ;;  %9389 = vst [vmem:[#allocation85_spill] sm:$0xff] %v7235_v4  ;;  %v1122_v6 = vld [vmem:[#allocation11 + $0x150] sm:$0xff]  ;;  %v9391_v40 = vld [vmem:[#allocation103_spill] sm:$0xff]  ;;  %9392 = vst [vmem:[#allocation76_spill] sm:$0xff] %v7241_v15  ;;  %v1723_v3 = vmul.f32 %v6556_v18, %v1510_v50  ;;  %v7251_v0 = vpack.c.bf16 %v7235_v4, %v7232_v37 }
 0x216   : > { %5001 = vmatprep.subr.bf16.mxu1 %v9387_v14  ;;  %v939_v14 = vmul.f32 %v9390_v32, %v507_v62  ;;  %v1126_v55 = vld [vmem:[#allocation11 + $0x170] sm:$0xff]  ;;  %v943_v60 = vmul.f32 %v9391_v40, %v511_v16  ;;  %v1314_v1 = vadd.f32 %v1122_v6, %v930_v49  ;;  %v515_v42 = vld [vmem:[#allocation8 + $0x1d8] sm:$0xff]  ;;  %v7255_v16 = vpack.c.bf16 %v7243_v13, %v7241_v15  ;;  %v9400_v13 = vld [vmem:[#allocation117_spill] sm:$0xff] }
 0x217   : > { %v9394_v53 = vld [vmem:[#allocation90_spill] sm:$0xff]  ;;  %v1318_v62 = vadd.f32 %v1126_v55, %v934_v24  ;;  %v1728_v51 = vmul.f32 %v6517_v2, %v1515_v28  ;;  %v1732_v50 = vmul.f32 %v6517_v2, %v1519_v19  ;;  %v938_v55 = vmul.f32 %v9390_v32, %v506_v44  ;;  %v1139_v19 = vld [vmem:[#allocation11 + $0x1d8] sm:$0xff] }
 0x218   : > { %v1323_v29 = vadd.f32 %v1131_v57, %v939_v14  ;;  %v510_v26 = vld [vmem:[#allocation8 + $0x1b0] sm:$0xff]  ;;  %v1327_v58 = vadd.f32 %v1135_v25, %v943_v60  ;;  %9396 = vst [vmem:[#allocation100_spill] sm:$0xff] %v7255_v16  ;;  %v7262_v49 = vsub.f32 %v1314_v1, %v1719_v12  ;;  %v9399_v57 = vld [vmem:[#allocation116_spill] sm:$0xff]  ;;  %v1143_v32 = vld [vmem:[#allocation11 + $0x1f8] sm:$0xff] }
 0x219   : > { %4871 = vmatpush1.bf16.xpose.msra.mxu0 %v7223_v59  ;;  %v7264_v24 = vsub.f32 %v1318_v62, %v1723_v3  ;;  %v1130_v60 = vld [vmem:[#allocation11 + $0x190] sm:$0xff]  ;;  %v942_v6 = vmul.f32 %v9391_v40, %v510_v26  ;;  %v947_v25 = vmul.f32 %v9399_v57, %v515_v42  ;;  %v9403_v12 = vld [vmem:[#allocation104_spill] sm:$0xff]  ;;  %v1523_v3 = vld [vmem:[#allocation9 + $0x1d8] sm:$0xff] }
 0x21a   : > { %4873 = vmatprep.subr.bf16.mxu0 %v7227_v54  ;;  %9397 = vst [vmem:[#allocation103_spill] sm:$0xff] %v7262_v49  ;;  %v1514_v14 = vld [vmem:[#allocation9 + $0x190] sm:$0xff]  ;;  %v7269_v4 = vsub.f32 %v1323_v29, %v1728_v51  ;;  %v7271_v44 = vsub.f32 %v1327_v58, %v1732_v50  ;;  %v1527_v1 = vld [vmem:[#allocation9 + $0x1f8] sm:$0xff]  ;;  %v1322_v37 = vadd.f32 %v1130_v60, %v938_v55  ;;  %v9404_v40 = vld [vmem:[#allocation112_spill] sm:$0xff] }
 0x21b   : > { %9398 = vst [vmem:[#allocation90_spill] sm:$0xff] %v7264_v24  ;;  %v1134_v28 = vld [vmem:[#allocation11 + $0x1b0] sm:$0xff]  ;;  %v1727_v62 = vmul.f32 %v6556_v18, %v1514_v14  ;;  %v1331_v9 = vadd.f32 %v1139_v19, %v947_v25  ;;  %v7279_v29 = vpack.c.bf16 %v7264_v24, %v7262_v49  ;;  %v1736_v55 = vmul.f32 %v6517_v2, %v1523_v3  ;;  %v527_v14 = vld [vmem:[#allocation8 + $0x238] sm:$0xff] }
 0x21c   : > { %9401 = vst [vmem:[#allocation101_spill] sm:$0xff] %v7269_v4  ;;  %9402 = vst [vmem:[#allocation116_spill] sm:$0xff] %v7271_v44  ;;  %v1326_v42 = vadd.f32 %v1134_v28, %v942_v6  ;;  %v514_v58 = vld [vmem:[#allocation8 + $0x1d0] sm:$0xff]  ;;  %v1740_v60 = vmul.f32 %v6517_v2, %v1527_v1  ;;  %v1147_v1 = vld [vmem:[#allocation11 + $0x218] sm:$0xff] }
 0x21d   : > { %5003 = vmatpush1.bf16.xpose.msra.mxu1 %v9394_v53  ;;  %v519_v53 = vld [vmem:[#allocation8 + $0x1f8] sm:$0xff]  ;;  %9405 = vst [vmem:[#allocation117_spill] sm:$0xff] %v7279_v29  ;;  %v518_v51 = vld [vmem:[#allocation8 + $0x1f0] sm:$0xff]  ;;  %v7288_v6 = vsub.f32 %v1322_v37, %v1727_v62  ;;  %v7297_v49 = vsub.f32 %v1331_v9, %v1736_v55 }
 0x21e   : > { %5005 = vmatprep.subr.bf16.mxu1 %v9395_v39  ;;  %v1518_v39 = vld [vmem:[#allocation9 + $0x1b0] sm:$0xff]  ;;  %v951_v15 = vmul.f32 %v9400_v13, %v519_v53  ;;  %v523_v53 = vld [vmem:[#allocation8 + $0x218] sm:$0xff]  ;;  %v950_v19 = vmul.f32 %v9400_v13, %v518_v51 }
 0x21f   : > { %v1731_v26 = vmul.f32 %v6556_v18, %v1518_v39  ;;  %9407 = vst [vmem:[#allocation112_spill] sm:$0xff] %v7288_v6  ;;  %v1522_v28 = vld [vmem:[#allocation9 + $0x1d0] sm:$0xff]  ;;  %v1151_v62 = vld [vmem:[#allocation11 + $0x238] sm:$0xff] }
 0x220   : > { %v1335_v50 = vadd.f32 %v1143_v32, %v951_v15  ;;  %v946_v15 = vmul.f32 %v9399_v57, %v514_v58  ;;  %v1526_v39 = vld [vmem:[#allocation9 + $0x1f0] sm:$0xff]  ;;  %v9409_v32 = vld [vmem:[#allocation123_spill] sm:$0xff]  ;;  %v1735_v57 = vmul.f32 %v6556_v18, %v1522_v28  ;;  %v9414_v58 = vld [vmem:[#allocation129_spill] sm:$0xff] }
 0x221   : > { %4875 = vmatpush1.bf16.xpose.msra.mxu0 %v7251_v0  ;;  %v7291_v25 = vsub.f32 %v1326_v42, %v1731_v26  ;;  %v1138_v3 = vld [vmem:[#allocation11 + $0x1d0] sm:$0xff]  ;;  %9411 = vst [vmem:[#allocation123_spill] sm:$0xff] %v7297_v49  ;;  %v1531_v42 = vld [vmem:[#allocation9 + $0x218] sm:$0xff]  ;;  %v1739_v13 = vmul.f32 %v6556_v18, %v1526_v39 }
 0x222   : > { %4877 = vmatprep.subr.bf16.mxu0 %v7255_v16  ;;  %v7299_v37 = vsub.f32 %v1335_v50, %v1740_v60  ;;  %v9413_v26 = vld [vmem:[#allocation118_spill] sm:$0xff]  ;;  %v1330_v51 = vadd.f32 %v1138_v3, %v946_v15  ;;  %v531_v60 = vld [vmem:[#allocation8 + $0x258] sm:$0xff]  ;;  %v1744_v28 = vmul.f32 %v6517_v2, %v1531_v42 }
 0x223   : > { %9408 = vst [vmem:[#allocation229_spill] sm:$0xff] %v7291_v25  ;;  %v7307_v9 = vpack.c.bf16 %v7291_v25, %v7288_v6  ;;  %v526_v50 = vld [vmem:[#allocation8 + $0x230] sm:$0xff] }
 0x224   : > { %v7318_v15 = vsub.f32 %v1330_v51, %v1735_v57  ;;  %v1150_v42 = vld [vmem:[#allocation11 + $0x230] sm:$0xff]  ;;  %v9423_v57 = vld [vmem:[#allocation131_spill] sm:$0xff] }
 0x225   : > { %5007 = vmatpush1.bf16.xpose.msra.mxu1 %v9403_v12  ;;  %v7283_v12 = vpack.c.bf16 %v7271_v44, %v7269_v4  ;;  %v1142_v44 = vld [vmem:[#allocation11 + $0x1f0] sm:$0xff]  ;;  %v9410_v4 = vld [vmem:[#allocation124_spill] sm:$0xff]  ;;  %9415 = vst [vmem:[#allocation118_spill] sm:$0xff] %v7307_v9  ;;  %v1543_v51 = vld [vmem:[#allocation9 + $0x278] sm:$0xff] }
 0x226   : > { %5009 = vmatprep.subr.bf16.mxu1 %v9404_v40  ;;  %v955_v40 = vmul.f32 %v9409_v32, %v523_v53  ;;  %v959_v24 = vmul.f32 %v9410_v4, %v527_v14  ;;  %9412 = vst [vmem:[#allocation124_spill] sm:$0xff] %v7299_v37  ;;  %v1334_v53 = vadd.f32 %v1142_v44, %v950_v19  ;;  %9417 = vst [vmem:[#allocation230_spill] sm:$0xff] %v7318_v15 }
 0x227   : > { %9406 = vst [vmem:[#allocation104_spill] sm:$0xff] %v7283_v12  ;;  %v7311_v14 = vpack.c.bf16 %v7299_v37, %v7297_v49  ;;  %v958_v3 = vmul.f32 %v9410_v4, %v526_v50  ;;  %v9420_v37 = vld [vmem:[#allocation138_spill] sm:$0xff]  ;;  %v9424_v4 = vld [vmem:[#allocation141_spill] sm:$0xff] }
 0x228   : > { %v1339_v16 = vadd.f32 %v1147_v1, %v955_v40  ;;  %v1343_v55 = vadd.f32 %v1151_v62, %v959_v24  ;;  %v7320_v19 = vsub.f32 %v1334_v53, %v1739_v13  ;;  %v1146_v24 = vld [vmem:[#allocation11 + $0x210] sm:$0xff]  ;;  %v9419_v1 = vld [vmem:[#allocation137_spill] sm:$0xff]  ;;  %v1539_v13 = vld [vmem:[#allocation9 + $0x258] sm:$0xff] }
 0x229   : > { %4879 = vmatpush1.bf16.xpose.msra.mxu0 %v7279_v29  ;;  %v522_v29 = vld [vmem:[#allocation8 + $0x210] sm:$0xff]  ;;  %9416 = vst [vmem:[#allocation129_spill] sm:$0xff] %v7311_v14  ;;  %v963_v62 = vmul.f32 %v9419_v1, %v531_v60  ;;  %v1342_v60 = vadd.f32 %v1150_v42, %v958_v3 }
 0x22a   : > { %4881 = vmatprep.subr.bf16.mxu0 %v7283_v12  ;;  %v1535_v12 = vld [vmem:[#allocation9 + $0x238] sm:$0xff]  ;;  %v954_v44 = vmul.f32 %v9409_v32, %v522_v29  ;;  %9418 = vst [vmem:[#allocation231_spill] sm:$0xff] %v7320_v19  ;;  %v1530_v40 = vld [vmem:[#allocation9 + $0x210] sm:$0xff]  ;;  %v7325_v25 = vsub.f32 %v1339_v16, %v1744_v28  ;;  %v7335_v16 = vpack.c.bf16 %v7320_v19, %v7318_v15 }
 0x22b   : > { %v1748_v39 = vmul.f32 %v6517_v2, %v1535_v12  ;;  %v1155_v12 = vld [vmem:[#allocation11 + $0x258] sm:$0xff]  ;;  %v1743_v53 = vmul.f32 %v6556_v18, %v1530_v40  ;;  %v534_v28 = vld [vmem:[#allocation8 + $0x270] sm:$0xff] }
 0x22c   : > { %9421 = vst [vmem:[#allocation137_spill] sm:$0xff] %v7325_v25  ;;  %v1159_v32 = vld [vmem:[#allocation11 + $0x278] sm:$0xff]  ;;  %v1338_v6 = vadd.f32 %v1146_v24, %v954_v44  ;;  %9425 = vst [vmem:[#allocation131_spill] sm:$0xff] %v7335_v16  ;;  %v1752_v44 = vmul.f32 %v6517_v2, %v1539_v13  ;;  %v1756_v24 = vmul.f32 %v6517_v2, %v1543_v51  ;;  %v1538_v42 = vld [vmem:[#allocation9 + $0x250] sm:$0xff] }
 0x22d   : > { %5011 = vmatpush1.bf16.xpose.msra.mxu1 %v9413_v26  ;;  %v535_v26 = vld [vmem:[#allocation8 + $0x278] sm:$0xff]  ;;  %v7327_v29 = vsub.f32 %v1343_v55, %v1748_v39  ;;  %v530_v55 = vld [vmem:[#allocation8 + $0x250] sm:$0xff] }
 0x22e   : > { %5013 = vmatprep.subr.bf16.mxu1 %v9414_v58  ;;  %v1534_v58 = vld [vmem:[#allocation9 + $0x230] sm:$0xff]  ;;  %v967_v49 = vmul.f32 %v9420_v37, %v535_v26  ;;  %v539_v26 = vld [vmem:[#allocation8 + $0x298] sm:$0xff]  ;;  %v7344_v3 = vsub.f32 %v1338_v6, %v1743_v53 }
 0x22f   : > { %9422 = vst [vmem:[#allocation138_spill] sm:$0xff] %v7327_v29  ;;  %v1747_v50 = vmul.f32 %v6556_v18, %v1534_v58  ;;  %v543_v40 = vld [vmem:[#allocation8 + $0x2b8] sm:$0xff]  ;;  %v1542_v58 = vld [vmem:[#allocation9 + $0x270] sm:$0xff] }
 0x230   : > { %v1351_v39 = vadd.f32 %v1159_v32, %v967_v49  ;;  %9427 = vst [vmem:[#allocation232_spill] sm:$0xff] %v7344_v3  ;;  %v962_v49 = vmul.f32 %v9419_v1, %v530_v55  ;;  %v9429_v32 = vld [vmem:[#allocation154_spill] sm:$0xff]  ;;  %v1163_v51 = vld [vmem:[#allocation11 + $0x298] sm:$0xff]  ;;  %v1751_v1 = vmul.f32 %v6556_v18, %v1538_v42  ;;  %v9434_v55 = vld [vmem:[#allocation153_spill] sm:$0xff] }
 0x231   : > { %4883 = vmatpush1.bf16.xpose.msra.mxu0 %v7307_v9  ;;  %v1154_v13 = vld [vmem:[#allocation11 + $0x250] sm:$0xff]  ;;  %v1167_v53 = vld [vmem:[#allocation11 + $0x2b8] sm:$0xff] }
 0x232   : > { %4885 = vmatprep.subr.bf16.mxu0 %v7311_v14  ;;  %v1347_v14 = vadd.f32 %v1155_v12, %v963_v62  ;;  %v7347_v62 = vsub.f32 %v1342_v60, %v1747_v50  ;;  %v966_v12 = vmul.f32 %v9420_v37, %v534_v28  ;;  %v7355_v6 = vsub.f32 %v1351_v39, %v1756_v24  ;;  %v9433_v50 = vld [vmem:[#allocation151_spill] sm:$0xff]  ;;  %v542_v39 = vld [vmem:[#allocation8 + $0x2b0] sm:$0xff] }
 0x233   : > { %v1547_v60 = vld [vmem:[#allocation9 + $0x298] sm:$0xff]  ;;  %v1755_v37 = vmul.f32 %v6556_v18, %v1542_v58  ;;  %v1346_v28 = vadd.f32 %v1154_v13, %v962_v49 }
 0x234   : > { %9428 = vst [vmem:[#allocation233_spill] sm:$0xff] %v7347_v62  ;;  %v7353_v15 = vsub.f32 %v1347_v14, %v1752_v44  ;;  %v7363_v14 = vpack.c.bf16 %v7347_v62, %v7344_v3  ;;  %v547_v24 = vld [vmem:[#allocation8 + $0x2d8] sm:$0xff]  ;;  %v1760_v42 = vmul.f32 %v6517_v2, %v1547_v60  ;;  %v1166_v60 = vld [vmem:[#allocation11 + $0x2b0] sm:$0xff] }
 0x235   : > { %5015 = vmatpush1.bf16.xpose.msra.mxu1 %v9423_v57  ;;  %v7339_v57 = vpack.c.bf16 %v7327_v29, %v7325_v25  ;;  %v1158_v29 = vld [vmem:[#allocation11 + $0x270] sm:$0xff]  ;;  %v9430_v25 = vld [vmem:[#allocation155_spill] sm:$0xff]  ;;  %v7374_v49 = vsub.f32 %v1346_v28, %v1751_v1 }
 0x236   : > { %5017 = vmatprep.subr.bf16.mxu1 %v9424_v4  ;;  %v971_v4 = vmul.f32 %v9429_v32, %v539_v26  ;;  %v975_v19 = vmul.f32 %v9430_v25, %v543_v40  ;;  %9431 = vst [vmem:[#allocation154_spill] sm:$0xff] %v7353_v15  ;;  %9432 = vst [vmem:[#allocation155_spill] sm:$0xff] %v7355_v6  ;;  %v1350_v26 = vadd.f32 %v1158_v29, %v966_v12  ;;  %v9442_v1 = vld [vmem:[#allocation162_spill] sm:$0xff]  ;;  %v1559_v28 = vld [vmem:[#allocation9 + $0x2f8] sm:$0xff] }
 0x237   : > { %9426 = vst [vmem:[#allocation141_spill] sm:$0xff] %v7339_v57  ;;  %v7367_v40 = vpack.c.bf16 %v7355_v6, %v7353_v15  ;;  %9436 = vst [vmem:[#allocation153_spill] sm:$0xff] %v7374_v49  ;;  %v974_v13 = vmul.f32 %v9430_v25, %v542_v39  ;;  %v9439_v6 = vld [vmem:[#allocation172_spill] sm:$0xff]  ;;  %v9443_v25 = vld [vmem:[#allocation167_spill] sm:$0xff] }
 0x238   : > { %v1355_v9 = vadd.f32 %v1163_v51, %v971_v4  ;;  %v1359_v44 = vadd.f32 %v1167_v53, %v975_v19  ;;  %v7376_v12 = vsub.f32 %v1350_v26, %v1755_v37  ;;  %v1162_v19 = vld [vmem:[#allocation11 + $0x290] sm:$0xff]  ;;  %v9438_v51 = vld [vmem:[#allocation168_spill] sm:$0xff]  ;;  %v1555_v37 = vld [vmem:[#allocation9 + $0x2d8] sm:$0xff] }
 0x239   : > { %4887 = vmatpush1.bf16.xpose.msra.mxu0 %v7335_v16  ;;  %v538_v16 = vld [vmem:[#allocation8 + $0x290] sm:$0xff]  ;;  %9435 = vst [vmem:[#allocation151_spill] sm:$0xff] %v7367_v40  ;;  %v979_v53 = vmul.f32 %v9438_v51, %v547_v24  ;;  %v1358_v24 = vadd.f32 %v1166_v60, %v974_v13 }
 0x23a   : > { %4889 = vmatprep.subr.bf16.mxu0 %v7339_v57  ;;  %v1551_v57 = vld [vmem:[#allocation9 + $0x2b8] sm:$0xff]  ;;  %v970_v29 = vmul.f32 %v9429_v32, %v538_v16  ;;  %9437 = vst [vmem:[#allocation234_spill] sm:$0xff] %v7376_v12  ;;  %v1546_v4 = vld [vmem:[#allocation9 + $0x290] sm:$0xff]  ;;  %v7381_v62 = vsub.f32 %v1355_v9, %v1760_v42  ;;  %v7391_v9 = vpack.c.bf16 %v7376_v12, %v7374_v49 }
 0x23b   : > { %v1764_v58 = vmul.f32 %v6517_v2, %v1551_v57  ;;  %v1171_v57 = vld [vmem:[#allocation11 + $0x2d8] sm:$0xff]  ;;  %v1759_v26 = vmul.f32 %v6556_v18, %v1546_v4  ;;  %v550_v42 = vld [vmem:[#allocation8 + $0x2f0] sm:$0xff] }
 0x23c   : > { %9440 = vst [vmem:[#allocation168_spill] sm:$0xff] %v7381_v62  ;;  %v1175_v32 = vld [vmem:[#allocation11 + $0x2f8] sm:$0xff]  ;;  %v1354_v3 = vadd.f32 %v1162_v19, %v970_v29  ;;  %v1768_v29 = vmul.f32 %v6517_v2, %v1555_v37  ;;  %v1772_v19 = vmul.f32 %v6517_v2, %v1559_v28  ;;  %v1554_v60 = vld [vmem:[#allocation9 + $0x2d0] sm:$0xff] }
 0x23d   : > { %5019 = vmatpush1.bf16.xpose.msra.mxu1 %v9433_v50  ;;  %v551_v50 = vld [vmem:[#allocation8 + $0x2f8] sm:$0xff]  ;;  %v7383_v16 = vsub.f32 %v1359_v44, %v1764_v58  ;;  %v546_v44 = vld [vmem:[#allocation8 + $0x2d0] sm:$0xff] }
 0x23e   : > { %5021 = vmatprep.subr.bf16.mxu1 %v9434_v55  ;;  %v1550_v55 = vld [vmem:[#allocation9 + $0x2b0] sm:$0xff]  ;;  %v983_v15 = vmul.f32 %v9439_v6, %v551_v50  ;;  %v555_v50 = vld [vmem:[#allocation8 + $0x318] sm:$0xff]  ;;  %v7400_v13 = vsub.f32 %v1354_v3, %v1759_v26 }
 0x23f   : > { %9441 = vst [vmem:[#allocation172_spill] sm:$0xff] %v7383_v16  ;;  %v1763_v39 = vmul.f32 %v6556_v18, %v1550_v55  ;;  %v559_v4 = vld [vmem:[#allocation8 + $0x338] sm:$0xff]  ;;  %v1558_v55 = vld [vmem:[#allocation9 + $0x2f0] sm:$0xff] }
 0x240   : > { %v1367_v58 = vadd.f32 %v1175_v32, %v983_v15  ;;  %9444 = vst [vmem:[#allocation162_spill] sm:$0xff] %v7400_v13  ;;  %v978_v15 = vmul.f32 %v9438_v51, %v546_v44  ;;  %v987_v32 = vmul.f32 %v6791_v56, %v555_v50  ;;  %v1170_v37 = vld [vmem:[#allocation11 + $0x2d0] sm:$0xff]  ;;  %v1179_v28 = vld [vmem:[#allocation11 + $0x318] sm:$0xff]  ;;  %v1767_v51 = vmul.f32 %v6556_v18, %v1554_v60 }
 0x241   : > { %4891 = vmatpush1.bf16.xpose.msra.mxu0 %v7363_v14  ;;  %v1183_v26 = vld [vmem:[#allocation11 + $0x338] sm:$0xff]  ;;  %v554_v50 = vld [vmem:[#allocation8 + $0x310] sm:$0xff] }
 0x242   : > { %4893 = vmatprep.subr.bf16.mxu0 %v7367_v40  ;;  %v1363_v40 = vadd.f32 %v1171_v57, %v979_v53  ;;  %v7403_v53 = vsub.f32 %v1358_v24, %v1763_v39  ;;  %v982_v57 = vmul.f32 %v9439_v6, %v550_v42  ;;  %v7411_v3 = vsub.f32 %v1367_v58, %v1772_v19  ;;  %v1563_v39 = vld [vmem:[#allocation9 + $0x318] sm:$0xff]  ;;  %v558_v58 = vld [vmem:[#allocation8 + $0x330] sm:$0xff] }
 0x243   : > { %v1567_v24 = vld [vmem:[#allocation9 + $0x338] sm:$0xff]  ;;  %v1771_v6 = vmul.f32 %v6556_v18, %v1558_v55  ;;  %v1362_v44 = vadd.f32 %v1170_v37, %v978_v15  ;;  %v1371_v49 = vadd.f32 %v1179_v28, %v987_v32  ;;  %v986_v15 = vmul.f32 %v6791_v56, %v554_v50  ;;  %v1562_v32 = vld [vmem:[#allocation9 + $0x310] sm:$0xff] }
 0x244   : > { %9445 = vst [vmem:[#allocation167_spill] sm:$0xff] %v7403_v53  ;;  %v7409_v12 = vsub.f32 %v1363_v40, %v1768_v29  ;;  %9448 = vst [vmem:[#allocation235_spill] sm:$0xff] %v7411_v3  ;;  %v7419_v40 = vpack.c.bf16 %v7403_v53, %v7400_v13  ;;  %v563_v19 = vld [vmem:[#allocation8 + $0x358] sm:$0xff]  ;;  %v1780_v60 = vmul.f32 %v6517_v2, %v1567_v24  ;;  %v1182_v28 = vld [vmem:[#allocation11 + $0x330] sm:$0xff] }
 0x245   : > { %5023 = vmatpush1.bf16.xpose.msra.mxu1 %v9442_v1  ;;  %v7395_v1 = vpack.c.bf16 %v7383_v16, %v7381_v62  ;;  %v9446_v16 = vld [vmem:[#allocation178_spill] sm:$0xff]  ;;  %v7430_v55 = vsub.f32 %v1362_v44, %v1767_v51  ;;  %v1191_v50 = vld [vmem:[#allocation11 + $0x378] sm:$0xff]  ;;  %v1775_v44 = vmul.f32 %v6556_v18, %v1562_v32  ;;  %v9518_v53 = vld [vmem:[#allocation141_spill] sm:$0xff] }
 0x246   : > { %5025 = vmatprep.subr.bf16.mxu1 %v9443_v25  ;;  %v1174_v25 = vld [vmem:[#allocation11 + $0x2f0] sm:$0xff]  ;;  %v991_v62 = vmul.f32 %v9446_v16, %v559_v4  ;;  %9447 = vst [vmem:[#allocation178_spill] sm:$0xff] %v7409_v12  ;;  %v1776_v4 = vmul.f32 %v6517_v2, %v1563_v39  ;;  %v990_v37 = vmul.f32 %v9446_v16, %v558_v58  ;;  %v1187_v39 = vld [vmem:[#allocation11 + $0x358] sm:$0xff]  ;;  %v9519_v13 = vld [vmem:[#allocation128_spill] sm:$0xff] }
 0x247   : > { %v1366_v42 = vadd.f32 %v1174_v25, %v982_v57  ;;  %9449 = vst [vmem:[#allocation236_spill] sm:$0xff] %v7430_v55  ;;  %v995_v25 = vmul.f32 %v6828_v45, %v563_v19  ;;  %v1571_v51 = vld [vmem:[#allocation9 + $0x358] sm:$0xff] }
 0x248   : > { %v1375_v29 = vadd.f32 %v1183_v26, %v991_v62  ;;  %v1178_v62 = vld [vmem:[#allocation11 + $0x310] sm:$0xff]  ;;  %v1374_v58 = vadd.f32 %v1182_v28, %v990_v37 }
 0x249   : > { %4895 = vmatpush1.bf16.xpose.msra.mxu0 %v7391_v9  ;;  %v7432_v57 = vsub.f32 %v1366_v42, %v1771_v6  ;;  %v1566_v26 = vld [vmem:[#allocation9 + $0x330] sm:$0xff]  ;;  %v1575_v6 = vld [vmem:[#allocation9 + $0x378] sm:$0xff]  ;;  %v1370_v42 = vadd.f32 %v1178_v62, %v986_v15  ;;  %v1379_v19 = vadd.f32 %v1187_v39, %v995_v25  ;;  %v1784_v15 = vmul.f32 %v6517_v2, %v1571_v51 }
 0x24a   : > { %4897 = vmatprep.subr.bf16.mxu0 %v7395_v1  ;;  %v7439_v56 = vsub.f32 %v1375_v29, %v1780_v60  ;;  %v1779_v16 = vmul.f32 %v6556_v18, %v1566_v26  ;;  %v562_v29 = vld [vmem:[#allocation8 + $0x350] sm:$0xff]  ;;  %v575_v62 = vld [vmem:[#allocation8 + $0x3b8] sm:$0xff] }
 0x24b   : > { %9450 = vst [vmem:[#allocation237_spill] sm:$0xff] %v7432_v57  ;;  %v7456_v32 = vsub.f32 %v1370_v42, %v1775_v44  ;;  %v1570_v25 = vld [vmem:[#allocation9 + $0x350] sm:$0xff]  ;;  %v994_v28 = vmul.f32 %v6828_v45, %v562_v29  ;;  %v1199_v42 = vld [vmem:[#allocation11 + $0x3b8] sm:$0xff] }
 0x24c   : > { %9452 = vst [vmem:[#allocation239_spill] sm:$0xff] %v7439_v56  ;;  %v7459_v37 = vsub.f32 %v1374_v58, %v1779_v16  ;;  %v1574_v26 = vld [vmem:[#allocation9 + $0x370] sm:$0xff]  ;;  %v1579_v16 = vld [vmem:[#allocation9 + $0x398] sm:$0xff]  ;;  %v1783_v45 = vmul.f32 %v6556_v18, %v1570_v25 }
 0x24d   : > { %5027 = vmatpush1.bf16.xpose.msra.mxu1 %v6836_v27  ;;  %v7423_v27 = vpack.c.bf16 %v7411_v3, %v7409_v12  ;;  %v7437_v3 = vsub.f32 %v1371_v49, %v1776_v4  ;;  %v7447_v49 = vpack.c.bf16 %v7432_v57, %v7430_v55  ;;  %v566_v4 = vld [vmem:[#allocation8 + $0x370] sm:$0xff]  ;;  %9453 = vst [vmem:[#allocation240_spill] sm:$0xff] %v7456_v32  ;;  %v1583_v58 = vld [vmem:[#allocation9 + $0x3b8] sm:$0xff] }
 0x24e   : > { %5029 = vmatprep.subr.bf16.mxu1 %v6853_v11  ;;  %v567_v11 = vld [vmem:[#allocation8 + $0x378] sm:$0xff]  ;;  %9454 = vst [vmem:[#allocation241_spill] sm:$0xff] %v7459_v37  ;;  %v998_v39 = vmul.f32 %v6832_v31, %v566_v4  ;;  %v1190_v51 = vld [vmem:[#allocation11 + $0x370] sm:$0xff]  ;;  %v1796_v25 = vmul.f32 %v6517_v2, %v1583_v58 }
 0x24f   : > { %v999_v24 = vmul.f32 %v6832_v31, %v567_v11  ;;  %9451 = vst [vmem:[#allocation238_spill] sm:$0xff] %v7437_v3  ;;  %v571_v11 = vld [vmem:[#allocation8 + $0x398] sm:$0xff]  ;;  %v1787_v31 = vmul.f32 %v6556_v18, %v1574_v26  ;;  %v9516_v55 = vld [vmem:[#allocation126_spill] sm:$0xff] }
 0x250   : > { %v1382_v4 = vadd.f32 %v1190_v51, %v998_v39  ;;  %v579_v26 = vld [vmem:[#allocation8 + $0x3d8] sm:$0xff] }
 0x251   : > { %4899 = vmatpush1.bf16.xpose.msra.mxu0 %v7419_v40  ;;  %v1383_v60 = vadd.f32 %v1191_v50, %v999_v24  ;;  %v1003_v24 = vmul.f32 %v6893_v20, %v571_v11  ;;  %v1186_v50 = vld [vmem:[#allocation11 + $0x350] sm:$0xff]  ;;  %v1011_v58 = vmul.f32 %v6952_v10, %v579_v26  ;;  %v9515_v57 = vld [vmem:[#allocation127_spill] sm:$0xff] }
 0x252   : > { %4901 = vmatprep.subr.bf16.mxu0 %v7423_v27  ;;  %v1378_v29 = vadd.f32 %v1186_v50, %v994_v28  ;;  %v7487_v39 = vsub.f32 %v1382_v4, %v1787_v31  ;;  %v1582_v50 = vld [vmem:[#allocation9 + $0x3b0] sm:$0xff]  ;;  %v1207_v31 = vld [vmem:[#allocation11 + $0x3f8] sm:$0xff] }
 0x253   : > { %v9517_v12 = vld [vmem:[#allocation131_spill] sm:$0xff] }
 0x254   : > { %v7485_v28 = vsub.f32 %v1378_v29, %v1783_v45  ;;  %9458 = vst [vmem:[#allocation245_spill] sm:$0xff] %v7487_v39  ;;  %v1203_v45 = vld [vmem:[#allocation11 + $0x3d8] sm:$0xff] }
 0x255   : > { %5031 = vmatpush1.bf16.xpose.msra.mxu1 %v6899_v36  ;;  %v7451_v36 = vpack.c.bf16 %v7439_v56, %v7437_v3  ;;  %v1007_v56 = vmul.f32 %v6895_v7, %v575_v62  ;;  %v7465_v3 = vsub.f32 %v1379_v19, %v1784_v15  ;;  %v7475_v19 = vpack.c.bf16 %v7459_v37, %v7456_v32  ;;  %v574_v15 = vld [vmem:[#allocation8 + $0x3b0] sm:$0xff]  ;;  %v1591_v29 = vld [vmem:[#allocation9 + $0x3f8] sm:$0xff] }
 0x256   : > { %5033 = vmatprep.subr.bf16.mxu1 %v6907_v38  ;;  %v1788_v38 = vmul.f32 %v6517_v2, %v1575_v6  ;;  %v1195_v6 = vld [vmem:[#allocation11 + $0x398] sm:$0xff]  ;;  %v1792_v62 = vmul.f32 %v6517_v2, %v1579_v16  ;;  %9457 = vst [vmem:[#allocation244_spill] sm:$0xff] %v7485_v28  ;;  %v1006_v51 = vmul.f32 %v6895_v7, %v574_v15  ;;  %v9514_v32 = vld [vmem:[#allocation122_spill] sm:$0xff] }
 0x257   : > { %9455 = vst [vmem:[#allocation242_spill] sm:$0xff] %v7465_v3  ;;  %v1387_v11 = vadd.f32 %v1195_v6, %v1003_v24  ;;  %v1578_v24 = vld [vmem:[#allocation9 + $0x390] sm:$0xff]  ;;  %v1587_v16 = vld [vmem:[#allocation9 + $0x3d8] sm:$0xff]  ;;  %v1795_v7 = vmul.f32 %v6556_v18, %v1582_v50  ;;  %v1804_v26 = vmul.f32 %v6517_v2, %v1591_v29 }
 0x258   : > { %v7467_v44 = vsub.f32 %v1383_v60, %v1788_v38  ;;  %v570_v60 = vld [vmem:[#allocation8 + $0x390] sm:$0xff]  ;;  %v1391_v38 = vadd.f32 %v1199_v42, %v1007_v56  ;;  %v1800_v15 = vmul.f32 %v6517_v2, %v1587_v16 }
 0x259   : > { %4903 = vmatpush1.bf16.xpose.msra.mxu0 %v7447_v49  ;;  %v1002_v56 = vmul.f32 %v6893_v20, %v570_v60  ;;  %v1194_v6 = vld [vmem:[#allocation11 + $0x390] sm:$0xff]  ;;  %v1791_v20 = vmul.f32 %v6556_v18, %v1578_v24 }
 0x25a   : > { %4905 = vmatprep.subr.bf16.mxu0 %v7451_v36  ;;  %9456 = vst [vmem:[#allocation243_spill] sm:$0xff] %v7467_v44  ;;  %v1198_v42 = vld [vmem:[#allocation11 + $0x3b0] sm:$0xff]  ;;  %v7495_v37 = vsub.f32 %v1391_v38, %v1796_v25 }
 0x25b   : > { %v1386_v4 = vadd.f32 %v1194_v6, %v1002_v56  ;;  %v1390_v60 = vadd.f32 %v1198_v42, %v1006_v51  ;;  %v578_v38 = vld [vmem:[#allocation8 + $0x3d0] sm:$0xff] }
 0x25c   : > { %9460 = vst [vmem:[#allocation247_spill] sm:$0xff] %v7495_v37  ;;  %v582_v25 = vld [vmem:[#allocation8 + $0x3f0] sm:$0xff]  ;;  %v1010_v50 = vmul.f32 %v6952_v10, %v578_v38 }
 0x25d   : > { %5035 = vmatpush1.bf16.xpose.msra.mxu1 %v6958_v17  ;;  %v7479_v17 = vpack.c.bf16 %v7467_v44, %v7465_v3  ;;  %v7493_v3 = vsub.f32 %v1387_v11, %v1792_v62  ;;  %v7504_v11 = vpack.c.bf16 %v7487_v39, %v7485_v28  ;;  %v1395_v62 = vadd.f32 %v1203_v45, %v1011_v58  ;;  %v1586_v56 = vld [vmem:[#allocation9 + $0x3d0] sm:$0xff]  ;;  %v9510_v39 = vld [vmem:[#allocation129_spill] sm:$0xff] }
 0x25e   : > { %5037 = vmatprep.subr.bf16.mxu1 %v6962_v33  ;;  %v583_v33 = vld [vmem:[#allocation8 + $0x3f8] sm:$0xff]  ;;  %v7515_v24 = vsub.f32 %v1390_v60, %v1795_v7  ;;  %v1014_v51 = vmul.f32 %v6954_v48, %v582_v25  ;;  %v1202_v6 = vld [vmem:[#allocation11 + $0x3d0] sm:$0xff]  ;;  %v1799_v58 = vmul.f32 %v6556_v18, %v1586_v56  ;;  %v9468_v7 = vld [vmem:[#allocation29_spill] sm:$0xff] }
 0x25f   : > { %v1015_v44 = vmul.f32 %v6954_v48, %v583_v33  ;;  %9459 = vst [vmem:[#allocation246_spill] sm:$0xff] %v7493_v3  ;;  %v7509_v33 = vpack.c.bf16 %v7495_v37, %v7493_v3  ;;  %v7519_v2 = vsub.f32 %v1395_v62, %v1800_v15  ;;  %v1590_v42 = vld [vmem:[#allocation9 + $0x3f0] sm:$0xff]  ;;  %v1394_v45 = vadd.f32 %v1202_v6, %v1010_v50  ;;  %v9473_v15 = vld [vmem:[#allocation39_spill] sm:$0xff]  ;;  %v9475_v62 = vld [vmem:[#allocation41_spill] sm:$0xff] }
 0x260   : > { %9462 = vst [vmem:[#allocation249_spill] sm:$0xff] %v7515_v24  ;;  %v9472_v60 = vld [vmem:[#allocation38_spill] sm:$0xff]  ;;  %v9479_v25 = vld [vmem:[#allocation52_spill] sm:$0xff]  ;;  %v9486_v50 = vld [vmem:[#allocation71_spill] sm:$0xff] }
 0x261   : > { %4907 = vmatpush1.bf16.xpose.msra.mxu0 %v7475_v19  ;;  %9463 = vst [vmem:[#allocation250_spill] sm:$0xff] %v7519_v2  ;;  %v9474_v38 = vld [vmem:[#allocation42_spill] sm:$0xff]  ;;  %v9488_v6 = vld [vmem:[#allocation72_spill] sm:$0xff]  ;;  %v9507_v37 = vld [vmem:[#allocation111_spill] sm:$0xff] }
 0x262   : > { %4909 = vmatprep.subr.bf16.mxu0 %v7479_v17  ;;  %v9485_v56 = vld [vmem:[#allocation66_spill] sm:$0xff]  ;;  %v9511_v28 = vld [vmem:[#allocation113_spill] sm:$0xff] }
 0x263   : > { %v9509_v3 = vld [vmem:[#allocation118_spill] sm:$0xff] }
 0x265   : > { %5039 = vmatpush1.bf16.xpose.msra.mxu1 %v7018_v47  ;;  %v1399_v47 = vadd.f32 %v1207_v31, %v1015_v44  ;;  %v1206_v44 = vld [vmem:[#allocation11 + $0x3f0] sm:$0xff]  ;;  %v1803_v31 = vmul.f32 %v6556_v18, %v1590_v42  ;;  %v9492_v42 = vld [vmem:[#allocation84_spill] sm:$0xff] }
 0x266   : > { %5041 = vmatprep.subr.bf16.mxu1 %v7024_v30  ;;  %v7513_v30 = vsub.f32 %v1386_v4, %v1791_v20  ;;  %v1398_v29 = vadd.f32 %v1206_v44, %v1014_v51  ;;  %v9469_v4 = vld [vmem:[#allocation24_spill] sm:$0xff]  ;;  %v9487_v51 = vld [vmem:[#allocation69_spill] sm:$0xff] }
 0x267   : > { %v7521_v16 = vsub.f32 %v1399_v47, %v1804_v26  ;;  %v9481_v26 = vld [vmem:[#allocation55_spill] sm:$0xff]  ;;  %v9482_v47 = vld [vmem:[#allocation58_spill] sm:$0xff]  ;;  %v9491_v44 = vld [vmem:[#allocation80_spill] sm:$0xff] }
 0x268   : > { %9461 = vst [vmem:[#allocation248_spill] sm:$0xff] %v7513_v30  ;;  %v7529_v10 = vpack.c.bf16 %v7515_v24, %v7513_v30  ;;  %v7539_v20 = vsub.f32 %v1398_v29, %v1803_v31  ;;  %v9495_v31 = vld [vmem:[#allocation86_spill] sm:$0xff]  ;;  %v9506_v24 = vld [vmem:[#allocation108_spill] sm:$0xff] }
 0x269   : > { %4911 = vmatpush1.bf16.xpose.msra.mxu0 %v7504_v11  ;;  %9464 = vst [vmem:[#allocation251_spill] sm:$0xff] %v7521_v16  ;;  %v7533_v48 = vpack.c.bf16 %v7521_v16, %v7519_v2  ;;  %v9498_v29 = vld [vmem:[#allocation94_spill] sm:$0xff]  ;;  %v9501_v16 = vld [vmem:[#allocation117_spill] sm:$0xff] }
 0x26a   : > { %4913 = vmatprep.subr.bf16.mxu0 %v7509_v33  ;;  %9466 = vst [vmem:[#allocation253_spill] sm:$0xff] %v7539_v20  ;;  %v9503_v2 = vld [vmem:[#allocation98_spill] sm:$0xff] }
 0x26b   : > { %v9508_v30 = vld [vmem:[#allocation110_spill] sm:$0xff] }
 0x26d   : > { %5043 = vmatpush1.bf16.xpose.msra.mxu1 %v7064_v8  ;;  %v7537_v8 = vsub.f32 %v1394_v45, %v1799_v58  ;;  %v9493_v58 = vld [vmem:[#allocation83_spill] sm:$0xff]  ;;  %v9494_v45 = vld [vmem:[#allocation100_spill] sm:$0xff] }
 0x26e   : > { %5045 = vmatprep.subr.bf16.mxu1 %v7068_v63  ;;  %v9467_v63 = vld [vmem:[#allocation31_spill] sm:$0xff] }
 0x26f   : > { %9465 = vst [vmem:[#allocation252_spill] sm:$0xff] %v7537_v8  ;;  %v7545_v18 = vpack.c.bf16 %v7539_v20, %v7537_v8  ;;  %v9500_v20 = vld [vmem:[#allocation96_spill] sm:$0xff] }
 0x270   : > { %v9502_v8 = vld [vmem:[#allocation104_spill] sm:$0xff] }
 0x271   : > { %4915 = vmatpush1.bf16.xpose.msra.mxu0 %v7529_v10 }
 0x272   : > { %4917 = vmatprep.subr.bf16.mxu0 %v7533_v48 }
 0x275   : > { %5047 = vmatpush1.bf16.xpose.msra.mxu1 %v7095_v61  ;;  %v9470_v61 = vld [vmem:[#allocation30_spill] sm:$0xff] }
 0x276   : > { %5049 = vmatprep.subr.bf16.mxu1 %v7104_v46  ;;  %v9471_v46 = vld [vmem:[#allocation35_spill] sm:$0xff] }
 0x279   : > { %4919 = vmatpush1.bf16.xpose.msra.mxu0 %v7545_v18 }
 0x27a   : > { %5113 = vmatprep.subr.bf16.mxu0 %v9467_v63 }
 0x27c   : > { %3160 = vmatmul.mubr.f32.vlgmr.msra.gmra.mrb[2].mxu1 %v9468_v7 }
 0x27d   : > { %3165 = vmatprep.mubr.f32.mxu1 %v9469_v4  ;;  %5051 = vmatpush1.bf16.xpose.msra.mxu1 %v7133_v21  ;;  %v9476_v21 = vld [vmem:[#allocation44_spill] sm:$0xff] }
 0x27e   : > { %5053 = vmatprep.subr.bf16.mxu1 %v7140_v43  ;;  %v9478_v43 = vld [vmem:[#allocation53_spill] sm:$0xff] }
 0x280   : > { %4781 = vmatmul.mubr.msk.f32.vlgmr.msra.gmra.mrb[0].mxu0 %vm2447_vm0, %v7100_v35  ;;  %3166 = vmatmul.mubr.f32.gmra.mrb[4].mxu1 %v9470_v61  ;;  %v9477_v35 = vld [vmem:[#allocation49_spill] sm:$0xff] }
 0x281   : > { %5115 = vmatpush1.bf16.xpose.msra.mxu0 %v9471_v46  ;;  %3865 = vmatprep.mubr.f32.mxu0 %v9361_v23  ;;  %v9480_v23 = vld [vmem:[#allocation56_spill] sm:$0xff] }
 0x282   : > { %5117 = vmatprep.subr.bf16.mxu0 %v9472_v60  ;;  %3171 = vmatprep.mubr.f32.mxu1 %v9473_v15 }
 0x284   : > { %3172 = vmatmul.mubr.f32.gmra.mrb[6].mxu1 %v9474_v38 }
 0x285   : > { %3177 = vmatprep.mubr.f32.mxu1 %v9475_v62  ;;  %5055 = vmatpush1.bf16.xpose.msra.mxu1 %v7167_v22  ;;  %v9483_v22 = vld [vmem:[#allocation63_spill] sm:$0xff] }
 0x286   : > { %5057 = vmatprep.subr.bf16.mxu1 %v7171_v41  ;;  %v9484_v41 = vld [vmem:[#allocation67_spill] sm:$0xff] }
 0x288   : > { %3178 = vmatmul.mubr.f32.gmra.mrb[8].mxu1 %v9476_v21 }
 0x289   : > { %5119 = vmatpush1.bf16.xpose.msra.mxu0 %v9477_v35  ;;  %3183 = vmatprep.mubr.f32.mxu1 %v9478_v43 }
 0x28a   : > { %5121 = vmatprep.subr.bf16.mxu0 %v9479_v25 }
 0x28c   : > { %3184 = vmatmul.mubr.f32.gmra.mrb[10].mxu1 %v9480_v23 }
 0x28d   : > { %3189 = vmatprep.mubr.f32.mxu1 %v9481_v26  ;;  %5059 = vmatpush1.bf16.xpose.msra.mxu1 %v7195_v34  ;;  %v9489_v34 = vld [vmem:[#allocation77_spill] sm:$0xff] }
 0x28e   : > { %5061 = vmatprep.subr.bf16.mxu1 %v7199_v5  ;;  %v9490_v5 = vld [vmem:[#allocation81_spill] sm:$0xff] }
 0x290   : > { %3190 = vmatmul.mubr.f32.gmra.mrb[12].mxu1 %v9482_v47 }
 0x291   : > { %5123 = vmatpush1.bf16.xpose.msra.mxu0 %v9483_v22  ;;  %3195 = vmatprep.mubr.f32.mxu1 %v9484_v41 }
 0x292   : > { %5125 = vmatprep.subr.bf16.mxu0 %v9485_v56 }
 0x294   : > { %3196 = vmatmul.mubr.f32.gmra.mrb[14].mxu1 %v9486_v50 }
 0x295   : > { %3201 = vmatprep.mubr.f32.mxu1 %v9487_v51  ;;  %5063 = vmatpush1.bf16.xpose.msra.mxu1 %v7223_v59  ;;  %v9496_v59 = vld [vmem:[#allocation91_spill] sm:$0xff] }
 0x296   : > { %5065 = vmatprep.subr.bf16.mxu1 %v7227_v54  ;;  %v9497_v54 = vld [vmem:[#allocation95_spill] sm:$0xff] }
 0x298   : > { %3202 = vmatmul.mubr.f32.gmra.mrb[16].mxu1 %v9488_v6 }
 0x299   : > { %5127 = vmatpush1.bf16.xpose.msra.mxu0 %v9489_v34  ;;  %3207 = vmatprep.mubr.f32.mxu1 %v9490_v5 }
 0x29a   : > { %5129 = vmatprep.subr.bf16.mxu0 %v9491_v44 }
 0x29c   : > { %3208 = vmatmul.mubr.f32.gmra.mrb[18].mxu1 %v9492_v42 }
 0x29d   : > { %3213 = vmatprep.mubr.f32.mxu1 %v9493_v58  ;;  %5067 = vmatpush1.bf16.xpose.msra.mxu1 %v7251_v0  ;;  %v9504_v0 = vld [vmem:[#allocation105_spill] sm:$0xff] }
 0x29e   : > { %5069 = vmatprep.subr.bf16.mxu1 %v9494_v45  ;;  %v9505_v45 = vld [vmem:[#allocation109_spill] sm:$0xff] }
 0x2a0   : > { %3214 = vmatmul.mubr.f32.gmra.mrb[20].mxu1 %v9495_v31 }
 0x2a1   : > { %5131 = vmatpush1.bf16.xpose.msra.mxu0 %v9496_v59  ;;  %3219 = vmatprep.mubr.f32.mxu1 %v9497_v54 }
 0x2a2   : > { %5133 = vmatprep.subr.bf16.mxu0 %v9498_v29  ;;  %v9530_v29 = vld [vmem:[#allocation159_spill] sm:$0xff] }
 0x2a4   : > { %3220 = vmatmul.mubr.f32.gmra.mrb[22].mxu1 %v9499_v52 }
 0x2a5   : > { %3225 = vmatprep.mubr.f32.mxu1 %v9500_v20  ;;  %5071 = vmatpush1.bf16.xpose.msra.mxu1 %v9501_v16  ;;  %v9512_v16 = vld [vmem:[#allocation119_spill] sm:$0xff] }
 0x2a6   : > { %5073 = vmatprep.subr.bf16.mxu1 %v9502_v8  ;;  %v9513_v8 = vld [vmem:[#allocation125_spill] sm:$0xff] }
 0x2a8   : > { %3226 = vmatmul.mubr.f32.gmra.mrb[24].mxu1 %v9503_v2 }
 0x2a9   : > { %5135 = vmatpush1.bf16.xpose.msra.mxu0 %v9504_v0  ;;  %3231 = vmatprep.mubr.f32.mxu1 %v9505_v45  ;;  %v9524_v0 = vld [vmem:[#allocation140_spill] sm:$0xff] }
 0x2aa   : > { %5137 = vmatprep.subr.bf16.mxu0 %v9506_v24  ;;  %v9522_v24 = vld [vmem:[#allocation136_spill] sm:$0xff] }
 0x2ac   : > { %3232 = vmatmul.mubr.f32.gmra.mrb[26].mxu1 %v9507_v37 }
 0x2ad   : > { %3237 = vmatprep.mubr.f32.mxu1 %v9508_v30  ;;  %5075 = vmatpush1.bf16.xpose.msra.mxu1 %v9509_v3  ;;  %v9520_v3 = vld [vmem:[#allocation135_spill] sm:$0xff] }
 0x2ae   : > { %5077 = vmatprep.subr.bf16.mxu1 %v9510_v39  ;;  %v9521_v39 = vld [vmem:[#allocation139_spill] sm:$0xff] }
 0x2b0   : > { %3238 = vmatmul.mubr.f32.gmra.mrb[28].mxu1 %v9511_v28 }
 0x2b1   : > { %5139 = vmatpush1.bf16.xpose.msra.mxu0 %v9512_v16  ;;  %3243 = vmatprep.mubr.f32.mxu1 %v9513_v8  ;;  %v9523_v16 = vld [vmem:[#allocation145_spill] sm:$0xff] }
 0x2b2   : > { %5141 = vmatprep.subr.bf16.mxu0 %v9514_v32  ;;  %v9525_v32 = vld [vmem:[#allocation151_spill] sm:$0xff] }
 0x2b4   : > { %3244 = vmatmul.mubr.f32.gmra.mrb[30].mxu1 %v9515_v57 }
 0x2b5   : > { %3249 = vmatprep.mubr.f32.mxu1 %v9516_v55  ;;  %5079 = vmatpush1.bf16.xpose.msra.mxu1 %v9517_v12  ;;  %v9526_v12 = vld [vmem:[#allocation147_spill] sm:$0xff] }
 0x2b6   : > { %5081 = vmatprep.subr.bf16.mxu1 %v9518_v53  ;;  %v9527_v53 = vld [vmem:[#allocation146_spill] sm:$0xff] }
 0x2b8   : > { %3250 = vmatmul.mubr.f32.gmra.mrb[32].mxu1 %v9519_v13 }
 0x2b9   : > { %5143 = vmatpush1.bf16.xpose.msra.mxu0 %v9520_v3  ;;  %3255 = vmatprep.mubr.f32.mxu1 %v9521_v39  ;;  %v9528_v3 = vld [vmem:[#allocation156_spill] sm:$0xff] }
 0x2ba   : > { %5145 = vmatprep.subr.bf16.mxu0 %v9522_v24  ;;  %v9529_v24 = vld [vmem:[#allocation148_spill] sm:$0xff] }
 0x2bc   : > { %3256 = vmatmul.mubr.f32.gmra.mrb[34].mxu1 %v9523_v16 }
 0x2bd   : > { %3261 = vmatprep.mubr.f32.mxu1 %v9524_v0  ;;  %5083 = vmatpush1.bf16.xpose.msra.mxu1 %v7363_v14  ;;  %v9531_v14 = vld [vmem:[#allocation149_spill] sm:$0xff] }
 0x2be   : > { %5085 = vmatprep.subr.bf16.mxu1 %v9525_v32  ;;  %v9532_v32 = vld [vmem:[#allocation161_spill] sm:$0xff] }
 0x2c0   : > { %3866 = vmatmul.mubr.f32.vlgmr.msra.gmra.mrb[2].mxu0 %v9468_v7  ;;  %3262 = vmatmul.mubr.f32.gmra.mrb[36].mxu1 %v9526_v12  ;;  %v9533_v7 = vld [vmem:[#allocation160_spill] sm:$0xff] }
 0x2c1   : > { %3870 = vmatprep.mubr.f32.mxu0 %v9469_v4  ;;  %5147 = vmatpush1.bf16.xpose.msra.mxu0 %v9527_v53  ;;  %v9534_v4 = vld [vmem:[#allocation169_spill] sm:$0xff]  ;;  %v9546_v53 = vld [vmem:[#allocation194_spill] sm:$0xff] }
 0x2c2   : > { %5149 = vmatprep.subr.bf16.mxu0 %v9528_v3  ;;  %3267 = vmatprep.mubr.f32.mxu1 %v9529_v24  ;;  %v9541_v3 = vld [vmem:[#allocation182_spill] sm:$0xff] }
 0x2c4   : > { %3871 = vmatmul.mubr.f32.gmra.mrb[4].mxu0 %v9470_v61  ;;  %3268 = vmatmul.mubr.f32.gmra.mrb[38].mxu1 %v9530_v29  ;;  %v9535_v61 = vld [vmem:[#allocation163_spill] sm:$0xff] }
 0x2c5   : > { %3875 = vmatprep.mubr.f32.mxu0 %v9473_v15  ;;  %3273 = vmatprep.mubr.f32.mxu1 %v9531_v14  ;;  %v9536_v15 = vld [vmem:[#allocation180_spill] sm:$0xff] }
 0x2c6   : > { %5087 = vmatpush1.bf16.xpose.msra.mxu1 %v7391_v9  ;;  %v9537_v9 = vld [vmem:[#allocation164_spill] sm:$0xff] }
 0x2c7   : > { %5089 = vmatprep.subr.bf16.mxu1 %v7395_v1 }
 0x2c8   : > { %3876 = vmatmul.mubr.f32.gmra.mrb[6].mxu0 %v9474_v38  ;;  %3274 = vmatmul.mubr.f32.gmra.mrb[40].mxu1 %v9532_v32 }
 0x2c9   : > { %3880 = vmatprep.mubr.f32.mxu0 %v9475_v62  ;;  %5151 = vmatpush1.bf16.xpose.msra.mxu0 %v9533_v7  ;;  %v9538_v62 = vld [vmem:[#allocation181_spill] sm:$0xff]  ;;  %v9586_v7 = vld [vmem:[#allocation78_spill] sm:$0xff] }
 0x2ca   : > { %5153 = vmatprep.subr.bf16.mxu0 %v9534_v4  ;;  %3279 = vmatprep.mubr.f32.mxu1 %v9535_v61  ;;  %v9587_v4 = vld [vmem:[#allocation87_spill] sm:$0xff] }
 0x2cc   : > { %3881 = vmatmul.mubr.f32.gmra.mrb[8].mxu0 %v9476_v21  ;;  %3280 = vmatmul.mubr.f32.gmra.mrb[42].mxu1 %v9536_v15  ;;  %v9539_v21 = vld [vmem:[#allocation179_spill] sm:$0xff] }
 0x2cd   : > { %3885 = vmatprep.mubr.f32.mxu0 %v9478_v43  ;;  %3285 = vmatprep.mubr.f32.mxu1 %v9537_v9  ;;  %v9540_v43 = vld [vmem:[#allocation186_spill] sm:$0xff] }
 0x2ce   : > { %5091 = vmatpush1.bf16.xpose.msra.mxu1 %v7419_v40  ;;  %v9542_v40 = vld [vmem:[#allocation187_spill] sm:$0xff] }
 0x2cf   : > { %5093 = vmatprep.subr.bf16.mxu1 %v7423_v27  ;;  %v2752_v1 = vpop.f32.mrb[0].mxu1  ;;  %v9543_v27 = vld [vmem:[#allocation183_spill] sm:$0xff] }
 0x2d0   : > { %3886 = vmatmul.mubr.f32.gmra.mrb[10].mxu0 %v9480_v23  ;;  %4557 = vst [vmem:[%s7647_s4 + $0x10] sm:$0xff] %v2752_v1  ;;  %v2754_v38 = vpop.f32.mrb[1].mxu1  ;;  %3286 = vmatmul.mubr.f32.gmra.mrb[44].mxu1 %v9538_v62  ;;  %v9544_v23 = vld [vmem:[#allocation188_spill] sm:$0xff]  ;;  %v9591_v1 = vld [vmem:[#allocation99_spill] sm:$0xff] }
 0x2d1   : > { %3890 = vmatprep.mubr.f32.mxu0 %v9481_v26  ;;  %5155 = vmatpush1.bf16.xpose.msra.mxu0 %v9539_v21  ;;  %v9545_v26 = vld [vmem:[#allocation189_spill] sm:$0xff]  ;;  %v9594_v21 = vld [vmem:[#allocation106_spill] sm:$0xff] }
 0x2d2   : > { %5157 = vmatprep.subr.bf16.mxu0 %v9540_v43  ;;  %3291 = vmatprep.mubr.f32.mxu1 %v9541_v3  ;;  %v9592_v38 = vld [vmem:[#allocation93_spill] sm:$0xff]  ;;  %v9595_v43 = vld [vmem:[#allocation114_spill] sm:$0xff] }
 0x2d4   : > { %3891 = vmatmul.mubr.f32.gmra.mrb[12].mxu0 %v9482_v47  ;;  %3292 = vmatmul.mubr.f32.gmra.mrb[46].mxu1 %v9542_v40  ;;  %v9547_v47 = vld [vmem:[#allocation191_spill] sm:$0xff] }
 0x2d5   : > { %3895 = vmatprep.mubr.f32.mxu0 %v9484_v41  ;;  %3297 = vmatprep.mubr.f32.mxu1 %v9543_v27  ;;  %v9548_v41 = vld [vmem:[#allocation198_spill] sm:$0xff] }
 0x2d6   : > { %5095 = vmatpush1.bf16.xpose.msra.mxu1 %v7447_v49  ;;  %v9549_v49 = vld [vmem:[#allocation192_spill] sm:$0xff] }
 0x2d7   : > { %5097 = vmatprep.subr.bf16.mxu1 %v7451_v36  ;;  %v9550_v36 = vld [vmem:[#allocation199_spill] sm:$0xff] }
 0x2d8   : > { %3896 = vmatmul.mubr.f32.gmra.mrb[14].mxu0 %v9486_v50  ;;  %3298 = vmatmul.mubr.f32.gmra.mrb[48].mxu1 %v9544_v23  ;;  %v9551_v50 = vld [vmem:[#allocation200_spill] sm:$0xff] }
 0x2d9   : > { %3900 = vmatprep.mubr.f32.mxu0 %v9487_v51  ;;  %5159 = vmatpush1.bf16.xpose.msra.mxu0 %v9545_v26  ;;  %v9552_v51 = vld [vmem:[#allocation203_spill] sm:$0xff]  ;;  %v9600_v26 = vld [vmem:[#allocation121_spill] sm:$0xff] }
 0x2da   : > { %5161 = vmatprep.subr.bf16.mxu0 %v9546_v53  ;;  %3303 = vmatprep.mubr.f32.mxu1 %v9547_v47  ;;  %v9601_v53 = vld [vmem:[#allocation132_spill] sm:$0xff] }
 0x2dc   : > { %3901 = vmatmul.mubr.f32.gmra.mrb[16].mxu0 %v9488_v6  ;;  %3304 = vmatmul.mubr.f32.gmra.mrb[50].mxu1 %v9548_v41  ;;  %v9553_v6 = vld [vmem:[#allocation201_spill] sm:$0xff] }
 0x2dd   : > { %3905 = vmatprep.mubr.f32.mxu0 %v9490_v5  ;;  %3309 = vmatprep.mubr.f32.mxu1 %v9549_v49  ;;  %v9554_v5 = vld [vmem:[#allocation206_spill] sm:$0xff] }
 0x2de   : > { %5099 = vmatpush1.bf16.xpose.msra.mxu1 %v7475_v19  ;;  %v9555_v19 = vld [vmem:[#allocation202_spill] sm:$0xff] }
 0x2df   : > { %5101 = vmatprep.subr.bf16.mxu1 %v7479_v17  ;;  %v9556_v17 = vld [vmem:[#allocation207_spill] sm:$0xff] }
 0x2e0   : > { %3906 = vmatmul.mubr.f32.gmra.mrb[18].mxu0 %v9492_v42  ;;  %3310 = vmatmul.mubr.f32.gmra.mrb[52].mxu1 %v9550_v36  ;;  %v9557_v42 = vld [vmem:[#allocation208_spill] sm:$0xff] }
 0x2e1   : > { %3910 = vmatprep.mubr.f32.mxu0 %v9493_v58  ;;  %5163 = vmatpush1.bf16.xpose.msra.mxu0 %v9551_v50  ;;  %v9558_v58 = vld [vmem:[#allocation211_spill] sm:$0xff]  ;;  %v9606_v50 = vld [vmem:[#allocation40_spill] sm:$0xff] }
 0x2e2   : > { %5165 = vmatprep.subr.bf16.mxu0 %v9552_v51  ;;  %3315 = vmatprep.mubr.f32.mxu1 %v9553_v6  ;;  %v9607_v51 = vld [vmem:[#allocation34_spill] sm:$0xff] }
 0x2e4   : > { %3911 = vmatmul.mubr.f32.gmra.mrb[20].mxu0 %v9495_v31  ;;  %3316 = vmatmul.mubr.f32.gmra.mrb[54].mxu1 %v9554_v5  ;;  %v9559_v31 = vld [vmem:[#allocation209_spill] sm:$0xff] }
 0x2e5   : > { %3915 = vmatprep.mubr.f32.mxu0 %v9497_v54  ;;  %3321 = vmatprep.mubr.f32.mxu1 %v9555_v19  ;;  %v9560_v54 = vld [vmem:[#allocation216_spill] sm:$0xff] }
 0x2e6   : > { %5103 = vmatpush1.bf16.xpose.msra.mxu1 %v7504_v11  ;;  %v9561_v11 = vld [vmem:[#allocation210_spill] sm:$0xff] }
 0x2e7   : > { %5105 = vmatprep.subr.bf16.mxu1 %v7509_v33  ;;  %v9563_v33 = vld [vmem:[#allocation218_spill] sm:$0xff] }
 0x2e8   : > { %3916 = vmatmul.mubr.f32.gmra.mrb[22].mxu0 %v9499_v52  ;;  %3322 = vmatmul.mubr.f32.gmra.mrb[56].mxu1 %v9556_v17  ;;  %v9562_v52 = vld [vmem:[#allocation217_spill] sm:$0xff] }
 0x2e9   : > { %3920 = vmatprep.mubr.f32.mxu0 %v9500_v20  ;;  %5167 = vmatpush1.bf16.xpose.msra.mxu0 %v9557_v42  ;;  %v9564_v20 = vld [vmem:[#allocation221_spill] sm:$0xff]  ;;  %v9614_v42 = vld [vmem:[#allocation48_spill] sm:$0xff] }
 0x2ea   : > { %5169 = vmatprep.subr.bf16.mxu0 %v9558_v58  ;;  %3327 = vmatprep.mubr.f32.mxu1 %v9559_v31 }
 0x2ec   : > { %3921 = vmatmul.mubr.f32.gmra.mrb[24].mxu0 %v9503_v2  ;;  %3328 = vmatmul.mubr.f32.gmra.mrb[58].mxu1 %v9560_v54  ;;  %v9565_v2 = vld [vmem:[#allocation219_spill] sm:$0xff] }
 0x2ed   : > { %3925 = vmatprep.mubr.f32.mxu0 %v9505_v45  ;;  %3333 = vmatprep.mubr.f32.mxu1 %v9561_v11  ;;  %v9566_v45 = vld [vmem:[#allocation27_spill] sm:$0xff] }
 0x2ee   : > { %5107 = vmatpush1.bf16.xpose.msra.mxu1 %v7529_v10  ;;  %v9567_v10 = vld [vmem:[#allocation220_spill] sm:$0xff] }
 0x2ef   : > { %5109 = vmatprep.subr.bf16.mxu1 %v7533_v48  ;;  %v9570_v48 = vld [vmem:[#allocation25_spill] sm:$0xff] }
 0x2f0   : > { %3926 = vmatmul.mubr.f32.gmra.mrb[26].mxu0 %v9507_v37  ;;  %3334 = vmatmul.mubr.f32.gmra.mrb[60].mxu1 %v9562_v52  ;;  %v9568_v37 = vld [vmem:[#allocation224_spill] sm:$0xff] }
 0x2f1   : > { %3930 = vmatprep.mubr.f32.mxu0 %v9508_v30  ;;  %5171 = vmatpush1.bf16.xpose.msra.mxu0 %v9563_v33  ;;  %v9569_v30 = vld [vmem:[#allocation225_spill] sm:$0xff] }
 0x2f2   : > { %5173 = vmatprep.subr.bf16.mxu0 %v9564_v20  ;;  %3339 = vmatprep.mubr.f32.mxu1 %v9565_v2  ;;  %v9617_v20 = vld [vmem:[#allocation70_spill] sm:$0xff] }
 0x2f4   : > { %3931 = vmatmul.mubr.f32.gmra.mrb[28].mxu0 %v9511_v28  ;;  %3340 = vmatmul.mubr.f32.gmra.mrb[62].mxu1 %v9566_v45  ;;  %v9571_v28 = vld [vmem:[#allocation32_spill] sm:$0xff] }
 0x2f5   : > { %3935 = vmatprep.mubr.f32.mxu0 %v9513_v8  ;;  %3345 = vmatprep.mubr.f32.mxu1 %v9567_v10  ;;  %v9572_v8 = vld [vmem:[#allocation26_spill] sm:$0xff] }
 0x2f6   : > { %5111 = vmatpush1.bf16.xpose.msra.mxu1 %v7545_v18  ;;  %v9573_v18 = vld [vmem:[#allocation33_spill] sm:$0xff] }
 0x2f7   : > { %5176 = vmatprep.subr.bf16.mxu1 %v9467_v63  ;;  %v9577_v63 = vld [vmem:[#allocation46_spill] sm:$0xff] }
 0x2f8   : > { %3936 = vmatmul.mubr.f32.gmra.mrb[30].mxu0 %v9515_v57  ;;  %3346 = vmatmul.mubr.f32.gmra.mrb[64].mxu1 %v9568_v37  ;;  %v9574_v57 = vld [vmem:[#allocation36_spill] sm:$0xff] }
 0x2f9   : > { %3940 = vmatprep.mubr.f32.mxu0 %v9516_v55  ;;  %5175 = vmatpush1.bf16.xpose.msra.mxu0 %v9569_v30  ;;  %v9575_v55 = vld [vmem:[#allocation45_spill] sm:$0xff] }
 0x2fa   : > { %3351 = vmatprep.mubr.f32.mxu1 %v9570_v48 }
 0x2fc   : > { %3941 = vmatmul.mubr.f32.gmra.mrb[32].mxu0 %v9519_v13  ;;  %3352 = vmatmul.mubr.f32.gmra.mrb[66].mxu1 %v9571_v28  ;;  %v9576_v13 = vld [vmem:[#allocation37_spill] sm:$0xff] }
 0x2fd   : > { %3945 = vmatprep.mubr.f32.mxu0 %v9521_v39  ;;  %3357 = vmatprep.mubr.f32.mxu1 %v9572_v8  ;;  %v9580_v39 = vld [vmem:[#allocation51_spill] sm:$0xff] }
 0x300   : > { %3946 = vmatmul.mubr.f32.gmra.mrb[34].mxu0 %v9523_v16  ;;  %3358 = vmatmul.mubr.f32.gmra.mrb[68].mxu1 %v9573_v18  ;;  %v9578_v16 = vld [vmem:[#allocation50_spill] sm:$0xff] }
 0x301   : > { %3950 = vmatprep.mubr.f32.mxu0 %v9524_v0  ;;  %3363 = vmatprep.mubr.f32.mxu1 %v9574_v57  ;;  %v9579_v0 = vld [vmem:[#allocation59_spill] sm:$0xff] }
 0x304   : > { %3951 = vmatmul.mubr.f32.gmra.mrb[36].mxu0 %v9526_v12  ;;  %3364 = vmatmul.mubr.f32.gmra.mrb[70].mxu1 %v9575_v55  ;;  %v9581_v12 = vld [vmem:[#allocation61_spill] sm:$0xff] }
 0x305   : > { %3955 = vmatprep.mubr.f32.mxu0 %v9529_v24  ;;  %3369 = vmatprep.mubr.f32.mxu1 %v9576_v13  ;;  %v9583_v24 = vld [vmem:[#allocation73_spill] sm:$0xff] }
 0x308   : > { %3956 = vmatmul.mubr.f32.gmra.mrb[38].mxu0 %v9530_v29  ;;  %3370 = vmatmul.mubr.f32.gmra.mrb[72].mxu1 %v9577_v63  ;;  %v9582_v29 = vld [vmem:[#allocation64_spill] sm:$0xff] }
 0x309   : > { %3960 = vmatprep.mubr.f32.mxu0 %v9531_v14  ;;  %3375 = vmatprep.mubr.f32.mxu1 %v9578_v16  ;;  %v9584_v14 = vld [vmem:[#allocation65_spill] sm:$0xff] }
 0x30c   : > { %3961 = vmatmul.mubr.f32.gmra.mrb[40].mxu0 %v9532_v32  ;;  %3376 = vmatmul.mubr.f32.gmra.mrb[74].mxu1 %v9579_v0  ;;  %v9585_v32 = vld [vmem:[#allocation75_spill] sm:$0xff] }
 0x30d   : > { %3965 = vmatprep.mubr.f32.mxu0 %v9535_v61  ;;  %3381 = vmatprep.mubr.f32.mxu1 %v9580_v39  ;;  %v9588_v61 = vld [vmem:[#allocation79_spill] sm:$0xff] }
 0x310   : > { %3966 = vmatmul.mubr.f32.gmra.mrb[42].mxu0 %v9536_v15  ;;  %3382 = vmatmul.mubr.f32.gmra.mrb[76].mxu1 %v9581_v12  ;;  %v9589_v15 = vld [vmem:[#allocation89_spill] sm:$0xff] }
 0x311   : > { %3970 = vmatprep.mubr.f32.mxu0 %v9537_v9  ;;  %3387 = vmatprep.mubr.f32.mxu1 %v9582_v29  ;;  %v9590_v9 = vld [vmem:[#allocation92_spill] sm:$0xff] }
 0x314   : > { %3971 = vmatmul.mubr.f32.gmra.mrb[44].mxu0 %v9538_v62  ;;  %3388 = vmatmul.mubr.f32.gmra.mrb[78].mxu1 %v9583_v24  ;;  %v9593_v62 = vld [vmem:[#allocation102_spill] sm:$0xff] }
 0x315   : > { %3975 = vmatprep.mubr.f32.mxu0 %v9541_v3  ;;  %3393 = vmatprep.mubr.f32.mxu1 %v9584_v14  ;;  %v9596_v3 = vld [vmem:[#allocation107_spill] sm:$0xff] }
 0x318   : > { %3976 = vmatmul.mubr.f32.gmra.mrb[46].mxu0 %v9542_v40  ;;  %3394 = vmatmul.mubr.f32.gmra.mrb[80].mxu1 %v9585_v32  ;;  %v9597_v40 = vld [vmem:[#allocation115_spill] sm:$0xff] }
 0x319   : > { %3980 = vmatprep.mubr.f32.mxu0 %v9543_v27  ;;  %3399 = vmatprep.mubr.f32.mxu1 %v9586_v7  ;;  %v9598_v27 = vld [vmem:[#allocation120_spill] sm:$0xff] }
 0x31c   : > { %3981 = vmatmul.mubr.f32.gmra.mrb[48].mxu0 %v9544_v23  ;;  %3400 = vmatmul.mubr.f32.gmra.mrb[82].mxu1 %v9587_v4  ;;  %v9599_v23 = vld [vmem:[#allocation130_spill] sm:$0xff] }
 0x31d   : > { %3985 = vmatprep.mubr.f32.mxu0 %v9547_v47  ;;  %3405 = vmatprep.mubr.f32.mxu1 %v9588_v61  ;;  %v9602_v47 = vld [vmem:[#allocation227_spill] sm:$0xff] }
 0x320   : > { %3986 = vmatmul.mubr.f32.gmra.mrb[50].mxu0 %v9548_v41  ;;  %3406 = vmatmul.mubr.f32.gmra.mrb[84].mxu1 %v9589_v15  ;;  %v9603_v41 = vld [vmem:[#allocation228_spill] sm:$0xff] }
 0x321   : > { %3990 = vmatprep.mubr.f32.mxu0 %v9549_v49  ;;  %3411 = vmatprep.mubr.f32.mxu1 %v9590_v9  ;;  %v9604_v49 = vld [vmem:[#allocation226_spill] sm:$0xff] }
 0x324   : > { %3991 = vmatmul.mubr.f32.gmra.mrb[52].mxu0 %v9550_v36  ;;  %3412 = vmatmul.mubr.f32.gmra.mrb[86].mxu1 %v9591_v1  ;;  %v9605_v36 = vld [vmem:[#allocation28_spill] sm:$0xff] }
 0x325   : > { %3995 = vmatprep.mubr.f32.mxu0 %v9553_v6  ;;  %3417 = vmatprep.mubr.f32.mxu1 %v9592_v38  ;;  %v9610_v6 = vld [vmem:[#allocation47_spill] sm:$0xff] }
 0x328   : > { %3996 = vmatmul.mubr.f32.gmra.mrb[54].mxu0 %v9554_v5  ;;  %3418 = vmatmul.mubr.f32.gmra.mrb[88].mxu1 %v9593_v62  ;;  %v9611_v5 = vld [vmem:[#allocation54_spill] sm:$0xff] }
 0x329   : > { %4000 = vmatprep.mubr.f32.mxu0 %v9555_v19  ;;  %3423 = vmatprep.mubr.f32.mxu1 %v9594_v21 }
 0x32c   : > { %4001 = vmatmul.mubr.f32.gmra.mrb[56].mxu0 %v9556_v17  ;;  %3424 = vmatmul.mubr.f32.gmra.mrb[90].mxu1 %v9595_v43  ;;  %v9613_v17 = vld [vmem:[#allocation57_spill] sm:$0xff] }
 0x32d   : > { %4005 = vmatprep.mubr.f32.mxu0 %v9559_v31  ;;  %3429 = vmatprep.mubr.f32.mxu1 %v9596_v3 }
 0x330   : > { %4006 = vmatmul.mubr.f32.gmra.mrb[58].mxu0 %v9560_v54  ;;  %3430 = vmatmul.mubr.f32.gmra.mrb[92].mxu1 %v9597_v40  ;;  %v9615_v54 = vld [vmem:[#allocation68_spill] sm:$0xff] }
 0x331   : > { %4010 = vmatprep.mubr.f32.mxu0 %v9561_v11  ;;  %3435 = vmatprep.mubr.f32.mxu1 %v9598_v27  ;;  %v9616_v11 = vld [vmem:[#allocation60_spill] sm:$0xff] }
 0x334   : > { %4011 = vmatmul.mubr.f32.gmra.mrb[60].mxu0 %v9562_v52  ;;  %3436 = vmatmul.mubr.f32.gmra.mrb[94].mxu1 %v9599_v23 }
 0x335   : > { %4015 = vmatprep.mubr.f32.mxu0 %v9565_v2  ;;  %3441 = vmatprep.mubr.f32.mxu1 %v9600_v26  ;;  %v9618_v2 = vld [vmem:[#allocation62_spill] sm:$0xff] }
 0x338   : > { %4016 = vmatmul.mubr.f32.gmra.mrb[62].mxu0 %v9566_v45  ;;  %3442 = vmatmul.mubr.f32.gmra.mrb[96].mxu1 %v9601_v53 }
 0x339   : > { %4020 = vmatprep.mubr.f32.mxu0 %v9567_v10  ;;  %3512 = vmatprep.mubr.f32.mxu1 %v9602_v47  ;;  %v9619_v10 = vld [vmem:[#allocation82_spill] sm:$0xff] }
 0x33c   : > { %4021 = vmatmul.mubr.f32.gmra.mrb[64].mxu0 %v9568_v37  ;;  %3513 = vmatmul.mubr.f32.vlgmr.msra.gmra.mrb[98].mxu1 %v9603_v41  ;;  %v9621_v37 = vld [vmem:[#allocation94_spill] sm:$0xff] }
 0x33d   : > { %4025 = vmatprep.mubr.f32.mxu0 %v9570_v48  ;;  %5184 = vmatpush1.bf16.xpose.msra.mxu1 %v9471_v46  ;;  %v9608_v46 = vld [vmem:[#allocation43_spill] sm:$0xff] }
 0x33e   : > { %3518 = vmatprep.mubr.f32.mxu1 %v9604_v49  ;;  %5177 = vmatprep.subr.bf16.mxu1 %v9472_v60  ;;  %v9609_v60 = vld [vmem:[#allocation23_spill] sm:$0xff] }
 0x340   : > { %4026 = vmatmul.mubr.f32.gmra.mrb[66].mxu0 %v9571_v28  ;;  %3519 = vmatmul.mubr.f32.gmra.mrb[100].mxu1 %v9605_v36  ;;  %v9622_v28 = vld [vmem:[#allocation85_spill] sm:$0xff] }
 0x341   : > { %4030 = vmatprep.mubr.f32.mxu0 %v9572_v8  ;;  %3524 = vmatprep.mubr.f32.mxu1 %v9606_v50  ;;  %v9623_v8 = vld [vmem:[#allocation76_spill] sm:$0xff] }
 0x344   : > { %4031 = vmatmul.mubr.f32.gmra.mrb[68].mxu0 %v9573_v18  ;;  %3525 = vmatmul.mubr.f32.gmra.mrb[102].mxu1 %v9607_v51 }
 0x345   : > { %4035 = vmatprep.mubr.f32.mxu0 %v9574_v57  ;;  %5185 = vmatpush1.bf16.xpose.msra.mxu1 %v9477_v35  ;;  %v9612_v35 = vld [vmem:[#allocation144_spill] sm:$0xff]  ;;  %v9624_v57 = vld [vmem:[#allocation103_spill] sm:$0xff] }
 0x346   : > { %3530 = vmatprep.mubr.f32.mxu1 %v9608_v46  ;;  %5178 = vmatprep.subr.bf16.mxu1 %v9479_v25 }
 0x348   : > { %4036 = vmatmul.mubr.f32.gmra.mrb[70].mxu0 %v9575_v55  ;;  %3531 = vmatmul.mubr.f32.gmra.mrb[104].mxu1 %v9609_v60  ;;  %v9625_v55 = vld [vmem:[#allocation105_spill] sm:$0xff] }
 0x349   : > { %4040 = vmatprep.mubr.f32.mxu0 %v9576_v13  ;;  %3536 = vmatprep.mubr.f32.mxu1 %v9610_v6  ;;  %v9626_v13 = vld [vmem:[#allocation88_spill] sm:$0xff] }
 0x34c   : > { %4041 = vmatmul.mubr.f32.gmra.mrb[72].mxu0 %v9577_v63  ;;  %3537 = vmatmul.mubr.f32.gmra.mrb[106].mxu1 %v9611_v5  ;;  %v9627_v63 = vld [vmem:[#allocation108_spill] sm:$0xff] }
 0x34d   : > { %4045 = vmatprep.mubr.f32.mxu0 %v9578_v16  ;;  %5186 = vmatpush1.bf16.xpose.msra.mxu1 %v9483_v22 }
 0x34e   : > { %3542 = vmatprep.mubr.f32.mxu1 %v9612_v35  ;;  %5179 = vmatprep.subr.bf16.mxu1 %v9485_v56 }
 0x34f   : > { %v7804_v25 = vpop.f32.mrb[2].mxu1 }
 0x350   : > { %4046 = vmatmul.mubr.f32.gmra.mrb[74].mxu0 %v9579_v0  ;;  %v7807_v19 = vpop.f32.mrb[3].mxu1  ;;  %3543 = vmatmul.mubr.f32.gmra.mrb[108].mxu1 %v9613_v17 }
 0x351   : > { %4050 = vmatprep.mubr.f32.mxu0 %v9580_v39  ;;  %3548 = vmatprep.mubr.f32.mxu1 %v9614_v42  ;;  %v9628_v39 = vld [vmem:[#allocation90_spill] sm:$0xff] }
 0x353   : > { %v2611_v58 = vpop.f32.mrb[0].mxu0  ;;  %v7812_v31 = vpop.f32.mrb[4].mxu1 }
 0x354   : > { %4555 = vst [vmem:[%s7647_s4] sm:$0xff] %v2611_v58  ;;  %v2613_v22 = vpop.f32.mrb[1].mxu0  ;;  %4051 = vmatmul.mubr.f32.gmra.mrb[76].mxu0 %v9581_v12  ;;  %v7816_v56 = vpop.f32.mrb[5].mxu1  ;;  %3549 = vmatmul.mubr.f32.gmra.mrb[110].mxu1 %v9615_v54  ;;  %v9629_v12 = vld [vmem:[#allocation101_spill] sm:$0xff]  ;;  %v9637_v58 = vld [vmem:[#allocation135_spill] sm:$0xff] }
 0x355   : > { %4556 = vst [vmem:[%s7647_s4 + $0x8] sm:$0xff] %v2613_v22  ;;  %4055 = vmatprep.mubr.f32.mxu0 %v9582_v29  ;;  %5187 = vmatpush1.bf16.xpose.msra.mxu1 %v9489_v34 }
 0x356   : > { %3554 = vmatprep.mubr.f32.mxu1 %v9616_v11  ;;  %5180 = vmatprep.subr.bf16.mxu1 %v9491_v44  ;;  %v9620_v44 = vld [vmem:[#allocation74_spill] sm:$0xff] }
 0x357   : > { %v7824_v52 = vpop.f32.mrb[6].mxu1 }
 0x358   : > { %4056 = vmatmul.mubr.f32.gmra.mrb[78].mxu0 %v9583_v24  ;;  %v7827_v33 = vpop.f32.mrb[7].mxu1  ;;  %3555 = vmatmul.mubr.f32.gmra.mrb[112].mxu1 %v9617_v20 }
 0x359   : > { %4060 = vmatprep.mubr.f32.mxu0 %v9584_v14  ;;  %3560 = vmatprep.mubr.f32.mxu1 %v9618_v2  ;;  %v9630_v14 = vld [vmem:[#allocation112_spill] sm:$0xff] }
 0x35b   : > { %v7832_v45 = vpop.f32.mrb[8].mxu1 }
 0x35c   : > { %4061 = vmatmul.mubr.f32.gmra.mrb[80].mxu0 %v9585_v32  ;;  %v7835_v34 = vpop.f32.mrb[9].mxu1  ;;  %3561 = vmatmul.mubr.f32.gmra.mrb[114].mxu1 %v9619_v10  ;;  %v9631_v32 = vld [vmem:[#allocation119_spill] sm:$0xff] }
 0x35d   : > { %4170 = vmatprep.mubr.f32.mxu0 %v9602_v47  ;;  %5188 = vmatpush1.bf16.xpose.msra.mxu1 %v9496_v59  ;;  %v9632_v47 = vld [vmem:[#allocation116_spill] sm:$0xff] }
 0x35e   : > { %3566 = vmatprep.mubr.f32.mxu1 %v9620_v44  ;;  %5181 = vmatprep.subr.bf16.mxu1 %v9621_v37  ;;  %v9639_v37 = vld [vmem:[#allocation231_spill] sm:$0xff] }
 0x35f   : > { %v7842_v30 = vpop.f32.mrb[10].mxu1 }
 0x360   : > { %4171 = vmatmul.mubr.f32.vlgmr.msra.gmra.mrb[2].mxu0 %v9603_v41  ;;  %v7845_v48 = vpop.f32.mrb[11].mxu1  ;;  %3567 = vmatmul.mubr.f32.gmra.mrb[116].mxu1 %v9622_v28  ;;  %v9633_v41 = vld [vmem:[#allocation122_spill] sm:$0xff] }
 0x361   : > { %4175 = vmatprep.mubr.f32.mxu0 %v9604_v49  ;;  %3572 = vmatprep.mubr.f32.mxu1 %v9623_v8 }
 0x363   : > { %v7850_v18 = vpop.f32.mrb[12].mxu1 }
 0x364   : > { %4176 = vmatmul.mubr.f32.gmra.mrb[4].mxu0 %v9605_v36  ;;  %v7853_v59 = vpop.f32.mrb[13].mxu1  ;;  %3573 = vmatmul.mubr.f32.gmra.mrb[118].mxu1 %v9624_v57 }
 0x365   : > { %4180 = vmatprep.mubr.f32.mxu0 %v9606_v50  ;;  %5189 = vmatpush1.bf16.xpose.msra.mxu1 %v9625_v55  ;;  %v9634_v50 = vld [vmem:[#allocation229_spill] sm:$0xff] }
 0x366   : > { %3578 = vmatprep.mubr.f32.mxu1 %v9626_v13  ;;  %5182 = vmatprep.subr.bf16.mxu1 %v9627_v63  ;;  %v9642_v63 = vld [vmem:[#allocation232_spill] sm:$0xff] }
 0x367   : > { %v7860_v16 = vpop.f32.mrb[14].mxu1 }
 0x368   : > { %4181 = vmatmul.mubr.f32.gmra.mrb[6].mxu0 %v9607_v51  ;;  %v7863_v0 = vpop.f32.mrb[15].mxu1  ;;  %3579 = vmatmul.mubr.f32.gmra.mrb[120].mxu1 %v9628_v39  ;;  %v9635_v51 = vld [vmem:[#allocation123_spill] sm:$0xff] }
 0x369   : > { %4185 = vmatprep.mubr.f32.mxu0 %v9608_v46  ;;  %3584 = vmatprep.mubr.f32.mxu1 %v9629_v12 }
 0x36b   : > { %v7868_v29 = vpop.f32.mrb[16].mxu1 }
 0x36c   : > { %4186 = vmatmul.mubr.f32.gmra.mrb[8].mxu0 %v9609_v60  ;;  %v7871_v24 = vpop.f32.mrb[17].mxu1  ;;  %3585 = vmatmul.mubr.f32.gmra.mrb[122].mxu1 %v9630_v14 }
 0x36d   : > { %4190 = vmatprep.mubr.f32.mxu0 %v9610_v6  ;;  %5190 = vmatpush1.bf16.xpose.msra.mxu1 %v9631_v32  ;;  %v9636_v6 = vld [vmem:[#allocation230_spill] sm:$0xff] }
 0x36e   : > { %3590 = vmatprep.mubr.f32.mxu1 %v9632_v47  ;;  %5183 = vmatprep.subr.bf16.mxu1 %v9633_v41  ;;  %v9643_v32 = vld [vmem:[#allocation138_spill] sm:$0xff] }
 0x36f   : > { %v7878_v49 = vpop.f32.mrb[18].mxu1 }
 0x370   : > { %4191 = vmatmul.mubr.f32.gmra.mrb[10].mxu0 %v9611_v5  ;;  %v7881_v36 = vpop.f32.mrb[19].mxu1  ;;  %3591 = vmatmul.mubr.f32.gmra.mrb[124].mxu1 %v9634_v50  ;;  %v9638_v5 = vld [vmem:[#allocation124_spill] sm:$0xff] }
 0x371   : > { %4195 = vmatprep.mubr.f32.mxu0 %v9612_v35  ;;  %3596 = vmatprep.mubr.f32.mxu1 %v9635_v51 }
 0x373   : > { %v7886_v46 = vpop.f32.mrb[20].mxu1 }
 0x374   : > { %4196 = vmatmul.mubr.f32.gmra.mrb[12].mxu0 %v9613_v17  ;;  %v7889_v60 = vpop.f32.mrb[21].mxu1  ;;  %3597 = vmatmul.mubr.f32.gmra.mrb[126].mxu1 %v9636_v6  ;;  %v9640_v17 = vld [vmem:[#allocation137_spill] sm:$0xff] }
 0x375   : > { %4200 = vmatprep.mubr.f32.mxu0 %v9614_v42  ;;  %5191 = vmatpush1.bf16.xpose.msra.mxu1 %v9637_v58  ;;  %v9647_v58 = vld [vmem:[#allocation154_spill] sm:$0xff] }
 0x376   : > { %3602 = vmatprep.mubr.f32.mxu1 %v9638_v5 }
 0x377   : > { %v7895_v22 = vpop.f32.mrb[22].mxu1 }
 0x378   : > { %4201 = vmatmul.mubr.f32.gmra.mrb[14].mxu0 %v9615_v54  ;;  %v7898_v35 = vpop.f32.mrb[23].mxu1  ;;  %3603 = vmatmul.mubr.f32.gmra.mrb[128].mxu1 %v9639_v37 }
 0x379   : > { %4205 = vmatprep.mubr.f32.mxu0 %v9616_v11  ;;  %3608 = vmatprep.mubr.f32.mxu1 %v9640_v17  ;;  %v9646_v11 = vld [vmem:[#allocation233_spill] sm:$0xff] }
 0x37b   : > { %v7903_v55 = vpop.f32.mrb[24].mxu1 }
 0x37c   : > { %4206 = vmatmul.mubr.f32.gmra.mrb[16].mxu0 %v9617_v20  ;;  %v7906_v42 = vpop.f32.mrb[25].mxu1  ;;  %3609 = vmatmul.mubr.f32.gmra.mrb[130].mxu1 %v9642_v63 }
 0x37d   : > { %9641 = vst [vmem:[#allocation31_spill] sm:$0xff] %v7906_v42  ;;  %4210 = vmatprep.mubr.f32.mxu0 %v9618_v2  ;;  %3614 = vmatprep.mubr.f32.mxu1 %v9643_v32  ;;  %v9650_v2 = vld [vmem:[#allocation153_spill] sm:$0xff] }
 0x37f   : > { %v7911_v54 = vpop.f32.mrb[26].mxu1 }
 0x380   : > { %9644 = vst [vmem:[#allocation29_spill] sm:$0xff] %v7911_v54  ;;  %4211 = vmatmul.mubr.f32.gmra.mrb[18].mxu0 %v9619_v10  ;;  %v7914_v41 = vpop.f32.mrb[27].mxu1  ;;  %3615 = vmatmul.mubr.f32.gmra.mrb[132].mxu1 %v9646_v11  ;;  %v9651_v54 = vld [vmem:[#allocation155_spill] sm:$0xff] }
 0x381   : > { %9645 = vst [vmem:[#allocation24_spill] sm:$0xff] %v7914_v41  ;;  %4215 = vmatprep.mubr.f32.mxu0 %v9620_v44  ;;  %3620 = vmatprep.mubr.f32.mxu1 %v9647_v58  ;;  %v9654_v44 = vld [vmem:[#allocation234_spill] sm:$0xff] }
 0x383   : > { %v7919_v20 = vpop.f32.mrb[28].mxu1 }
 0x384   : > { %9648 = vst [vmem:[#allocation30_spill] sm:$0xff] %v7919_v20  ;;  %4216 = vmatmul.mubr.f32.gmra.mrb[20].mxu0 %v9622_v28  ;;  %v7922_v42 = vpop.f32.mrb[29].mxu1  ;;  %3621 = vmatmul.mubr.f32.gmra.mrb[134].mxu1 %v9650_v2  ;;  %v9655_v20 = vld [vmem:[#allocation168_spill] sm:$0xff] }
 0x385   : > { %9649 = vst [vmem:[#allocation35_spill] sm:$0xff] %v7922_v42  ;;  %4220 = vmatprep.mubr.f32.mxu0 %v9623_v8  ;;  %3626 = vmatprep.mubr.f32.mxu1 %v9651_v54  ;;  %v9658_v8 = vld [vmem:[#allocation162_spill] sm:$0xff] }
 0x387   : > { %v7927_v10 = vpop.f32.mrb[30].mxu1 }
 0x388   : > { %9652 = vst [vmem:[#allocation38_spill] sm:$0xff] %v7927_v10  ;;  %4221 = vmatmul.mubr.f32.gmra.mrb[22].mxu0 %v9624_v57  ;;  %v7930_v41 = vpop.f32.mrb[31].mxu1  ;;  %3627 = vmatmul.mubr.f32.gmra.mrb[136].mxu1 %v9654_v44  ;;  %v9659_v10 = vld [vmem:[#allocation172_spill] sm:$0xff] }
 0x389   : > { %9653 = vst [vmem:[#allocation39_spill] sm:$0xff] %v7930_v41  ;;  %4225 = vmatprep.mubr.f32.mxu0 %v9626_v13  ;;  %3632 = vmatprep.mubr.f32.mxu1 %v9655_v20  ;;  %v9662_v13 = vld [vmem:[#allocation167_spill] sm:$0xff] }
 0x38b   : > { %v7935_v28 = vpop.f32.mrb[32].mxu1 }
 0x38c   : > { %9656 = vst [vmem:[#allocation42_spill] sm:$0xff] %v7935_v28  ;;  %4226 = vmatmul.mubr.f32.gmra.mrb[24].mxu0 %v9628_v39  ;;  %v7938_v42 = vpop.f32.mrb[33].mxu1  ;;  %3633 = vmatmul.mubr.f32.gmra.mrb[138].mxu1 %v9658_v8  ;;  %v9663_v28 = vld [vmem:[#allocation178_spill] sm:$0xff] }
 0x38d   : > { %9657 = vst [vmem:[#allocation41_spill] sm:$0xff] %v7938_v42  ;;  %4230 = vmatprep.mubr.f32.mxu0 %v9629_v12  ;;  %3638 = vmatprep.mubr.f32.mxu1 %v9659_v10  ;;  %v9666_v12 = vld [vmem:[#allocation236_spill] sm:$0xff] }
 0x38f   : > { %v7943_v57 = vpop.f32.mrb[34].mxu1 }
 0x390   : > { %9660 = vst [vmem:[#allocation44_spill] sm:$0xff] %v7943_v57  ;;  %4231 = vmatmul.mubr.f32.gmra.mrb[26].mxu0 %v9630_v14  ;;  %v7946_v41 = vpop.f32.mrb[35].mxu1  ;;  %3639 = vmatmul.mubr.f32.gmra.mrb[140].mxu1 %v9662_v13  ;;  %v9667_v57 = vld [vmem:[#allocation235_spill] sm:$0xff] }
 0x391   : > { %9661 = vst [vmem:[#allocation49_spill] sm:$0xff] %v7946_v41  ;;  %4235 = vmatprep.mubr.f32.mxu0 %v9632_v47  ;;  %3644 = vmatprep.mubr.f32.mxu1 %v9663_v28  ;;  %v9670_v47 = vld [vmem:[#allocation237_spill] sm:$0xff] }
 0x393   : > { %v7951_v39 = vpop.f32.mrb[36].mxu1 }
 0x394   : > { %9664 = vst [vmem:[#allocation53_spill] sm:$0xff] %v7951_v39  ;;  %4236 = vmatmul.mubr.f32.gmra.mrb[28].mxu0 %v9634_v50  ;;  %v7954_v42 = vpop.f32.mrb[37].mxu1  ;;  %3645 = vmatmul.mubr.f32.gmra.mrb[142].mxu1 %v9666_v12  ;;  %v9671_v39 = vld [vmem:[#allocation238_spill] sm:$0xff] }
 0x395   : > { %9665 = vst [vmem:[#allocation52_spill] sm:$0xff] %v7954_v42  ;;  %4240 = vmatprep.mubr.f32.mxu0 %v9635_v51  ;;  %3650 = vmatprep.mubr.f32.mxu1 %v9667_v57  ;;  %v9674_v51 = vld [vmem:[#allocation240_spill] sm:$0xff] }
 0x397   : > { %v7959_v14 = vpop.f32.mrb[38].mxu1 }
 0x398   : > { %9668 = vst [vmem:[#allocation56_spill] sm:$0xff] %v7959_v14  ;;  %4241 = vmatmul.mubr.f32.gmra.mrb[30].mxu0 %v9636_v6  ;;  %v7962_v41 = vpop.f32.mrb[39].mxu1  ;;  %3651 = vmatmul.mubr.f32.gmra.mrb[144].mxu1 %v9670_v47  ;;  %v9675_v14 = vld [vmem:[#allocation239_spill] sm:$0xff] }
 0x399   : > { %9669 = vst [vmem:[#allocation55_spill] sm:$0xff] %v7962_v41  ;;  %4245 = vmatprep.mubr.f32.mxu0 %v9638_v5  ;;  %3656 = vmatprep.mubr.f32.mxu1 %v9671_v39  ;;  %v9678_v5 = vld [vmem:[#allocation241_spill] sm:$0xff] }
 0x39b   : > { %v7967_v50 = vpop.f32.mrb[40].mxu1 }
 0x39c   : > { %9672 = vst [vmem:[#allocation58_spill] sm:$0xff] %v7967_v50  ;;  %4246 = vmatmul.mubr.f32.gmra.mrb[32].mxu0 %v9639_v37  ;;  %v7970_v42 = vpop.f32.mrb[41].mxu1  ;;  %3657 = vmatmul.mubr.f32.gmra.mrb[146].mxu1 %v9674_v51  ;;  %v9679_v50 = vld [vmem:[#allocation242_spill] sm:$0xff] }
 0x39d   : > { %9673 = vst [vmem:[#allocation63_spill] sm:$0xff] %v7970_v42  ;;  %4250 = vmatprep.mubr.f32.mxu0 %v9640_v17  ;;  %3662 = vmatprep.mubr.f32.mxu1 %v9675_v14  ;;  %v9682_v17 = vld [vmem:[#allocation244_spill] sm:$0xff] }
 0x39f   : > { %v7975_v6 = vpop.f32.mrb[42].mxu1 }
 0x3a0   : > { %9676 = vst [vmem:[#allocation67_spill] sm:$0xff] %v7975_v6  ;;  %4251 = vmatmul.mubr.f32.gmra.mrb[34].mxu0 %v9642_v63  ;;  %v7978_v41 = vpop.f32.mrb[43].mxu1  ;;  %3663 = vmatmul.mubr.f32.gmra.mrb[148].mxu1 %v9678_v5  ;;  %v9683_v6 = vld [vmem:[#allocation243_spill] sm:$0xff] }
 0x3a1   : > { %9677 = vst [vmem:[#allocation66_spill] sm:$0xff] %v7978_v41  ;;  %4255 = vmatprep.mubr.f32.mxu0 %v9643_v32  ;;  %3668 = vmatprep.mubr.f32.mxu1 %v9679_v50  ;;  %v9686_v32 = vld [vmem:[#allocation245_spill] sm:$0xff] }
 0x3a3   : > { %v7983_v37 = vpop.f32.mrb[44].mxu1 }
 0x3a4   : > { %9680 = vst [vmem:[#allocation71_spill] sm:$0xff] %v7983_v37  ;;  %4256 = vmatmul.mubr.f32.gmra.mrb[36].mxu0 %v9646_v11  ;;  %v7986_v42 = vpop.f32.mrb[45].mxu1  ;;  %3669 = vmatmul.mubr.f32.gmra.mrb[150].mxu1 %v9682_v17  ;;  %v9687_v37 = vld [vmem:[#allocation246_spill] sm:$0xff] }
 0x3a5   : > { %9681 = vst [vmem:[#allocation69_spill] sm:$0xff] %v7986_v42  ;;  %4260 = vmatprep.mubr.f32.mxu0 %v9647_v58  ;;  %3674 = vmatprep.mubr.f32.mxu1 %v9683_v6  ;;  %v9690_v58 = vld [vmem:[#allocation248_spill] sm:$0xff] }
 0x3a7   : > { %v7991_v63 = vpop.f32.mrb[46].mxu1 }
 0x3a8   : > { %9684 = vst [vmem:[#allocation72_spill] sm:$0xff] %v7991_v63  ;;  %4261 = vmatmul.mubr.f32.gmra.mrb[38].mxu0 %v9650_v2  ;;  %v7994_v41 = vpop.f32.mrb[47].mxu1  ;;  %3675 = vmatmul.mubr.f32.gmra.mrb[152].mxu1 %v9686_v32  ;;  %v9691_v63 = vld [vmem:[#allocation247_spill] sm:$0xff] }
 0x3a9   : > { %9685 = vst [vmem:[#allocation77_spill] sm:$0xff] %v7994_v41  ;;  %4265 = vmatprep.mubr.f32.mxu0 %v9651_v54  ;;  %3680 = vmatprep.mubr.f32.mxu1 %v9687_v37  ;;  %v9694_v54 = vld [vmem:[#allocation249_spill] sm:$0xff] }
 0x3ab   : > { %v7999_v11 = vpop.f32.mrb[48].mxu1 }
 0x3ac   : > { %9688 = vst [vmem:[#allocation81_spill] sm:$0xff] %v7999_v11  ;;  %4266 = vmatmul.mubr.f32.gmra.mrb[40].mxu0 %v9654_v44  ;;  %v8002_v42 = vpop.f32.mrb[49].mxu1  ;;  %3681 = vmatmul.mubr.f32.gmra.mrb[154].mxu1 %v9690_v58  ;;  %v9695_v11 = vld [vmem:[#allocation250_spill] sm:$0xff] }
 0x3ad   : > { %9689 = vst [vmem:[#allocation80_spill] sm:$0xff] %v8002_v42  ;;  %4270 = vmatprep.mubr.f32.mxu0 %v9655_v20  ;;  %3686 = vmatprep.mubr.f32.mxu1 %v9691_v63  ;;  %v9698_v20 = vld [vmem:[#allocation252_spill] sm:$0xff] }
 0x3af   : > { %v8007_v2 = vpop.f32.mrb[50].mxu1 }
 0x3b0   : > { %9692 = vst [vmem:[#allocation84_spill] sm:$0xff] %v8007_v2  ;;  %4271 = vmatmul.mubr.f32.gmra.mrb[42].mxu0 %v9658_v8  ;;  %v8010_v41 = vpop.f32.mrb[51].mxu1  ;;  %3687 = vmatmul.mubr.f32.gmra.mrb[156].mxu1 %v9694_v54  ;;  %v9699_v2 = vld [vmem:[#allocation251_spill] sm:$0xff] }
 0x3b1   : > { %9693 = vst [vmem:[#allocation83_spill] sm:$0xff] %v8010_v41  ;;  %4275 = vmatprep.mubr.f32.mxu0 %v9659_v10  ;;  %3692 = vmatprep.mubr.f32.mxu1 %v9695_v11  ;;  %v9702_v10 = vld [vmem:[#allocation253_spill] sm:$0xff] }
 0x3b3   : > { %v8015_v44 = vpop.f32.mrb[52].mxu1 }
 0x3b4   : > { %9696 = vst [vmem:[#allocation100_spill] sm:$0xff] %v8015_v44  ;;  %4276 = vmatmul.mubr.f32.gmra.mrb[44].mxu0 %v9662_v13  ;;  %v8018_v42 = vpop.f32.mrb[53].mxu1  ;;  %3693 = vmatmul.mubr.f32.gmra.mrb[158].mxu1 %v9698_v20  ;;  %v9703_v44 = vld [vmem:[#allocation133_spill] sm:$0xff] }
 0x3b5   : > { %9697 = vst [vmem:[#allocation86_spill] sm:$0xff] %v8018_v42  ;;  %4280 = vmatprep.mubr.f32.mxu0 %v9663_v28  ;;  %3698 = vmatprep.mubr.f32.mxu1 %v9699_v2  ;;  %v9706_v28 = vld [vmem:[#allocation143_spill] sm:$0xff] }
 0x3b7   : > { %v8023_v8 = vpop.f32.mrb[54].mxu1 }
 0x3b8   : > { %9700 = vst [vmem:[#allocation91_spill] sm:$0xff] %v8023_v8  ;;  %4281 = vmatmul.mubr.f32.gmra.mrb[46].mxu0 %v9666_v12  ;;  %v8026_v41 = vpop.f32.mrb[55].mxu1  ;;  %3699 = vmatmul.mubr.f32.gmra.mrb[160].mxu1 %v9702_v10  ;;  %v9707_v8 = vld [vmem:[#allocation134_spill] sm:$0xff] }
 0x3b9   : > { %9701 = vst [vmem:[#allocation95_spill] sm:$0xff] %v8026_v41  ;;  %4285 = vmatprep.mubr.f32.mxu0 %v9667_v57  ;;  %3704 = vmatprep.mubr.f32.mxu1 %v9703_v44  ;;  %v9710_v57 = vld [vmem:[#allocation142_spill] sm:$0xff] }
 0x3bb   : > { %v8031_v13 = vpop.f32.mrb[56].mxu1 }
 0x3bc   : > { %9704 = vst [vmem:[#allocation97_spill] sm:$0xff] %v8031_v13  ;;  %4286 = vmatmul.mubr.f32.gmra.mrb[48].mxu0 %v9670_v47  ;;  %v8034_v42 = vpop.f32.mrb[57].mxu1  ;;  %3705 = vmatmul.mubr.f32.gmra.mrb[66].mxu1 %v9706_v28  ;;  %v9711_v13 = vld [vmem:[#allocation150_spill] sm:$0xff] }
 0x3bd   : > { %9705 = vst [vmem:[#allocation96_spill] sm:$0xff] %v8034_v42  ;;  %4290 = vmatprep.mubr.f32.mxu0 %v9671_v39  ;;  %3710 = vmatprep.mubr.f32.mxu1 %v9707_v8  ;;  %v9714_v39 = vld [vmem:[#allocation157_spill] sm:$0xff] }
 0x3bf   : > { %v8039_v12 = vpop.f32.mrb[58].mxu1 }
 0x3c0   : > { %9708 = vst [vmem:[#allocation117_spill] sm:$0xff] %v8039_v12  ;;  %4291 = vmatmul.mubr.f32.gmra.mrb[50].mxu0 %v9674_v51  ;;  %v8042_v41 = vpop.f32.mrb[59].mxu1  ;;  %3711 = vmatmul.mubr.f32.gmra.mrb[68].mxu1 %v9710_v57  ;;  %v9715_v12 = vld [vmem:[#allocation152_spill] sm:$0xff] }
 0x3c1   : > { %9709 = vst [vmem:[#allocation104_spill] sm:$0xff] %v8042_v41  ;;  %4295 = vmatprep.mubr.f32.mxu0 %v9675_v14  ;;  %3716 = vmatprep.mubr.f32.mxu1 %v9711_v13  ;;  %v9717_v14 = vld [vmem:[#allocation158_spill] sm:$0xff] }
 0x3c3   : > { %v8047_v47 = vpop.f32.mrb[60].mxu1 }
 0x3c4   : > { %9712 = vst [vmem:[#allocation98_spill] sm:$0xff] %v8047_v47  ;;  %4296 = vmatmul.mubr.f32.gmra.mrb[52].mxu0 %v9678_v5  ;;  %v8050_v42 = vpop.f32.mrb[61].mxu1  ;;  %3717 = vmatmul.mubr.f32.gmra.mrb[70].mxu1 %v9714_v39  ;;  %v9718_v47 = vld [vmem:[#allocation165_spill] sm:$0xff] }
 0x3c5   : > { %9713 = vst [vmem:[#allocation109_spill] sm:$0xff] %v8050_v42  ;;  %4300 = vmatprep.mubr.f32.mxu0 %v9679_v50  ;;  %3722 = vmatprep.mubr.f32.mxu1 %v9715_v12  ;;  %v9720_v50 = vld [vmem:[#allocation170_spill] sm:$0xff] }
 0x3c7   : > { %v8055_v51 = vpop.f32.mrb[62].mxu1 }
 0x3c8   : > { %9716 = vst [vmem:[#allocation111_spill] sm:$0xff] %v8055_v51  ;;  %4301 = vmatmul.mubr.f32.gmra.mrb[54].mxu0 %v9682_v17  ;;  %v8058_v41 = vpop.f32.mrb[63].mxu1  ;;  %3723 = vmatmul.mubr.f32.gmra.mrb[72].mxu1 %v9717_v14  ;;  %v9721_v51 = vld [vmem:[#allocation166_spill] sm:$0xff]  ;;  %v9722_v17 = vld [vmem:[#allocation171_spill] sm:$0xff] }
 0x3c9   : > { %4305 = vmatprep.mubr.f32.mxu0 %v9683_v6  ;;  %3728 = vmatprep.mubr.f32.mxu1 %v9718_v47  ;;  %v9723_v6 = vld [vmem:[#allocation184_spill] sm:$0xff] }
 0x3cb   : > { %v8063_v5 = vpop.f32.mrb[64].mxu1 }
 0x3cc   : > { %9719 = vst [vmem:[#allocation110_spill] sm:$0xff] %v8063_v5  ;;  %4306 = vmatmul.mubr.f32.gmra.mrb[56].mxu0 %v9686_v32  ;;  %v8066_v42 = vpop.f32.mrb[65].mxu1  ;;  %3729 = vmatmul.mubr.f32.gmra.mrb[74].mxu1 %v9720_v50  ;;  %v9724_v5 = vld [vmem:[#allocation173_spill] sm:$0xff] }
 0x3cd   : > { %4310 = vmatprep.mubr.f32.mxu0 %v9687_v37  ;;  %3734 = vmatprep.mubr.f32.mxu1 %v9721_v51  ;;  %v9725_v32 = vld [vmem:[#allocation185_spill] sm:$0xff]  ;;  %v9726_v37 = vld [vmem:[#allocation174_spill] sm:$0xff] }
 0x3d0   : > { %4311 = vmatmul.mubr.f32.gmra.mrb[58].mxu0 %v9690_v58  ;;  %3735 = vmatmul.mubr.f32.gmra.mrb[76].mxu1 %v9722_v17  ;;  %v9727_v58 = vld [vmem:[#allocation190_spill] sm:$0xff] }
 0x3d1   : > { %4315 = vmatprep.mubr.f32.mxu0 %v9691_v63  ;;  %3740 = vmatprep.mubr.f32.mxu1 %v9723_v6  ;;  %v9728_v63 = vld [vmem:[#allocation175_spill] sm:$0xff] }
 0x3d4   : > { %4316 = vmatmul.mubr.f32.gmra.mrb[60].mxu0 %v9694_v54  ;;  %3741 = vmatmul.mubr.f32.gmra.mrb[78].mxu1 %v9724_v5  ;;  %v9729_v54 = vld [vmem:[#allocation193_spill] sm:$0xff] }
 0x3d5   : > { %4320 = vmatprep.mubr.f32.mxu0 %v9695_v11  ;;  %3746 = vmatprep.mubr.f32.mxu1 %v9725_v32  ;;  %v9730_v11 = vld [vmem:[#allocation176_spill] sm:$0xff] }
 0x3d8   : > { %4321 = vmatmul.mubr.f32.gmra.mrb[62].mxu0 %v9698_v20  ;;  %3747 = vmatmul.mubr.f32.gmra.mrb[80].mxu1 %v9726_v37  ;;  %v9731_v20 = vld [vmem:[#allocation195_spill] sm:$0xff] }
 0x3d9   : > { %4325 = vmatprep.mubr.f32.mxu0 %v9699_v2  ;;  %3752 = vmatprep.mubr.f32.mxu1 %v9727_v58  ;;  %v9732_v2 = vld [vmem:[#allocation177_spill] sm:$0xff] }
 0x3dc   : > { %4326 = vmatmul.mubr.f32.gmra.mrb[64].mxu0 %v9702_v10  ;;  %3753 = vmatmul.mubr.f32.gmra.mrb[82].mxu1 %v9728_v63  ;;  %v9733_v10 = vld [vmem:[#allocation196_spill] sm:$0xff] }
 0x3dd   : > { %4330 = vmatprep.mubr.f32.mxu0 %v9703_v44  ;;  %3758 = vmatprep.mubr.f32.mxu1 %v9729_v54  ;;  %v9734_v44 = vld [vmem:[#allocation197_spill] sm:$0xff] }
 0x3e0   : > { %4331 = vmatmul.mubr.f32.gmra.mrb[66].mxu0 %v9706_v28  ;;  %3759 = vmatmul.mubr.f32.gmra.mrb[84].mxu1 %v9730_v11  ;;  %v9735_v28 = vld [vmem:[#allocation204_spill] sm:$0xff] }
 0x3e1   : > { %4335 = vmatprep.mubr.f32.mxu0 %v9707_v8  ;;  %3764 = vmatprep.mubr.f32.mxu1 %v9731_v20  ;;  %v9736_v8 = vld [vmem:[#allocation212_spill] sm:$0xff] }
 0x3e4   : > { %4336 = vmatmul.mubr.f32.gmra.mrb[68].mxu0 %v9710_v57  ;;  %3765 = vmatmul.mubr.f32.gmra.mrb[86].mxu1 %v9732_v2  ;;  %v9737_v57 = vld [vmem:[#allocation205_spill] sm:$0xff] }
 0x3e5   : > { %4340 = vmatprep.mubr.f32.mxu0 %v9711_v13  ;;  %3770 = vmatprep.mubr.f32.mxu1 %v9733_v10  ;;  %v9738_v13 = vld [vmem:[#allocation213_spill] sm:$0xff] }
 0x3e8   : > { %4341 = vmatmul.mubr.f32.gmra.mrb[70].mxu0 %v9714_v39  ;;  %3771 = vmatmul.mubr.f32.gmra.mrb[88].mxu1 %v9734_v44  ;;  %v9739_v39 = vld [vmem:[#allocation214_spill] sm:$0xff] }
 0x3e9   : > { %4345 = vmatprep.mubr.f32.mxu0 %v9715_v12  ;;  %3776 = vmatprep.mubr.f32.mxu1 %v9735_v28  ;;  %v9740_v12 = vld [vmem:[#allocation222_spill] sm:$0xff] }
 0x3ec   : > { %4346 = vmatmul.mubr.f32.gmra.mrb[72].mxu0 %v9717_v14  ;;  %3777 = vmatmul.mubr.f32.gmra.mrb[90].mxu1 %v9736_v8  ;;  %v9741_v14 = vld [vmem:[#allocation215_spill] sm:$0xff] }
 0x3ed   : > { %4350 = vmatprep.mubr.f32.mxu0 %v9718_v47  ;;  %3782 = vmatprep.mubr.f32.mxu1 %v9737_v57  ;;  %v9742_v47 = vld [vmem:[#allocation223_spill] sm:$0xff] }
 0x3f0   : > { %4351 = vmatmul.mubr.f32.gmra.mrb[74].mxu0 %v9720_v50  ;;  %3783 = vmatmul.mubr.f32.gmra.mrb[92].mxu1 %v9738_v13 }
 0x3f1   : > { %4355 = vmatprep.mubr.f32.mxu0 %v9721_v51  ;;  %3788 = vmatprep.mubr.f32.mxu1 %v9739_v39  ;;  %v9743_v51 = vlaneseq }
 0x3f4   : > { %4356 = vmatmul.mubr.f32.gmra.mrb[76].mxu0 %v9722_v17  ;;  %3789 = vmatmul.mubr.f32.gmra.mrb[94].mxu1 %v9740_v12 }
 0x3f5   : > { %4360 = vmatprep.mubr.f32.mxu0 %v9723_v6  ;;  %3794 = vmatprep.mubr.f32.mxu1 %v9741_v14 }
 0x3f8   : > { %4361 = vmatmul.mubr.f32.gmra.mrb[78].mxu0 %v9724_v5  ;;  %3795 = vmatmul.mubr.f32.gmra.mrb[96].mxu1 %v9742_v47  ;;  %v8124_v5 = vand.u32 127, %v9743_v51 }
 0x3f9   : > { %4365 = vmatprep.mubr.f32.mxu0 %v9725_v32  ;;  %4065 = vmatprep.mubr.f32.mxu1 %v9586_v7  ;;  %v9744_v7 = vld [vmem:[#allocation22_spill] sm:$0xff] }
 0x3fa   : > { %vm2807_vm1 = vcmp.eq.s32.totalorder %v9744_v7, %v8124_v5 }
 0x3fc   : > { %4366 = vmatmul.mubr.f32.gmra.mrb[80].mxu0 %v9726_v37  ;;  %4066 = vmatmul.mubr.f32.vlgmr.msra.gmra.mrb[162].mxu1 %v9587_v4  ;;  %v2756_v4 = vadd.s32 8, %v9744_v7 }
 0x3fd   : > { %4370 = vmatprep.mubr.f32.mxu0 %v9727_v58  ;;  %4070 = vmatprep.mubr.f32.mxu1 %v9588_v61  ;;  %v5698_v61 = vmov 0.0  }
 0x3fe   : > { %vm2810_vm2 = vcmp.eq.s32.totalorder %v2756_v4, %v8124_v5 }
 0x400   : > { %4371 = vmatmul.mubr.f32.gmra.mrb[82].mxu0 %v9728_v63  ;;  %4071 = vmatmul.mubr.f32.gmra.mrb[164].mxu1 %v9589_v15  ;;  %v2951_v15 = vsel %vm2807_vm1, 0.0001, %v5698_v61  ;;  %v2760_v63 = vadd.s32 40, %v9744_v7 }
 0x401   : > { %4375 = vmatprep.mubr.f32.mxu0 %v9729_v54  ;;  %4075 = vmatprep.mubr.f32.mxu1 %v9590_v9  ;;  %v2757_v9 = vadd.s32 16, %v9744_v7 }
 0x402   : > { %vm2822_vm6 = vcmp.eq.s32.totalorder %v2760_v63, %v8124_v5 }
 0x403   : > { %vm2813_vm3 = vcmp.eq.s32.totalorder %v2757_v9, %v8124_v5 }
 0x404   : > { %4376 = vmatmul.mubr.f32.gmra.mrb[84].mxu0 %v9730_v11  ;;  %4076 = vmatmul.mubr.f32.gmra.mrb[166].mxu1 %v9591_v1  ;;  %v3162_v1 = vadd.f32 %v7804_v25, %v2951_v15  ;;  %v2957_v25 = vsel %vm2813_vm3, 0.0001, %v5698_v61  ;;  %v2764_v15 = vadd.s32 72, %v9744_v7 }
 0x405   : > { %4380 = vmatprep.mubr.f32.mxu0 %v9731_v20  ;;  %4080 = vmatprep.mubr.f32.mxu1 %v9592_v38  ;;  %v2954_v38 = vsel %vm2810_vm2, 0.0001, %v5698_v61  ;;  %v3174_v32 = vadd.f32 %v7824_v52, %v2957_v25  ;;  %v2761_v20 = vadd.s32 48, %v9744_v7  ;;  %v2766_v25 = vadd.s32 88, %v9744_v7 }
 0x406   : > { %vm2834_vm10 = vcmp.eq.s32.totalorder %v2764_v15, %v8124_v5 }
 0x407   : > { %vm2825_vm7 = vcmp.eq.s32.totalorder %v2761_v20, %v8124_v5  ;;  %vm2840_vm12 = vcmp.eq.s32.totalorder %v2766_v25, %v8124_v5 }
 0x408   : > { %4381 = vmatmul.mubr.f32.gmra.mrb[86].mxu0 %v9732_v2  ;;  %4081 = vmatmul.mubr.f32.gmra.mrb[168].mxu1 %v9593_v62 }
 0x409   : > { %4385 = vmatprep.mubr.f32.mxu0 %v9733_v10  ;;  %4085 = vmatprep.mubr.f32.mxu1 %v9594_v21  ;;  %v2758_v21 = vadd.s32 24, %v9744_v7 }
 0x40b   : > { %vm2816_vm4 = vcmp.eq.s32.totalorder %v2758_v21, %v8124_v5  ;;  %v2765_v21 = vadd.s32 80, %v9744_v7 }
 0x40c   : > { %4386 = vmatmul.mubr.f32.gmra.mrb[88].mxu0 %v9734_v44  ;;  %4086 = vmatmul.mubr.f32.gmra.mrb[170].mxu1 %v9595_v43  ;;  %v2960_v37 = vsel %vm2816_vm4, 0.0001, %v5698_v61 }
 0x40d   : > { %4390 = vmatprep.mubr.f32.mxu0 %v9735_v28  ;;  %4090 = vmatprep.mubr.f32.mxu1 %v9596_v3  ;;  %v3168_v3 = vadd.f32 %v7812_v31, %v2954_v38  ;;  %v2762_v28 = vadd.s32 56, %v9744_v7  ;;  %vm2837_vm11 = vcmp.eq.s32.totalorder %v2765_v21, %v8124_v5  ;;  %v8260_v21 = vadd.s32 128, %v8124_v5 }
 0x40f   : > { %v3514_v62 = vpop.f32.mrb[98].mxu1  ;;  %vm2828_vm8 = vcmp.eq.s32.totalorder %v2762_v28, %v8124_v5 }
 0x410   : > { %4391 = vmatmul.mubr.f32.gmra.mrb[90].mxu0 %v9736_v8  ;;  %v3515_v50 = vadd.f32 %v3514_v62, %v3162_v1  ;;  %v3516_v17 = vpop.f32.mrb[99].mxu1  ;;  %4091 = vmatmul.mubr.f32.gmra.mrb[172].mxu1 %v9597_v40  ;;  %v2759_v40 = vadd.s32 32, %v9744_v7 }
 0x411   : > { %4395 = vmatprep.mubr.f32.mxu0 %v9737_v57  ;;  %v3517_v43 = vadd.f32 %v3516_v17, %v7807_v19  ;;  %4095 = vmatprep.mubr.f32.mxu1 %v9598_v27 }
 0x412   : > { %4411 = vst [vmem:[%s8155_s23] sm:$0xff] %v3515_v50  ;;  %vm2819_vm5 = vcmp.eq.s32.totalorder %v2759_v40, %v8124_v5 }
 0x413   : > { %4412 = vst [vmem:[%s8155_s23 + $0x8] sm:$0xff] %v3517_v43  ;;  %v3520_v6 = vpop.f32.mrb[100].mxu1  ;;  %v2963_v52 = vsel %vm2819_vm5, 0.0001, %v5698_v61 }
 0x414   : > { %4396 = vmatmul.mubr.f32.gmra.mrb[92].mxu0 %v9738_v13  ;;  %v3521_v27 = vadd.f32 %v3520_v6, %v3168_v3  ;;  %v3522_v19 = vpop.f32.mrb[101].mxu1  ;;  %4096 = vmatmul.mubr.f32.gmra.mrb[174].mxu1 %v9599_v23 }
 0x415   : > { %4400 = vmatprep.mubr.f32.mxu0 %v9739_v39  ;;  %v3523_v31 = vadd.f32 %v3522_v19, %v7816_v56  ;;  %4100 = vmatprep.mubr.f32.mxu1 %v9600_v26  ;;  %v3180_v56 = vadd.f32 %v7832_v45, %v2960_v37  ;;  %v2966_v45 = vsel %vm2822_vm6, 0.0001, %v5698_v61 }
 0x416   : > { %4414 = vst [vmem:[%s8155_s23 + $0x18] sm:$0xff] %v3521_v27  ;;  %v3192_v39 = vadd.f32 %v7850_v18, %v2966_v45 }
 0x417   : > { %4415 = vst [vmem:[%s8155_s23 + $0x20] sm:$0xff] %v3523_v31  ;;  %v3526_v58 = vpop.f32.mrb[102].mxu1 }
 0x418   : > { %4401 = vmatmul.mubr.f32.gmra.mrb[94].mxu0 %v9740_v12  ;;  %v3527_v23 = vadd.f32 %v3526_v58, %v3174_v32  ;;  %v3528_v54 = vpop.f32.mrb[103].mxu1  ;;  %4101 = vmatmul.mubr.f32.gmra.mrb[176].mxu1 %v9601_v53  ;;  %v2763_v12 = vadd.s32 64, %v9744_v7  ;;  %v2767_v32 = vadd.s32 96, %v9744_v7 }
 0x419   : > { %4405 = vmatprep.mubr.f32.mxu0 %v9741_v14  ;;  %v3529_v26 = vadd.f32 %v3528_v54, %v7827_v33  ;;  %v3186_v33 = vadd.f32 %v7842_v30, %v2963_v52 }
 0x41a   : > { %4417 = vst [vmem:[%s8155_s23 + $0x30] sm:$0xff] %v3527_v23  ;;  %vm2831_vm9 = vcmp.eq.s32.totalorder %v2763_v12, %v8124_v5  ;;  %v2984_v23 = vsel %vm2840_vm12, 0.0001, %v5698_v61  ;;  %vm2843_vm13 = vcmp.eq.s32.totalorder %v2767_v32, %v8124_v5 }
 0x41b   : > { %4418 = vst [vmem:[%s8155_s23 + $0x38] sm:$0xff] %v3529_v26  ;;  %v3532_v11 = vpop.f32.mrb[104].mxu1 }
 0x41c   : > { %4406 = vmatmul.mubr.f32.gmra.mrb[96].mxu0 %v9742_v47  ;;  %v3533_v53 = vadd.f32 %v3532_v11, %v3180_v56  ;;  %v3534_v2 = vpop.f32.mrb[105].mxu1  ;;  %v2768_v56 = vadd.s32 104, %v9744_v7 }
 0x41d   : > { %v3535_v10 = vadd.f32 %v3534_v2, %v7835_v34  ;;  %v2969_v34 = vsel %vm2825_vm7, 0.0001, %v5698_v61 }
 0x41e   : > { %4420 = vst [vmem:[%s8155_s23 + $0x48] sm:$0xff] %v3533_v53  ;;  %v3198_v4 = vadd.f32 %v7860_v16, %v2969_v34  ;;  %v2987_v53 = vsel %vm2843_vm13, 0.0001, %v5698_v61  ;;  %vm2846_vm14 = vcmp.eq.s32.totalorder %v2768_v56, %v8124_v5 }
 0x41f   : > { %4421 = vst [vmem:[%s8155_s23 + $0x50] sm:$0xff] %v3535_v10  ;;  %v3538_v44 = vpop.f32.mrb[106].mxu1 }
 0x420   : > { %v3539_v8 = vadd.f32 %v3538_v44, %v3186_v33  ;;  %v3540_v57 = vpop.f32.mrb[107].mxu1  ;;  %v2769_v33 = vadd.s32 112, %v9744_v7 }
 0x421   : > { %v3541_v13 = vadd.f32 %v3540_v57, %v7845_v48  ;;  %v2972_v48 = vsel %vm2828_vm8, 0.0001, %v5698_v61 }
 0x422   : > { %4423 = vst [vmem:[%s8155_s23 + $0x60] sm:$0xff] %v3539_v8  ;;  %v3204_v62 = vadd.f32 %v7868_v29, %v2972_v48  ;;  %v9745_v8 = vld [vmem:[#allocation31_spill] sm:$0xff]  ;;  %vm2849_vm15 = vcmp.eq.s32.totalorder %v2769_v33, %v8124_v5  ;;  %v9748_v48 = vld [vmem:[#allocation30_spill] sm:$0xff] }
 0x423   : > { %4424 = vst [vmem:[%s8155_s23 + $0x68] sm:$0xff] %v3541_v13  ;;  %v3544_v30 = vpop.f32.mrb[108].mxu1  ;;  %v2990_v13 = vsel %vm2846_vm14, 0.0001, %v5698_v61  ;;  %v2993_v15 = vsel %vm2849_vm15, 0.0001, %v5698_v61 }
 0x424   : > { %v3545_v14 = vadd.f32 %v3544_v30, %v3192_v39  ;;  %v3546_v47 = vpop.f32.mrb[109].mxu1  ;;  %v2770_v30 = vadd.s32 120, %v9744_v7 }
 0x425   : > { %v3547_v51 = vadd.f32 %v3546_v47, %v7853_v59  ;;  %v2975_v59 = vsel %vm2831_vm9, 0.0001, %v5698_v61 }
 0x426   : > { %4426 = vst [vmem:[%s8155_s23 + $0x78] sm:$0xff] %v3545_v14  ;;  %v3210_v3 = vadd.f32 %v7878_v49, %v2975_v59  ;;  %vm2852_vm0 = vcmp.eq.s32.totalorder %v2770_v30, %v8124_v5 }
 0x427   : > { %4427 = vst [vmem:[%s8155_s23 + $0x80] sm:$0xff] %v3547_v51  ;;  %v3550_v18 = vpop.f32.mrb[110].mxu1  ;;  %v9747_v51 = vld [vmem:[#allocation24_spill] sm:$0xff] }
 0x428   : > { %v3551_v9 = vadd.f32 %v3550_v18, %v3198_v4  ;;  %v3552_v1 = vpop.f32.mrb[111].mxu1  ;;  %v3240_v18 = vadd.f32 %v9748_v48, %v2990_v13 }
 0x429   : > { %v3553_v38 = vadd.f32 %v3552_v1, %v7863_v0  ;;  %v2978_v0 = vsel %vm2834_vm10, 0.0001, %v5698_v61 }
 0x42a   : > { %4429 = vst [vmem:[%s8155_s23 + $0x90] sm:$0xff] %v3551_v9  ;;  %v3216_v19 = vadd.f32 %v7886_v46, %v2978_v0  ;;  %v2996_v0 = vsel %vm2852_vm0, 0.0001, %v5698_v61 }
 0x42b   : > { %4430 = vst [vmem:[%s8155_s23 + $0x98] sm:$0xff] %v3553_v38  ;;  %v3556_v16 = vpop.f32.mrb[112].mxu1 }
 0x42c   : > { %v3557_v50 = vadd.f32 %v3556_v16, %v3204_v62  ;;  %v3558_v17 = vpop.f32.mrb[113].mxu1  ;;  %v2771_v16 = vadd.s32 128, %v9744_v7 }
 0x42d   : > { %v3559_v43 = vadd.f32 %v3558_v17, %v7871_v24  ;;  %v2981_v24 = vsel %vm2837_vm11, 0.0001, %v5698_v61 }
 0x42e   : > { %4432 = vst [vmem:[%s8155_s23 + $0xa8] sm:$0xff] %v3557_v50  ;;  %v3222_v46 = vadd.f32 %v7895_v22, %v2981_v24  ;;  %v3228_v22 = vadd.f32 %v7903_v55, %v2984_v23  ;;  %v9746_v55 = vld [vmem:[#allocation29_spill] sm:$0xff]  ;;  %v9749_v50 = vld [vmem:[#allocation35_spill] sm:$0xff]  ;;  %vm2856_vm1 = vcmp.eq.s32.totalorder %v2771_v16, %v8260_v21 }
 0x42f   : > { %4433 = vst [vmem:[%s8155_s23 + $0xb0] sm:$0xff] %v3559_v43  ;;  %v3562_v29 = vpop.f32.mrb[114].mxu1  ;;  %v3234_v57 = vadd.f32 %v9746_v55, %v2987_v53  ;;  %v9750_v43 = vld [vmem:[#allocation38_spill] sm:$0xff]  ;;  %v9751_v24 = vld [vmem:[#allocation39_spill] sm:$0xff] }
 0x430   : > { %v3563_v6 = vadd.f32 %v3562_v29, %v3210_v3  ;;  %v3564_v40 = vpop.f32.mrb[115].mxu1  ;;  %v3246_v3 = vadd.f32 %v9750_v43, %v2993_v15  ;;  %v9760_v16 = vld [vmem:[#allocation63_spill] sm:$0xff] }
 0x431   : > { %v3565_v27 = vadd.f32 %v3564_v40, %v7881_v36 }
 0x432   : > { %4435 = vst [vmem:[%s8155_s23 + $0xc0] sm:$0xff] %v3563_v6 }
 0x433   : > { %v4172_v49 = vpop.f32.mrb[2].mxu0  ;;  %4436 = vst [vmem:[%s8155_s23 + $0xc8] sm:$0xff] %v3565_v27  ;;  %v3568_v31 = vpop.f32.mrb[116].mxu1 }
 0x434   : > { %4413 = vst [vmem:[%s8155_s23 + $0x10] sm:$0xff] %v4172_v49  ;;  %v4174_v37 = vpop.f32.mrb[3].mxu0  ;;  %v3569_v58 = vadd.f32 %v3568_v31, %v3216_v19  ;;  %v3570_v63 = vpop.f32.mrb[117].mxu1  ;;  %v2772_v19 = vadd.s32 136, %v9744_v7  ;;  %v9752_v31 = vld [vmem:[#allocation42_spill] sm:$0xff] }
 0x435   : > { %v3571_v36 = vadd.f32 %v3570_v63, %v7889_v60  ;;  %v3252_v32 = vadd.f32 %v9752_v31, %v2996_v0  ;;  %v3000_v63 = vsel %vm2856_vm1, 0.0001, %v5698_v61 }
 0x436   : > { %4438 = vst [vmem:[%s8155_s23 + $0xd8] sm:$0xff] %v3569_v58  ;;  %vm2859_vm2 = vcmp.eq.s32.totalorder %v2772_v19, %v8260_v21  ;;  %v9762_v19 = vld [vmem:[#allocation66_spill] sm:$0xff] }
 0x437   : > { %v4177_v54 = vpop.f32.mrb[4].mxu0  ;;  %4439 = vst [vmem:[%s8155_s23 + $0xe0] sm:$0xff] %v3571_v36  ;;  %v3574_v26 = vpop.f32.mrb[118].mxu1 }
 0x438   : > { %4416 = vst [vmem:[%s8155_s23 + $0x28] sm:$0xff] %v4177_v54  ;;  %v4179_v52 = vpop.f32.mrb[5].mxu0  ;;  %v3575_v11 = vadd.f32 %v3574_v26, %v3222_v46  ;;  %v3576_v20 = vpop.f32.mrb[119].mxu1  ;;  %v2773_v54 = vadd.s32 144, %v9744_v7  ;;  %v9753_v26 = vld [vmem:[#allocation41_spill] sm:$0xff] }
 0x439   : > { %v3577_v60 = vadd.f32 %v3576_v20, %v7898_v35  ;;  %v9754_v52 = vld [vmem:[#allocation49_spill] sm:$0xff] }
 0x43a   : > { %4441 = vst [vmem:[%s8155_s23 + $0xf0] sm:$0xff] %v3575_v11  ;;  %v3260_v11 = vadd.f32 %v9754_v52, %v3000_v63  ;;  %vm2862_vm3 = vcmp.eq.s32.totalorder %v2773_v54, %v8260_v21  ;;  %v9764_v54 = vld [vmem:[#allocation69_spill] sm:$0xff] }
 0x43b   : > { %v4182_v2 = vpop.f32.mrb[6].mxu0  ;;  %4442 = vst [vmem:[%s8155_s23 + $0xf8] sm:$0xff] %v3577_v60  ;;  %v3580_v10 = vpop.f32.mrb[120].mxu1 }
 0x43c   : > { %4419 = vst [vmem:[%s8155_s23 + $0x40] sm:$0xff] %v4182_v2  ;;  %v4184_v45 = vpop.f32.mrb[7].mxu0  ;;  %v3581_v44 = vadd.f32 %v3580_v10, %v3228_v22  ;;  %v3582_v28 = vpop.f32.mrb[121].mxu1  ;;  %v3003_v22 = vsel %vm2859_vm2, 0.0001, %v5698_v61  ;;  %v9755_v2 = vld [vmem:[#allocation44_spill] sm:$0xff] }
 0x43d   : > { %v3583_v35 = vadd.f32 %v3582_v28, %v9745_v8  ;;  %v2774_v45 = vadd.s32 152, %v9744_v7  ;;  %v9756_v28 = vld [vmem:[#allocation52_spill] sm:$0xff] }
 0x43e   : > { %4444 = vst [vmem:[%s8155_s23 + $0x108] sm:$0xff] %v3581_v44  ;;  %v3266_v8 = vadd.f32 %v9756_v28, %v3003_v22 }
 0x43f   : > { %v4187_v39 = vpop.f32.mrb[8].mxu0  ;;  %4445 = vst [vmem:[%s8155_s23 + $0x110] sm:$0xff] %v3583_v35  ;;  %v3586_v34 = vpop.f32.mrb[122].mxu1  ;;  %vm2865_vm4 = vcmp.eq.s32.totalorder %v2774_v45, %v8260_v21 }
 0x440   : > { %4422 = vst [vmem:[%s8155_s23 + $0x58] sm:$0xff] %v4187_v39  ;;  %v4189_v12 = vpop.f32.mrb[9].mxu0  ;;  %v3587_v14 = vadd.f32 %v3586_v34, %v3234_v57  ;;  %v3588_v47 = vpop.f32.mrb[123].mxu1  ;;  %v3006_v57 = vsel %vm2862_vm3, 0.0001, %v5698_v61  ;;  %v9757_v39 = vld [vmem:[#allocation53_spill] sm:$0xff] }
 0x441   : > { %v3589_v4 = vadd.f32 %v3588_v47, %v9747_v51  ;;  %v2775_v12 = vadd.s32 160, %v9744_v7  ;;  %v9758_v47 = vld [vmem:[#allocation55_spill] sm:$0xff] }
 0x442   : > { %4447 = vst [vmem:[%s8155_s23 + $0x120] sm:$0xff] %v3587_v14  ;;  %v3272_v51 = vadd.f32 %v9758_v47, %v3006_v57 }
 0x443   : > { %v4192_v9 = vpop.f32.mrb[10].mxu0  ;;  %4448 = vst [vmem:[%s8155_s23 + $0x128] sm:$0xff] %v3589_v4  ;;  %v3592_v1 = vpop.f32.mrb[124].mxu1  ;;  %vm2868_vm5 = vcmp.eq.s32.totalorder %v2775_v12, %v8260_v21 }
 0x444   : > { %4425 = vst [vmem:[%s8155_s23 + $0x70] sm:$0xff] %v4192_v9  ;;  %v4194_v38 = vpop.f32.mrb[11].mxu0  ;;  %v3593_v62 = vadd.f32 %v3592_v1, %v3240_v18  ;;  %v3594_v59 = vpop.f32.mrb[125].mxu1  ;;  %v3009_v18 = vsel %vm2865_vm4, 0.0001, %v5698_v61  ;;  %v9759_v9 = vld [vmem:[#allocation56_spill] sm:$0xff] }
 0x445   : > { %v3595_v17 = vadd.f32 %v3594_v59, %v9749_v50  ;;  %v3278_v50 = vadd.f32 %v9760_v16, %v3009_v18 }
 0x446   : > { %4450 = vst [vmem:[%s8155_s23 + $0x138] sm:$0xff] %v3593_v62  ;;  %v2776_v62 = vadd.s32 168, %v9744_v7 }
 0x447   : > { %v4197_v29 = vpop.f32.mrb[12].mxu0  ;;  %4451 = vst [vmem:[%s8155_s23 + $0x140] sm:$0xff] %v3595_v17  ;;  %v3598_v25 = vpop.f32.mrb[126].mxu1 }
 0x448   : > { %4428 = vst [vmem:[%s8155_s23 + $0x88] sm:$0xff] %v4197_v29  ;;  %v4199_v6 = vpop.f32.mrb[13].mxu0  ;;  %v3599_v40 = vadd.f32 %v3598_v25, %v3246_v3  ;;  %v3600_v27 = vpop.f32.mrb[127].mxu1  ;;  %v3012_v3 = vsel %vm2868_vm5, 0.0001, %v5698_v61  ;;  %v9761_v29 = vld [vmem:[#allocation58_spill] sm:$0xff]  ;;  %vm2871_vm6 = vcmp.eq.s32.totalorder %v2776_v62, %v8260_v21 }
 0x449   : > { %v3601_v49 = vadd.f32 %v3600_v27, %v9751_v24  ;;  %v3284_v24 = vadd.f32 %v9762_v19, %v3012_v3 }
 0x44a   : > { %4453 = vst [vmem:[%s8155_s23 + $0x150] sm:$0xff] %v3599_v40  ;;  %v2777_v40 = vadd.s32 176, %v9744_v7 }
 0x44b   : > { %v4202_v37 = vpop.f32.mrb[14].mxu0  ;;  %4454 = vst [vmem:[%s8155_s23 + $0x158] sm:$0xff] %v3601_v49  ;;  %v3604_v58 = vpop.f32.mrb[128].mxu1 }
 0x44c   : > { %4431 = vst [vmem:[%s8155_s23 + $0xa0] sm:$0xff] %v4202_v37  ;;  %v4204_v36 = vpop.f32.mrb[15].mxu0  ;;  %v3605_v46 = vadd.f32 %v3604_v58, %v3252_v32  ;;  %v3606_v23 = vpop.f32.mrb[129].mxu1  ;;  %v3015_v32 = vsel %vm2871_vm6, 0.0001, %v5698_v61  ;;  %v9763_v58 = vld [vmem:[#allocation67_spill] sm:$0xff]  ;;  %vm2874_vm7 = vcmp.eq.s32.totalorder %v2777_v40, %v8260_v21 }
 0x44d   : > { %v3607_v56 = vadd.f32 %v3606_v23, %v9753_v26  ;;  %v3290_v26 = vadd.f32 %v9764_v54, %v3015_v32 }
 0x44e   : > { %4456 = vst [vmem:[%s8155_s23 + $0x168] sm:$0xff] %v3605_v46  ;;  %v2778_v46 = vadd.s32 184, %v9744_v7 }
 0x44f   : > { %v4207_v20 = vpop.f32.mrb[16].mxu0  ;;  %4457 = vst [vmem:[%s8155_s23 + $0x170] sm:$0xff] %v3607_v56  ;;  %v3610_v60 = vpop.f32.mrb[130].mxu1 }
 0x450   : > { %4434 = vst [vmem:[%s8155_s23 + $0xb8] sm:$0xff] %v4207_v20  ;;  %v4209_v53 = vpop.f32.mrb[17].mxu0  ;;  %v3611_v10 = vadd.f32 %v3610_v60, %v9755_v2  ;;  %v3612_v33 = vpop.f32.mrb[131].mxu1  ;;  %v9765_v60 = vld [vmem:[#allocation71_spill] sm:$0xff]  ;;  %vm2877_vm8 = vcmp.eq.s32.totalorder %v2778_v46, %v8260_v21  ;;  %v2779_v2 = vadd.s32 192, %v9744_v7 }
 0x451   : > { %v3613_v44 = vadd.f32 %v3612_v33, %v3260_v11  ;;  %v3018_v11 = vsel %vm2874_vm7, 0.0001, %v5698_v61  ;;  %v9766_v33 = vld [vmem:[#allocation77_spill] sm:$0xff] }
 0x452   : > { %4459 = vst [vmem:[%s8155_s23 + $0x180] sm:$0xff] %v3611_v10  ;;  %v3296_v45 = vadd.f32 %v9766_v33, %v3018_v11  ;;  %vm2880_vm9 = vcmp.eq.s32.totalorder %v2779_v2, %v8260_v21 }
 0x453   : > { %v4212_v35 = vpop.f32.mrb[18].mxu0  ;;  %4460 = vst [vmem:[%s8155_s23 + $0x188] sm:$0xff] %v3613_v44  ;;  %v3616_v55 = vpop.f32.mrb[132].mxu1 }
 0x454   : > { %4437 = vst [vmem:[%s8155_s23 + $0xd0] sm:$0xff] %v4212_v35  ;;  %v4214_v13 = vpop.f32.mrb[19].mxu0  ;;  %v3617_v34 = vadd.f32 %v3616_v55, %v9757_v39  ;;  %v3618_v30 = vpop.f32.mrb[133].mxu1  ;;  %v9767_v55 = vld [vmem:[#allocation72_spill] sm:$0xff]  ;;  %v2780_v39 = vadd.s32 200, %v9744_v7 }
 0x455   : > { %v3619_v14 = vadd.f32 %v3618_v30, %v3266_v8  ;;  %v3021_v8 = vsel %vm2877_vm8, 0.0001, %v5698_v61  ;;  %v9768_v30 = vld [vmem:[#allocation80_spill] sm:$0xff] }
 0x456   : > { %4462 = vst [vmem:[%s8155_s23 + $0x198] sm:$0xff] %v3617_v34  ;;  %v3302_v12 = vadd.f32 %v9768_v30, %v3021_v8  ;;  %vm2883_vm10 = vcmp.eq.s32.totalorder %v2780_v39, %v8260_v21 }
 0x457   : > { %v4217_v4 = vpop.f32.mrb[20].mxu0  ;;  %4463 = vst [vmem:[%s8155_s23 + $0x1a0] sm:$0xff] %v3619_v14  ;;  %v3622_v48 = vpop.f32.mrb[134].mxu1 }
 0x458   : > { %4440 = vst [vmem:[%s8155_s23 + $0xe8] sm:$0xff] %v4217_v4  ;;  %v4219_v15 = vpop.f32.mrb[21].mxu0  ;;  %v3623_v1 = vadd.f32 %v3622_v48, %v9759_v9  ;;  %v3624_v38 = vpop.f32.mrb[135].mxu1  ;;  %v9769_v48 = vld [vmem:[#allocation81_spill] sm:$0xff]  ;;  %v2781_v9 = vadd.s32 208, %v9744_v7 }
 0x459   : > { %v3625_v59 = vadd.f32 %v3624_v38, %v3272_v51  ;;  %v3024_v51 = vsel %vm2880_vm9, 0.0001, %v5698_v61  ;;  %v9770_v38 = vld [vmem:[#allocation83_spill] sm:$0xff] }
 0x45a   : > { %4465 = vst [vmem:[%s8155_s23 + $0x1b0] sm:$0xff] %v3623_v1  ;;  %v3308_v62 = vadd.f32 %v9770_v38, %v3024_v51  ;;  %vm2886_vm11 = vcmp.eq.s32.totalorder %v2781_v9, %v8260_v21 }
 0x45b   : > { %v4222_v17 = vpop.f32.mrb[22].mxu0  ;;  %4466 = vst [vmem:[%s8155_s23 + $0x1b8] sm:$0xff] %v3625_v59  ;;  %v3628_v43 = vpop.f32.mrb[136].mxu1 }
 0x45c   : > { %4443 = vst [vmem:[%s8155_s23 + $0x100] sm:$0xff] %v4222_v17  ;;  %v4224_v0 = vpop.f32.mrb[23].mxu0  ;;  %v3629_v25 = vadd.f32 %v3628_v43, %v9761_v29  ;;  %v3630_v6 = vpop.f32.mrb[137].mxu1  ;;  %v9771_v43 = vld [vmem:[#allocation84_spill] sm:$0xff]  ;;  %v2782_v29 = vadd.s32 216, %v9744_v7 }
 0x45d   : > { %v3631_v27 = vadd.f32 %v3630_v6, %v3278_v50  ;;  %v3027_v50 = vsel %vm2883_vm10, 0.0001, %v5698_v61  ;;  %v9772_v6 = vld [vmem:[#allocation86_spill] sm:$0xff] }
 0x45e   : > { %4468 = vst [vmem:[%s8155_s23 + $0x1c8] sm:$0xff] %v3629_v25  ;;  %v3314_v40 = vadd.f32 %v9772_v6, %v3027_v50  ;;  %vm2889_vm12 = vcmp.eq.s32.totalorder %v2782_v29, %v8260_v21 }
 0x45f   : > { %v4227_v49 = vpop.f32.mrb[24].mxu0  ;;  %4469 = vst [vmem:[%s8155_s23 + $0x1d0] sm:$0xff] %v3631_v27  ;;  %v3634_v31 = vpop.f32.mrb[138].mxu1 }
 0x460   : > { %4446 = vst [vmem:[%s8155_s23 + $0x118] sm:$0xff] %v4227_v49  ;;  %v4229_v37 = vpop.f32.mrb[25].mxu0  ;;  %v3635_v63 = vadd.f32 %v3634_v31, %v9763_v58  ;;  %v3636_v36 = vpop.f32.mrb[139].mxu1  ;;  %v9773_v31 = vld [vmem:[#allocation100_spill] sm:$0xff]  ;;  %v2783_v58 = vadd.s32 224, %v9744_v7 }
 0x461   : > { %v3637_v23 = vadd.f32 %v3636_v36, %v3284_v24  ;;  %v3030_v24 = vsel %vm2886_vm11, 0.0001, %v5698_v61  ;;  %v9774_v36 = vld [vmem:[#allocation95_spill] sm:$0xff] }
 0x462   : > { %4471 = vst [vmem:[%s8155_s23 + $0x1e0] sm:$0xff] %v3635_v63  ;;  %v3320_v46 = vadd.f32 %v9774_v36, %v3030_v24  ;;  %vm2892_vm13 = vcmp.eq.s32.totalorder %v2783_v58, %v8260_v21 }
 0x463   : > { %v4232_v56 = vpop.f32.mrb[26].mxu0  ;;  %4472 = vst [vmem:[%s8155_s23 + $0x1e8] sm:$0xff] %v3637_v23  ;;  %v3640_v52 = vpop.f32.mrb[140].mxu1 }
 0x464   : > { %4449 = vst [vmem:[%s8155_s23 + $0x130] sm:$0xff] %v4232_v56  ;;  %v4234_v20 = vpop.f32.mrb[27].mxu0  ;;  %v3641_v22 = vadd.f32 %v3640_v52, %v9765_v60  ;;  %v3642_v53 = vpop.f32.mrb[141].mxu1  ;;  %v9775_v52 = vld [vmem:[#allocation91_spill] sm:$0xff]  ;;  %v2784_v60 = vadd.s32 232, %v9744_v7 }
 0x465   : > { %v3643_v10 = vadd.f32 %v3642_v53, %v3290_v26  ;;  %v3033_v26 = vsel %vm2889_vm12, 0.0001, %v5698_v61 }
 0x466   : > { %4474 = vst [vmem:[%s8155_s23 + $0x1f8] sm:$0xff] %v3641_v22 }
 0x467   : > { %v4237_v44 = vpop.f32.mrb[28].mxu0  ;;  %4475 = vst [vmem:[%s8155_s23 + $0x200] sm:$0xff] %v3643_v10  ;;  %v3646_v28 = vpop.f32.mrb[142].mxu1 }
 0x468   : > { %4452 = vst [vmem:[%s8155_s23 + $0x148] sm:$0xff] %v4237_v44  ;;  %v4239_v35 = vpop.f32.mrb[29].mxu0  ;;  %v3647_v57 = vadd.f32 %v3646_v28, %v9767_v55  ;;  %v3648_v13 = vpop.f32.mrb[143].mxu1 }
 0x469   : > { %v3649_v34 = vadd.f32 %v3648_v13, %v3296_v45 }
 0x46a   : > { %4477 = vst [vmem:[%s8155_s23 + $0x210] sm:$0xff] %v3647_v57 }
 0x46b   : > { %v4242_v14 = vpop.f32.mrb[30].mxu0  ;;  %4478 = vst [vmem:[%s8155_s23 + $0x218] sm:$0xff] %v3649_v34  ;;  %v3652_v47 = vpop.f32.mrb[144].mxu1 }
 0x46c   : > { %4455 = vst [vmem:[%s8155_s23 + $0x160] sm:$0xff] %v4242_v14  ;;  %v4244_v4 = vpop.f32.mrb[31].mxu0  ;;  %v3653_v18 = vadd.f32 %v3652_v47, %v9769_v48  ;;  %v3654_v15 = vpop.f32.mrb[145].mxu1 }
 0x46d   : > { %v3655_v1 = vadd.f32 %v3654_v15, %v3302_v12 }
 0x46e   : > { %4480 = vst [vmem:[%s8155_s23 + $0x228] sm:$0xff] %v3653_v18 }
 0x46f   : > { %v4247_v59 = vpop.f32.mrb[32].mxu0  ;;  %4481 = vst [vmem:[%s8155_s23 + $0x230] sm:$0xff] %v3655_v1  ;;  %v3658_v16 = vpop.f32.mrb[146].mxu1 }
 0x470   : > { %4458 = vst [vmem:[%s8155_s23 + $0x178] sm:$0xff] %v4247_v59  ;;  %v4249_v17 = vpop.f32.mrb[33].mxu0  ;;  %v3659_v3 = vadd.f32 %v3658_v16, %v9771_v43  ;;  %v3660_v0 = vpop.f32.mrb[147].mxu1 }
 0x471   : > { %v3661_v25 = vadd.f32 %v3660_v0, %v3308_v62 }
 0x472   : > { %4483 = vst [vmem:[%s8155_s23 + $0x240] sm:$0xff] %v3659_v3 }
 0x473   : > { %v4252_v27 = vpop.f32.mrb[34].mxu0  ;;  %4484 = vst [vmem:[%s8155_s23 + $0x248] sm:$0xff] %v3661_v25  ;;  %v3664_v19 = vpop.f32.mrb[148].mxu1 }
 0x474   : > { %4461 = vst [vmem:[%s8155_s23 + $0x190] sm:$0xff] %v4252_v27  ;;  %v4254_v49 = vpop.f32.mrb[35].mxu0  ;;  %v3665_v32 = vadd.f32 %v3664_v19, %v9773_v31  ;;  %v3666_v37 = vpop.f32.mrb[149].mxu1 }
 0x475   : > { %v3667_v63 = vadd.f32 %v3666_v37, %v3314_v40 }
 0x476   : > { %4486 = vst [vmem:[%s8155_s23 + $0x258] sm:$0xff] %v3665_v32 }
 0x477   : > { %v4257_v23 = vpop.f32.mrb[36].mxu0  ;;  %4487 = vst [vmem:[%s8155_s23 + $0x260] sm:$0xff] %v3667_v63  ;;  %v3670_v54 = vpop.f32.mrb[150].mxu1 }
 0x478   : > { %4464 = vst [vmem:[%s8155_s23 + $0x1a8] sm:$0xff] %v4257_v23  ;;  %v4259_v56 = vpop.f32.mrb[37].mxu0  ;;  %v3671_v11 = vadd.f32 %v3670_v54, %v9775_v52  ;;  %v3672_v20 = vpop.f32.mrb[151].mxu1 }
 0x479   : > { %v3673_v22 = vadd.f32 %v3672_v20, %v3320_v46 }
 0x47a   : > { %5591 = shalt.err (!%p5588_p12)
}
 0x47b   : > { %s5592_s13 = scalar_lea.hbm %s8372_s29, 384  ;;  %s5596_s14 = scalar_lea.hbm %s8601_s7, 1536 }
 0x47c   : > { %p5593_p5 = scmp.ne.s32.totalorder %s8372_s29, %s5592_s13  ;;  %p5597_p3 = scmp.lt.u32.totalorder %s8372_s29, %s8601_s7 }
 0x47d   : > { %p5598_p7 = scmp.lt.u32.totalorder %s5596_s14, %s5592_s13  ;;  %p5600_p1 = scmp.lt.u32.totalorder %s5592_s13, %s8372_s29 }
 0x47e   : > { %p5594_p10 = pnand %p5593_p5, %p9776_p2 }
 0x47f   : > { %p5599_p11 = por %p5598_p7, %p5597_p3 }
 0x480   : > { %p5595_p9 = pneg %p5594_p10 }
 0x481   : > { %p5601_p4 = por %p5600_p1, %p5599_p11 }
 0x483   : > { %p5602_p13 = pnand %p5601_p4, %p5595_p9 }
 0x485   : > { %5605 = shalt.err (!%p5602_p13)
}
 0x486   : > { %5354 = dma.vmem_to_hbm [thread:$0]  (%p9776_p2), %s8358_s10, 384, %s8372_s29, %s4564_s11   ;;  %4489 = vst [vmem:[%s8155_s23 + $0x270] sm:$0xff] %v3671_v11  ;;  %v9777_v53 = vld [vmem:[#allocation96_spill] sm:$0xff]  ;;  %v4262_v10 = vpop.f32.mrb[38].mxu0  ;;  %4490 = vst [vmem:[%s8155_s23 + $0x278] sm:$0xff] %v3673_v22  ;;  %v3676_v33 = vpop.f32.mrb[152].mxu1  ;;  %vm2895_vm14 = vcmp.eq.s32.totalorder %v2784_v60, %v8260_v21 }
 0x487   : > { %v3326_v2 = vadd.f32 %v9777_v53, %v3033_v26  ;;  %v3036_v45 = vsel %vm2892_vm13, 0.0001, %v5698_v61  ;;  %4467 = vst [vmem:[%s8155_s23 + $0x1c0] sm:$0xff] %v4262_v10  ;;  %v4264_v44 = vpop.f32.mrb[39].mxu0  ;;  %v9778_v28 = vld [vmem:[#allocation97_spill] sm:$0xff]  ;;  %v3678_v35 = vpop.f32.mrb[153].mxu1 }
 0x488   : > { %v3677_v8 = vadd.f32 %v3676_v33, %v9778_v28  ;;  %v2785_v55 = vadd.s32 240, %v9744_v7  ;;  %v9779_v13 = vld [vmem:[#allocation104_spill] sm:$0xff]  ;;  %v4267_v34 = vpop.f32.mrb[40].mxu0  ;;  %v3682_v30 = vpop.f32.mrb[154].mxu1  ;;  %v3039_v12 = vsel %vm2895_vm14, 0.0001, %v5698_v61 }
 0x489   : > { %v3679_v57 = vadd.f32 %v3678_v35, %v3326_v2  ;;  %v3332_v39 = vadd.f32 %v9779_v13, %v3036_v45  ;;  %4470 = vst [vmem:[%s8155_s23 + $0x1d8] sm:$0xff] %v4267_v34  ;;  %v4269_v14 = vpop.f32.mrb[41].mxu0  ;;  %v9780_v47 = vld [vmem:[#allocation117_spill] sm:$0xff]  ;;  %v3684_v4 = vpop.f32.mrb[155].mxu1  ;;  %v2786_v48 = vadd.s32 248, %v9744_v7  ;;  %v9782_v16 = vld [vmem:[#allocation98_spill] sm:$0xff] }
 0x48a   : > { %4492 = vst [vmem:[%s8155_s23 + $0x288] sm:$0xff] %v3677_v8  ;;  %v3683_v51 = vadd.f32 %v3682_v30, %v9780_v47  ;;  %vm2898_vm15 = vcmp.eq.s32.totalorder %v2785_v55, %v8260_v21  ;;  %v9781_v15 = vld [vmem:[#allocation109_spill] sm:$0xff]  ;;  %v4272_v1 = vpop.f32.mrb[42].mxu0  ;;  %v3688_v38 = vpop.f32.mrb[156].mxu1  ;;  %v9783_v40 = vld [vmem:[#allocation111_spill] sm:$0xff]  ;;  %v9784_v32 = vld [vmem:[#allocation110_spill] sm:$0xff] }
 0x48b   : > { %4493 = vst [vmem:[%s8155_s23 + $0x290] sm:$0xff] %v3679_v57  ;;  %v3685_v18 = vadd.f32 %v3684_v4, %v3332_v39  ;;  %v3338_v9 = vadd.f32 %v9781_v15, %v3039_v12  ;;  %v3042_v62 = vsel %vm2898_vm15, 0.0001, %v5698_v61  ;;  %4473 = vst [vmem:[%s8155_s23 + $0x1f0] sm:$0xff] %v4272_v1  ;;  %v4274_v59 = vpop.f32.mrb[43].mxu0  ;;  %v3689_v50 = vadd.f32 %v3688_v38, %v9782_v16  ;;  %v3690_v17 = vpop.f32.mrb[157].mxu1 }
 0x48c   : > { %4495 = vst [vmem:[%s8155_s23 + $0x2a0] sm:$0xff] %v3683_v51  ;;  %vm2901_vm0 = vcmp.eq.s32.totalorder %v2786_v48, %v8260_v21  ;;  %v3344_v3 = vadd.f32 %v8058_v41, %v3042_v62  ;;  %v4277_v0 = vpop.f32.mrb[44].mxu0  ;;  %v3694_v29 = vpop.f32.mrb[158].mxu1  ;;  %v2787_v14 = vadd.s32 256, %v9744_v7  ;;  %v8459_v47 = vadd.s32 256, %v8124_v5  ;;  %s5335_s10 = smul.u32 18432, %s5764_s28 }
 0x48d   : > { %4496 = vst [vmem:[%s8155_s23 + $0x2a8] sm:$0xff] %v3685_v18  ;;  %v3691_v43 = vadd.f32 %v3690_v17, %v3338_v9  ;;  %4498 = vst [vmem:[%s8155_s23 + $0x2b8] sm:$0xff] %v3689_v50  ;;  %v3045_v25 = vsel %vm2901_vm0, 0.0001, %v5698_v61  ;;  %v4279_v6 = vpop.f32.mrb[45].mxu0  ;;  %v3695_v27 = vadd.f32 %v3694_v29, %v9783_v40  ;;  %v3696_v19 = vpop.f32.mrb[159].mxu1 }
 0x48e   : > { %4476 = vst [vmem:[%s8155_s23 + $0x208] sm:$0xff] %v4277_v0  ;;  %v3697_v21 = vadd.f32 %v3696_v19, %v3344_v3  ;;  %v3350_v24 = vadd.f32 %v8066_v42, %v3045_v25  ;;  %v4282_v49 = vpop.f32.mrb[46].mxu0  ;;  %v3700_v41 = vpop.f32.mrb[160].mxu1  ;;  %vm2905_vm1 = vcmp.eq.s32.totalorder %v2787_v14, %v8459_v47  ;;  %v2788_v15 = vadd.s32 264, %v9744_v7  ;;  %s4577_s17 = sshll.u32 %s8155_s23, 4  ;;  %s8548_s29 = scalar_lea.hbm %s8600_s6, %s5335_s10  ;;  %s8550_s17 = int_to_ptr.vmem [resolvable:$true] %s4577_s17 }
 0x48f   : > { %4499 = vst [vmem:[%s8155_s23 + $0x2c0] sm:$0xff] %v3691_v43  ;;  %4501 = vst [vmem:[%s8155_s23 + $0x2d0] sm:$0xff] %v3695_v27  ;;  %v4284_v31 = vpop.f32.mrb[47].mxu0  ;;  %v3701_v37 = vadd.f32 %v3700_v41, %v9784_v32  ;;  %v3702_v58 = vpop.f32.mrb[161].mxu1  ;;  %v3049_v62 = vsel %vm2905_vm1, 0.0001, %v5698_v61 }
 0x490   : > { %4502 = vst [vmem:[%s8155_s23 + $0x2d8] sm:$0xff] %v3697_v21  ;;  %4479 = vst [vmem:[%s8155_s23 + $0x220] sm:$0xff] %v4282_v49  ;;  %v3703_v63 = vadd.f32 %v3702_v58, %v3350_v24  ;;  %v4287_v36 = vpop.f32.mrb[48].mxu0  ;;  %v3706_v46 = vpop.f32.mrb[66].mxu1  ;;  %vm2908_vm2 = vcmp.eq.s32.totalorder %v2788_v15, %v8459_v47  ;;  %v2789_v59 = vadd.s32 272, %v9744_v7  ;;  %v2790_v29 = vadd.s32 280, %v9744_v7 }
 0x491   : > { %4504 = vst [vmem:[%s8155_s23 + $0x2e8] sm:$0xff] %v3701_v37  ;;  %4482 = vst [vmem:[%s8155_s23 + $0x238] sm:$0xff] %v4287_v36  ;;  %v4289_v42 = vpop.f32.mrb[49].mxu0  ;;  %v3708_v23 = vpop.f32.mrb[67].mxu1  ;;  %v3052_v0 = vsel %vm2908_vm2, 0.0001, %v5698_v61 }
 0x492   : > { %4505 = vst [vmem:[%s8155_s23 + $0x2f0] sm:$0xff] %v3703_v63  ;;  %4507 = vst [vmem:[%s8155_s23 + $0x300] sm:$0xff] %v3706_v46  ;;  %vm2911_vm3 = vcmp.eq.s32.totalorder %v2789_v59, %v8459_v47  ;;  %vm2914_vm4 = vcmp.eq.s32.totalorder %v2790_v29, %v8459_v47  ;;  %v2791_v24 = vadd.s32 288, %v9744_v7  ;;  %v2792_v63 = vadd.s32 296, %v9744_v7  ;;  %s4559_s28 = scalar_lea.sflag [#allocation5], %s5970_s3  ;;  %s5606_s11 = scalar_lea.vmem %s8550_s17, 18432 }
 0x493   : > { %4508 = vst [vmem:[%s8155_s23 + $0x308] sm:$0xff] %v3708_v23  ;;  %v4292_v54 = vpop.f32.mrb[50].mxu0  ;;  %v3712_v26 = vpop.f32.mrb[68].mxu1  ;;  %v3055_v21 = vsel %vm2911_vm3, 0.0001, %v5698_v61  ;;  %p5607_p8 = scmp.ne.s32.totalorder %s8550_s17, %s5606_s11  ;;  %s5700_s9 = smov [#allocation12]  }
 0x494   : > { %4485 = vst [vmem:[%s8155_s23 + $0x250] sm:$0xff] %v4292_v54  ;;  %v4294_v56 = vpop.f32.mrb[51].mxu0  ;;  %4510 = vst [vmem:[%s8155_s23 + $0x318] sm:$0xff] %v3712_v26  ;;  %v3714_v52 = vpop.f32.mrb[69].mxu1  ;;  %v3058_v58 = vsel %vm2914_vm4, 0.0001, %v5698_v61  ;;  %vm2917_vm5 = vcmp.eq.s32.totalorder %v2791_v24, %v8459_v47  ;;  %vm2920_vm6 = vcmp.eq.s32.totalorder %v2792_v63, %v8459_v47 }
 0x495   : > { %4511 = vst [vmem:[%s8155_s23 + $0x320] sm:$0xff] %v3714_v52  ;;  %v3061_v26 = vsel %vm2917_vm5, 0.0001, %v5698_v61  ;;  %v2793_v56 = vadd.s32 304, %v9744_v7  ;;  %v2800_v24 = vadd.s32 360, %v9744_v7  ;;  %p5608_p0 = pnand %p5607_p8, %p9776_p2  ;;  %s5610_s12 = sshll.u32 %s5700_s9, 4  ;;  %s5611_s12 = int_to_ptr.vmem [resolvable:$false] %s5610_s12 }
 0x496   : > { %s5612_s30 = scalar_lea.vmem %s5611_s12, 36864  ;;  %p5613_p12 = scmp.lt.s32.totalorder %s8550_s17, %s5611_s12 }
 0x497   : > { %v4297_v11 = vpop.f32.mrb[52].mxu0  ;;  %v3718_v20 = vpop.f32.mrb[70].mxu1  ;;  %vm2923_vm7 = vcmp.eq.s32.totalorder %v2793_v56, %v8459_v47  ;;  %vm2944_vm14 = vcmp.eq.s32.totalorder %v2800_v24, %v8459_v47  ;;  %p5609_p6 = pneg %p5608_p0  ;;  %p5614_p5 = scmp.lt.s32.totalorder %s5612_s30, %s5606_s11 }
 0x498   : > { %4488 = vst [vmem:[%s8155_s23 + $0x268] sm:$0xff] %v4297_v11  ;;  %v4299_v60 = vpop.f32.mrb[53].mxu0  ;;  %4513 = vst [vmem:[%s8155_s23 + $0x330] sm:$0xff] %v3718_v20  ;;  %v3720_v22 = vpop.f32.mrb[71].mxu1 }
 0x499   : > { %4514 = vst [vmem:[%s8155_s23 + $0x338] sm:$0xff] %v3720_v22  ;;  %p5615_p10 = por %p5614_p5, %p5613_p12 }
 0x49b   : > { %v4302_v53 = vpop.f32.mrb[54].mxu0  ;;  %v3724_v2 = vpop.f32.mrb[72].mxu1  ;;  %p5616_p9 = pnand %p5615_p10, %p5609_p6 }
 0x49c   : > { %4491 = vst [vmem:[%s8155_s23 + $0x280] sm:$0xff] %v4302_v53  ;;  %v4304_v10 = vpop.f32.mrb[55].mxu0  ;;  %4516 = vst [vmem:[%s8155_s23 + $0x348] sm:$0xff] %v3724_v2  ;;  %v3726_v33 = vpop.f32.mrb[73].mxu1  ;;  %v3064_v53 = vsel %vm2920_vm6, 0.0001, %v5698_v61 }
 0x49d   : > { %4517 = vst [vmem:[%s8155_s23 + $0x350] sm:$0xff] %v3726_v33  ;;  %v2794_v2 = vadd.s32 312, %v9744_v7  ;;  %v2795_v10 = vadd.s32 320, %v9744_v7 }
 0x49f   : > { %v4307_v45 = vpop.f32.mrb[56].mxu0  ;;  %v3730_v44 = vpop.f32.mrb[74].mxu1  ;;  %vm2926_vm8 = vcmp.eq.s32.totalorder %v2794_v2, %v8459_v47  ;;  %vm2929_vm9 = vcmp.eq.s32.totalorder %v2795_v10, %v8459_v47 }
 0x4a0   : > { %4494 = vst [vmem:[%s8155_s23 + $0x298] sm:$0xff] %v4307_v45  ;;  %v4309_v28 = vpop.f32.mrb[57].mxu0  ;;  %4519 = vst [vmem:[%s8155_s23 + $0x360] sm:$0xff] %v3730_v44  ;;  %v3732_v8 = vpop.f32.mrb[75].mxu1  ;;  %v3073_v14 = vsel %vm2929_vm9, 0.0001, %v5698_v61 }
 0x4a1   : > { %4520 = vst [vmem:[%s8155_s23 + $0x368] sm:$0xff] %v3732_v8 }
 0x4a3   : > { %v4312_v35 = vpop.f32.mrb[58].mxu0  ;;  %v3736_v55 = vpop.f32.mrb[76].mxu1 }
 0x4a4   : > { %4497 = vst [vmem:[%s8155_s23 + $0x2b0] sm:$0xff] %v4312_v35  ;;  %v4314_v57 = vpop.f32.mrb[59].mxu0  ;;  %4522 = vst [vmem:[%s8155_s23 + $0x378] sm:$0xff] %v3736_v55  ;;  %v3738_v13 = vpop.f32.mrb[77].mxu1  ;;  %v3067_v35 = vsel %vm2923_vm7, 0.0001, %v5698_v61 }
 0x4a5   : > { %4523 = vst [vmem:[%s8155_s23 + $0x380] sm:$0xff] %v3738_v13  ;;  %v2796_v55 = vadd.s32 328, %v9744_v7 }
 0x4a7   : > { %v4317_v39 = vpop.f32.mrb[60].mxu0  ;;  %v3742_v34 = vpop.f32.mrb[78].mxu1  ;;  %vm2932_vm10 = vcmp.eq.s32.totalorder %v2796_v55, %v8459_v47 }
 0x4a8   : > { %4500 = vst [vmem:[%s8155_s23 + $0x2c8] sm:$0xff] %v4317_v39  ;;  %v4319_v30 = vpop.f32.mrb[61].mxu0  ;;  %4525 = vst [vmem:[%s8155_s23 + $0x390] sm:$0xff] %v3742_v34  ;;  %v3744_v12 = vpop.f32.mrb[79].mxu1 }
 0x4a9   : > { %4526 = vst [vmem:[%s8155_s23 + $0x398] sm:$0xff] %v3744_v12  ;;  %v3070_v12 = vsel %vm2926_vm8, 0.0001, %v5698_v61 }
 0x4ab   : > { %v4322_v51 = vpop.f32.mrb[62].mxu0  ;;  %v3748_v4 = vpop.f32.mrb[80].mxu1 }
 0x4ac   : > { %4503 = vst [vmem:[%s8155_s23 + $0x2e0] sm:$0xff] %v4322_v51  ;;  %v4324_v48 = vpop.f32.mrb[63].mxu0  ;;  %4528 = vst [vmem:[%s8155_s23 + $0x3a8] sm:$0xff] %v3748_v4  ;;  %v3750_v18 = vpop.f32.mrb[81].mxu1  ;;  %v2797_v51 = vadd.s32 336, %v9744_v7 }
 0x4ad   : > { %4529 = vst [vmem:[%s8155_s23 + $0x3b0] sm:$0xff] %v3750_v18 }
 0x4ae   : > { %vm2935_vm11 = vcmp.eq.s32.totalorder %v2797_v51, %v8459_v47 }
 0x4af   : > { %v4327_v9 = vpop.f32.mrb[64].mxu0  ;;  %v3754_v1 = vpop.f32.mrb[82].mxu1 }
 0x4b0   : > { %4506 = vst [vmem:[%s8155_s23 + $0x2f8] sm:$0xff] %v4327_v9  ;;  %v4329_v5 = vpop.f32.mrb[65].mxu0  ;;  %4531 = vst [vmem:[%s8155_s23 + $0x3c0] sm:$0xff] %v3754_v1  ;;  %v3756_v38 = vpop.f32.mrb[83].mxu1 }
 0x4b1   : > { %4532 = vst [vmem:[%s8155_s23 + $0x3c8] sm:$0xff] %v3756_v38  ;;  %v3076_v5 = vsel %vm2932_vm10, 0.0001, %v5698_v61  ;;  %v2798_v38 = vadd.s32 344, %v9744_v7 }
 0x4b3   : > { %v4332_v16 = vpop.f32.mrb[66].mxu0  ;;  %v3760_v50 = vpop.f32.mrb[84].mxu1  ;;  %vm2938_vm12 = vcmp.eq.s32.totalorder %v2798_v38, %v8459_v47 }
 0x4b4   : > { %v5192_v17 = vadd.f32 %v4332_v16, %v3049_v62  ;;  %v4334_v43 = vpop.f32.mrb[67].mxu0  ;;  %4534 = vst [vmem:[%s8155_s23 + $0x3d8] sm:$0xff] %v3760_v50  ;;  %v3762_v3 = vpop.f32.mrb[85].mxu1 }
 0x4b5   : > { %4535 = vst [vmem:[%s8155_s23 + $0x3e0] sm:$0xff] %v3762_v3  ;;  %v3079_v3 = vsel %vm2935_vm11, 0.0001, %v5698_v61 }
 0x4b6   : > { %4509 = vst [vmem:[%s8155_s23 + $0x310] sm:$0xff] %v5192_v17 }
 0x4b7   : > { %v4337_v25 = vpop.f32.mrb[68].mxu0  ;;  %v3766_v6 = vpop.f32.mrb[86].mxu1 }
 0x4b8   : > { %v5193_v40 = vadd.f32 %v4337_v25, %v3052_v0  ;;  %v4339_v27 = vpop.f32.mrb[69].mxu0  ;;  %4537 = vst [vmem:[%s8155_s23 + $0x3f0] sm:$0xff] %v3766_v6  ;;  %v3768_v19 = vpop.f32.mrb[87].mxu1  ;;  %v2799_v0 = vadd.s32 352, %v9744_v7 }
 0x4b9   : > { %4538 = vst [vmem:[%s8155_s23 + $0x3f8] sm:$0xff] %v3768_v19 }
 0x4ba   : > { %4512 = vst [vmem:[%s8155_s23 + $0x328] sm:$0xff] %v5193_v40  ;;  %vm2941_vm13 = vcmp.eq.s32.totalorder %v2799_v0, %v8459_v47 }
 0x4bb   : > { %v4342_v49 = vpop.f32.mrb[70].mxu0  ;;  %v3772_v41 = vpop.f32.mrb[88].mxu1  ;;  %v3085_v63 = vsel %vm2941_vm13, 0.0001, %v5698_v61 }
 0x4bc   : > { %v5194_v31 = vadd.f32 %v4342_v49, %v3055_v21  ;;  %v4344_v32 = vpop.f32.mrb[71].mxu0  ;;  %4540 = vst [vmem:[%s8155_s23 + $0x408] sm:$0xff] %v3772_v41  ;;  %v3774_v37 = vpop.f32.mrb[89].mxu1  ;;  %v3082_v21 = vsel %vm2938_vm12, 0.0001, %v5698_v61 }
 0x4bd   : > { %4541 = vst [vmem:[%s8155_s23 + $0x410] sm:$0xff] %v3774_v37 }
 0x4be   : > { %4515 = vst [vmem:[%s8155_s23 + $0x340] sm:$0xff] %v5194_v31 }
 0x4bf   : > { %v4347_v36 = vpop.f32.mrb[72].mxu0  ;;  %v3778_v46 = vpop.f32.mrb[90].mxu1 }
 0x4c0   : > { %v5195_v42 = vadd.f32 %v4347_v36, %v3058_v58  ;;  %v4349_v23 = vpop.f32.mrb[73].mxu0  ;;  %4543 = vst [vmem:[%s8155_s23 + $0x420] sm:$0xff] %v3778_v46  ;;  %v3780_v54 = vpop.f32.mrb[91].mxu1  ;;  %v2801_v36 = vadd.s32 368, %v9744_v7 }
 0x4c1   : > { %4544 = vst [vmem:[%s8155_s23 + $0x428] sm:$0xff] %v3780_v54 }
 0x4c2   : > { %4518 = vst [vmem:[%s8155_s23 + $0x358] sm:$0xff] %v5195_v42  ;;  %vm2947_vm15 = vcmp.eq.s32.totalorder %v2801_v36, %v8459_v47 }
 0x4c3   : > { %v4352_v52 = vpop.f32.mrb[74].mxu0  ;;  %v3784_v11 = vpop.f32.mrb[92].mxu1 }
 0x4c4   : > { %v5196_v20 = vadd.f32 %v4352_v52, %v3061_v26  ;;  %v4354_v60 = vpop.f32.mrb[75].mxu0  ;;  %4546 = vst [vmem:[%s8155_s23 + $0x438] sm:$0xff] %v3784_v11  ;;  %v3786_v22 = vpop.f32.mrb[93].mxu1  ;;  %v3088_v52 = vsel %vm2944_vm14, 0.0001, %v5698_v61  ;;  %v2802_v11 = vadd.s32 376, %v9744_v7 }
 0x4c5   : > { %4547 = vst [vmem:[%s8155_s23 + $0x440] sm:$0xff] %v3786_v22 }
 0x4c6   : > { %4521 = vst [vmem:[%s8155_s23 + $0x370] sm:$0xff] %v5196_v20  ;;  %vm2950_vm0 = vcmp.eq.s32.totalorder %v2802_v11, %v8459_v47 }
 0x4c7   : > { %v4357_v33 = vpop.f32.mrb[76].mxu0  ;;  %v3790_v45 = vpop.f32.mrb[94].mxu1  ;;  %v3094_v55 = vsel %vm2950_vm0, 0.0001, %v5698_v61 }
 0x4c8   : > { %v5197_v44 = vadd.f32 %v4357_v33, %v3064_v53  ;;  %v4359_v28 = vpop.f32.mrb[77].mxu0  ;;  %4549 = vst [vmem:[%s8155_s23 + $0x450] sm:$0xff] %v3790_v45  ;;  %v3792_v8 = vpop.f32.mrb[95].mxu1  ;;  %v3091_v33 = vsel %vm2947_vm15, 0.0001, %v5698_v61 }
 0x4c9   : > { %4550 = vst [vmem:[%s8155_s23 + $0x458] sm:$0xff] %v3792_v8 }
 0x4ca   : > { %4524 = vst [vmem:[%s8155_s23 + $0x388] sm:$0xff] %v5197_v44 }
 0x4cb   : > { %v4362_v57 = vpop.f32.mrb[78].mxu0  ;;  %v3796_v13 = vpop.f32.mrb[96].mxu1 }
 0x4cc   : > { %v5198_v39 = vadd.f32 %v4362_v57, %v3067_v35  ;;  %v4364_v34 = vpop.f32.mrb[79].mxu0  ;;  %4552 = vst [vmem:[%s8155_s23 + $0x468] sm:$0xff] %v3796_v13  ;;  %v3798_v30 = vpop.f32.mrb[97].mxu1 }
 0x4cd   : > { %4553 = vst [vmem:[%s8155_s23 + $0x470] sm:$0xff] %v3798_v30 }
 0x4ce   : > { %4527 = vst [vmem:[%s8155_s23 + $0x3a0] sm:$0xff] %v5198_v39 }
 0x4cf   : > { %v4367_v4 = vpop.f32.mrb[80].mxu0  ;;  %v4067_v48 = vpop.f32.mrb[162].mxu1 }
 0x4d0   : > { %v5199_v18 = vadd.f32 %v4367_v4, %v3070_v12  ;;  %v4369_v15 = vpop.f32.mrb[81].mxu0  ;;  %v4068_v9 = vadd.f32 %v4067_v48, %v3073_v14  ;;  %v4069_v1 = vpop.f32.mrb[163].mxu1 }
 0x4d2   : > { %4530 = vst [vmem:[%s8155_s23 + $0x3b8] sm:$0xff] %v5199_v18 }
 0x4d3   : > { %v4372_v62 = vpop.f32.mrb[82].mxu0  ;;  %v4072_v59 = vpop.f32.mrb[164].mxu1 }
 0x4d4   : > { %v4373_v16 = vadd.f32 %v4372_v62, %v4068_v9  ;;  %v4374_v50 = vpop.f32.mrb[83].mxu0  ;;  %v4073_v17 = vadd.f32 %v4072_v59, %v3076_v5  ;;  %v4074_v43 = vpop.f32.mrb[165].mxu1 }
 0x4d6   : > { %4533 = vst [vmem:[%s8155_s23 + $0x3d0] sm:$0xff] %v4373_v16 }
 0x4d7   : > { %v4377_v29 = vpop.f32.mrb[84].mxu0  ;;  %v4077_v25 = vpop.f32.mrb[166].mxu1 }
 0x4d8   : > { %v4378_v6 = vadd.f32 %v4377_v29, %v4073_v17  ;;  %v4379_v40 = vpop.f32.mrb[85].mxu0  ;;  %v4078_v27 = vadd.f32 %v4077_v25, %v3079_v3  ;;  %v4079_v19 = vpop.f32.mrb[167].mxu1 }
 0x4da   : > { %4536 = vst [vmem:[%s8155_s23 + $0x3e8] sm:$0xff] %v4378_v6 }
 0x4db   : > { %v4382_v49 = vpop.f32.mrb[86].mxu0  ;;  %v4082_v41 = vpop.f32.mrb[168].mxu1 }
 0x4dc   : > { %v4383_v31 = vadd.f32 %v4382_v49, %v4078_v27  ;;  %v4384_v32 = vpop.f32.mrb[87].mxu0  ;;  %v4083_v37 = vadd.f32 %v4082_v41, %v3082_v21  ;;  %v4084_v58 = vpop.f32.mrb[169].mxu1 }
 0x4de   : > { %4539 = vst [vmem:[%s8155_s23 + $0x400] sm:$0xff] %v4383_v31 }
 0x4df   : > { %v4387_v46 = vpop.f32.mrb[88].mxu0  ;;  %v4087_v42 = vpop.f32.mrb[170].mxu1 }
 0x4e0   : > { %v4388_v23 = vadd.f32 %v4387_v46, %v4083_v37  ;;  %v4389_v54 = vpop.f32.mrb[89].mxu0  ;;  %v4088_v26 = vadd.f32 %v4087_v42, %v3085_v63  ;;  %v4089_v56 = vpop.f32.mrb[171].mxu1 }
 0x4e2   : > { %4542 = vst [vmem:[%s8155_s23 + $0x418] sm:$0xff] %v4388_v23 }
 0x4e3   : > { %v4392_v20 = vpop.f32.mrb[90].mxu0  ;;  %v4092_v60 = vpop.f32.mrb[172].mxu1 }
 0x4e4   : > { %v4393_v22 = vadd.f32 %v4392_v20, %v4088_v26  ;;  %v4394_v53 = vpop.f32.mrb[91].mxu0  ;;  %v4093_v2 = vadd.f32 %v4092_v60, %v3088_v52  ;;  %v4094_v10 = vpop.f32.mrb[173].mxu1 }
 0x4e6   : > { %4545 = vst [vmem:[%s8155_s23 + $0x430] sm:$0xff] %v4393_v22 }
 0x4e7   : > { %v4397_v45 = vpop.f32.mrb[92].mxu0  ;;  %v4097_v44 = vpop.f32.mrb[174].mxu1 }
 0x4e8   : > { %v4398_v28 = vadd.f32 %v4397_v45, %v4093_v2  ;;  %v4399_v8 = vpop.f32.mrb[93].mxu0  ;;  %v4098_v7 = vadd.f32 %v4097_v44, %v3091_v33  ;;  %v4099_v35 = vpop.f32.mrb[175].mxu1 }
 0x4ea   : > { %4548 = vst [vmem:[%s8155_s23 + $0x448] sm:$0xff] %v4398_v28 }
 0x4eb   : > { %v4402_v57 = vpop.f32.mrb[94].mxu0  ;;  %v4102_v13 = vpop.f32.mrb[176].mxu1 }
 0x4ec   : > { %v4403_v39 = vadd.f32 %v4402_v57, %v4098_v7  ;;  %v4404_v34 = vpop.f32.mrb[95].mxu0  ;;  %v4103_v47 = vadd.f32 %v4102_v13, %v3094_v55  ;;  %v4104_v30 = vpop.f32.mrb[177].mxu1 }
 0x4ee   : > { %4551 = vst [vmem:[%s8155_s23 + $0x460] sm:$0xff] %v4403_v39 }
 0x4ef   : > { %v4407_v12 = vpop.f32.mrb[96].mxu0 }
 0x4f0   : > { %v4408_v61 = vadd.f32 %v4407_v12, %v4103_v47  ;;  %v4409_v14 = vpop.f32.mrb[97].mxu0 }
 0x4f2   : > { %4554 = vst [vmem:[%s8155_s23 + $0x478] sm:$0xff] %v4408_v61 }
 0x4f3   : > { %5619 = shalt.err (!%p5616_p9)
}
 0x4f4   : > { %s5620_s23 = scalar_lea.hbm %s8548_s29, 18432  ;;  %s5624_s20 = scalar_lea.hbm %s8600_s6, 73728 }
 0x4f5   : > { %p5621_p3 = scmp.ne.s32.totalorder %s8548_s29, %s5620_s23  ;;  %p5625_p1 = scmp.lt.u32.totalorder %s8548_s29, %s8600_s6 }
 0x4f6   : > { %p5626_p4 = scmp.lt.u32.totalorder %s5624_s20, %s5620_s23  ;;  %p5628_p8 = scmp.lt.u32.totalorder %s5620_s23, %s8548_s29 }
 0x4f7   : > { %p5622_p7 = pnand %p5621_p3, %p9776_p2 }
 0x4f8   : > { %p5627_p13 = por %p5626_p4, %p5625_p1 }
 0x4f9   : > { %p5623_p11 = pneg %p5622_p7 }
 0x4fa   : > { %p5629_p0 = por %p5628_p8, %p5627_p13 }
 0x4fc   : > { %p5630_p6 = pnand %p5629_p0, %p5623_p11 }
 0x4fe   : > { %5633 = shalt.err (!%p5630_p6)
}
 0x4ff   : > { %s5701_s4 = smov 384   ;;  %s5702_s16 = smov 24  }
 0x500   : > { %5353 = dma.vmem_to_hbm [thread:$0]  (%p9776_p2), %s8550_s17, 18432, %s8548_s29, %s4559_s28, %s5701_s4, %s5701_s4, %s5702_s16  }
 0x501 PF: > { %s9785_s10 = sld [smem:[#allocation21_spill]]  ;;  %p5388_p12 = scmp.ge.s32.totalorder %s5688_s27, 2 }
 0x502   : > { %s4606_s5 = sand.u32 1, %s5676_s24  }
 0x503   : > { %s4607_s15 = scalar_lea.sflag [#allocation5], %s4606_s5 }
 0x507   : > { %p9786_p5 = scmp.ne.s32.totalorder %s9785_s10, 0 }
 0x509   : > { %p5375_p10 = pnand %p5388_p12, %p9786_p5 }
 0x50b   : > { %5667 = dma.done.wait (!%p5375_p10), %s4607_s15, 18432  }
 0x50c   : > { %5669 = vsyncadd (!%p5375_p10), %s4607_s15, 4294948864  ;;  %s4616_s11 = scalar_lea.sflag [#allocation14], %s4606_s5 }
 0x50d   : > { %5671 = dma.done.wait (!%p5375_p10), %s4616_s11, 384  }
 0x50e   : > { %5673 = vsyncadd (!%p5375_p10), %s4616_s11, 4294966912  ;;  %p28_p2 = scmp.ge.s32.totalorder %s5882_s22, 6   ;;  %s9787_s24 = smov %s5680_s25 }
 0x50f   : > { %s9788_s25 = smov %s5684_s26  ;;  %s9789_s26 = smov %s5892_s18 }
 0x510   : > { %s9790_s27 = smov %s5882_s22  ;;  %30 = sbr.rel (!%p28_p2) target bundleno = 14 (0xe), region = 134 }
 0x517   :  { %4621 = vsyncpa [#allocation4], 1 }
 0x518   :  { %4623 = vsyncpa [#allocation4 + $0x1], 1 }
 0x519   :  { %4624 = vsyncpa [#allocation7], 1 }
 0x51a   :  { %4626 = vsyncpa [#allocation7 + $0x1], 1 }
 0x51b   :  { %4627 = vsyncpa [#allocation10], 1 }
 0x51c   :  { %4628 = vsyncpa [#allocation5], 1 }
 0x51d   :  { %4630 = vsyncpa [#allocation5 + $0x1], 1 }
 0x51e   :  { %4631 = vsyncpa [#allocation14], 1 }
 0x51f   :  { %4633 = vsyncpa [#allocation14 + $0x1], 1 }

</bundles_post_ra>
